<compile_context>
chip_gen: v6e
topology: v6e:2x2x1
jax: 0.10.0
libtpu: 0.0.40
codegen_flags: <defaults>
</compile_context>

<pallas_src>
import functools
import math

import jax
import jax.numpy as jnp
from jax.experimental import pallas as pl
from jax.experimental.pallas import tpu as pltpu


def _context_conv_kernel(x_ref, mask_ref, *rest, layer_dims, k, Wp, Dmax, Nv, Ntot):
    # x_ref   : (C0, Ntot)  f32   layer-0 input, already zero-padded + flattened
    #                             (Ntot = B*Hp*Wp, zero halos around each image)
    # mask_ref: (1, Nv)     f32   1.0 at valid output positions, 0.0 at halos
    # per layer i:
    #   dw_ref: (k*k, cin, 1)     depthwise taps, row t = kh*k + kw
    #   pw_ref: (cin, cout, 1)    pointwise 1x1 weights (transposed torch layout)
    #   b_ref : (cout, 1)         folded bias (dw bias already merged in)
    # o_ref   : (cout_last, Nv)
    # act_ref : (C_scr, Ntot) f32 activation scratch for layers >= 1
    L = len(layer_dims)
    w_refs = rest[:3 * L]
    o_ref = rest[3 * L]
    act_ref = rest[3 * L + 1]
    p = k // 2

    if L > 1:
        # Zero ONLY the outer halo strips of the scratch; every interior lane
        # is overwritten with masked data before anything reads it.
        c_scr = act_ref.shape[0]
        act_ref[:, 0:Dmax] = jnp.zeros((c_scr, Dmax), jnp.float32)
        act_ref[:, Ntot - Dmax:Ntot] = jnp.zeros((c_scr, Dmax), jnp.float32)

    mask = mask_ref[...]                                    # (1, Nv)

    cur = x_ref                                             # current layer input ref
    for li, (cin, cout) in enumerate(layer_dims):
        dw_ref = w_refs[3 * li]                             # (k*k, cin, 1)
        pw_ref = w_refs[3 * li + 1]                         # (cin, cout, 1)
        b_ref = w_refs[3 * li + 2]                          # (cout, 1)

        # ---- depthwise kxk "same" conv: k band loads, k shifted slices each.
        # Output flat position Dmax+j needs input flat position j + kh*Wp + kw.
        # Working set is a handful of vregs, so the unrolled Python loops do
        # not come close to the 64-vreg file (no spill risk at these sizes).
        acc = None
        for kh in range(k):
            band = cur[0:cin, kh * Wp: kh * Wp + Nv + 2 * p]      # (cin, Nv+2p)
            for kw in range(k):
                t = kh * k + kw
                term = band[:, kw:kw + Nv] * dw_ref[t]            # (cin,1) bcast
                acc = term if acc is None else acc + term          # (cin, Nv)

        # ---- pointwise 1x1 conv straight from the in-register accumulator
        # (VPU broadcast-MACs; channels are far too small for the MXU).
        out = acc[0:1, :] * pw_ref[0] + b_ref[...]                 # (cout, Nv)
        for ci in range(1, cin):
            out = out + acc[ci:ci + 1, :] * pw_ref[ci]
        # Re-zero halo positions so the next layer sees clean "same" padding.
        out = out * mask

        if li + 1 < L:
            act_ref[0:cout, Dmax:Dmax + Nv] = out                  # single store
            cur = act_ref
        else:
            o_ref[...] = out.astype(o_ref.dtype)


def context_conv_forward(x, params, k):
    """x: [B, H, C_in, W] (or [B, H, C_in]) -> [B, H, C_out, W] (or [B, H, C_out])."""
    squeeze = (x.ndim == 3)
    if squeeze:
        x = x[..., None]                      # module appends a trailing spatial dim
    B, H, C0, W = x.shape
    p = k // 2
    Hp, Wp = H + 2 * p, W + 2 * p
    Np = Hp * Wp                              # one padded image
    Ntot = B * Np                             # all batches flattened on lanes
    Dmax = p * Wp + p                         # largest tap offset magnitude
    Nv = Ntot - 2 * Dmax                      # window containing every valid output

    layer_dims = []
    weight_args = []
    for dw_w, dw_b, pw_w, pw_b in params:
        cout, cin = pw_w.shape
        layer_dims.append((cin, cout))
        # Fold the depthwise bias into the pointwise bias (exact):
        #   pw(dw(x) + dwb) + pwb == pw(dw(x)) + (pw_w @ dwb + pwb)
        eff_b = pw_w @ dw_b + pw_b                               # (cout,)
        weight_args += [
            jnp.transpose(dw_w)[:, :, None].astype(jnp.float32),  # (k*k, cin, 1)
            jnp.transpose(pw_w)[:, :, None].astype(jnp.float32),  # (cin, cout, 1)
            eff_b[:, None].astype(jnp.float32),                   # (cout, 1)
        ]
    assert layer_dims[0][0] == C0, (layer_dims, C0)
    cout_last = layer_dims[-1][1]
    c_scr = max((cin for cin, _ in layer_dims[1:]), default=1)

    # Lane-dense packing: (B,H,C,W) -> (C, B, Hp, Wp) with zero halos -> (C, Ntot).
    # This is layout plumbing only; the halos implement "same" padding in-kernel.
    xt = jnp.transpose(x, (2, 0, 1, 3))                          # (C0, B, H, W)
    xp = jnp.pad(xt, ((0, 0), (0, 0), (p, p), (p, p)))           # (C0, B, Hp, Wp)
    x_flat = xp.reshape(C0, Ntot).astype(jnp.float32)

    # Validity mask over the output window [Dmax, Ntot - Dmax).
    pos = Dmax + jnp.arange(Nv)
    r = (pos % Np) // Wp
    c = pos % Wp
    mask = (((r >= p) & (r < p + H)) & ((c >= p) & (c < p + W)))
    mask = mask.astype(jnp.float32)[None, :]                     # (1, Nv)

    kernel = functools.partial(_context_conv_kernel, layer_dims=tuple(layer_dims),
                               k=k, Wp=Wp, Dmax=Dmax, Nv=Nv, Ntot=Ntot)

    inputs = [x_flat, mask] + weight_args
    in_specs = [pl.BlockSpec(a.shape, lambda i, nd=a.ndim: (0,) * nd) for a in inputs]

    out_k = pl.pallas_call(
        kernel,
        out_shape=jax.ShapeDtypeStruct((cout_last, Nv), x.dtype),
        grid=(1,),                    # batch folded onto lanes: one grid step
        in_specs=in_specs,
        out_specs=pl.BlockSpec((cout_last, Nv), lambda i: (0, 0)),
        scratch_shapes=[pltpu.VMEM((c_scr, Ntot), jnp.float32)],
        compiler_params=pltpu.CompilerParams(
            dimension_semantics=("arbitrary",),
            vmem_limit_bytes=32 * 1024 * 1024),
    )(*inputs)

    # Unpack the lane-dense slab back to [B, H, C_out, W] (cheap XLA epilogue).
    full = jnp.pad(out_k, ((0, 0), (Dmax, Dmax)))                # (cout, Ntot)
    full = full.reshape(cout_last, B, Hp, Wp)
    out = jnp.transpose(full[:, :, p:p + H, p:p + W], (1, 2, 0, 3))  # (B,H,cout,W)
    return out[..., 0] if squeeze else out


def init_dsconv_params(key, in_ch, out_ch, k):
    """Kaiming-normal-like init with the torch fan-ins.
    depthwise weight (in_ch,1,k,k)      -> stored (in_ch, k*k), fan_in = k*k
    pointwise weight (out_ch,in_ch,1,1) -> stored (out_ch, in_ch), fan_in = in_ch
    biases initialized to 0 (as in the module)."""
    k1, k2 = jax.random.split(key)
    dw_std = math.sqrt(2.0 / (k * k))
    pw_std = math.sqrt(2.0 / in_ch)
    dw_w = jax.random.normal(k1, (in_ch, k * k), jnp.float32) * dw_std
    dw_b = jnp.zeros((in_ch,), jnp.float32)
    pw_w = jax.random.normal(k2, (out_ch, in_ch), jnp.float32) * pw_std
    pw_b = jnp.zeros((out_ch,), jnp.float32)
    return dw_w, dw_b, pw_w, pw_b


def context_conv_params(key, input_channel, out_channel, k):
    layer_dims = []
    channel = input_channel
    while channel > 2 * out_channel:
        layer_dims.append((channel, channel // 2))
        channel //= 2
    layer_dims.append((channel, out_channel))
    keys = jax.random.split(key, len(layer_dims))
    return [init_dsconv_params(kk, cin, cout, k)
            for kk, (cin, cout) in zip(keys, layer_dims)]


# ----- pure-JAX reference (correctness check only) -----
def _context_conv_ref(x_bhcw, params, k):
    p = k // 2
    x = jnp.transpose(x_bhcw, (0, 2, 1, 3))            # [B, C, H, W]
    for dw_w, dw_b, pw_w, pw_b in params:
        cout, cin = pw_w.shape
        dw_oihw = dw_w.reshape(cin, 1, k, k)
        y = jax.lax.conv_general_dilated(
            x, dw_oihw, (1, 1), [(p, p), (p, p)],
            dimension_numbers=("NCHW", "OIHW", "NCHW"),
            feature_group_count=cin)
        y = y + dw_b.reshape(1, cin, 1, 1)
        pw_oihw = pw_w[:, :, None, None]                # (Cout, Cin, 1, 1)
        z = jax.lax.conv_general_dilated(
            y, pw_oihw, (1, 1), [(0, 0), (0, 0)],
            dimension_numbers=("NCHW", "OIHW", "NCHW"))
        x = z + pw_b.reshape(1, cout, 1, 1)
    return jnp.transpose(x, (0, 2, 1, 3))               # back to [B, H, C, W]


if __name__ == "__main__":
    B, H, W = 2, 8, 8
    input_channel, out_channel, ksize = 16, 4, 5        # layer chain: 16->8, 8->4

    key = jax.random.PRNGKey(0)
    kx, kp, kb = jax.random.split(key, 3)
    x = jax.random.normal(kx, (B, H, input_channel, W), jnp.float32)
    params = context_conv_params(kp, input_channel, out_channel, ksize)

    # The torch module initializes biases to 0; use small non-zero biases here so
    # the bias-folding path is actually exercised by the correctness check.
    bkeys = jax.random.split(kb, 2 * len(params))
    params = [
        (dw_w,
         0.1 * jax.random.normal(bkeys[2 * i], dw_b.shape, jnp.float32),
         pw_w,
         0.1 * jax.random.normal(bkeys[2 * i + 1], pw_b.shape, jnp.float32))
        for i, (dw_w, dw_b, pw_w, pw_b) in enumerate(params)
    ]

    out = jax.block_until_ready(context_conv_forward(x, params, ksize))
    assert out.shape == (B, H, out_channel, W), out.shape

    ref = _context_conv_ref(x, params, ksize)
    err = float(jnp.max(jnp.abs(out - ref)))
    assert jnp.allclose(out, ref, atol=2e-3, rtol=2e-3), err

    print("KERNEL_OK")
</pallas_src>

<mosaic_0001>
module attributes {stable_mosaic.version = 11 : i64} {
  func.func @_context_conv_kernel(%arg0: i32, %arg1: memref<16x288xf32, #tpu.memory_space<vmem>>, %arg2: memref<1x236xf32, #tpu.memory_space<vmem>>, %arg3: memref<25x16x1xf32, #tpu.memory_space<vmem>>, %arg4: memref<16x8x1xf32, #tpu.memory_space<vmem>>, %arg5: memref<8x1xf32, #tpu.memory_space<vmem>>, %arg6: memref<25x8x1xf32, #tpu.memory_space<vmem>>, %arg7: memref<8x4x1xf32, #tpu.memory_space<vmem>>, %arg8: memref<4x1xf32, #tpu.memory_space<vmem>>, %arg9: memref<4x236xf32, #tpu.memory_space<vmem>>, %arg10: memref<8x288xf32, #tpu.memory_space<vmem>>) attributes {dimension_semantics = [#tpu.dimension_semantics<arbitrary>], iteration_bounds = array<i64: 1>, scalar_prefetch = 0 : i64, scratch_operands = 1 : i64, tpu.core_type = #tpu.core_type<tc>, window_params = [{pipeline_mode = #tpu.pipeline_mode<synchronous>, transform_indices = @transform_0, window_bounds = array<i64: 16, 288>}, {pipeline_mode = #tpu.pipeline_mode<synchronous>, transform_indices = @transform_1, window_bounds = array<i64: 1, 236>}, {pipeline_mode = #tpu.pipeline_mode<synchronous>, transform_indices = @transform_2, window_bounds = array<i64: 25, 16, 1>}, {pipeline_mode = #tpu.pipeline_mode<synchronous>, transform_indices = @transform_3, window_bounds = array<i64: 16, 8, 1>}, {pipeline_mode = #tpu.pipeline_mode<synchronous>, transform_indices = @transform_4, window_bounds = array<i64: 8, 1>}, {pipeline_mode = #tpu.pipeline_mode<synchronous>, transform_indices = @transform_5, window_bounds = array<i64: 25, 8, 1>}, {pipeline_mode = #tpu.pipeline_mode<synchronous>, transform_indices = @transform_6, window_bounds = array<i64: 8, 4, 1>}, {pipeline_mode = #tpu.pipeline_mode<synchronous>, transform_indices = @transform_7, window_bounds = array<i64: 4, 1>}, {pipeline_mode = #tpu.pipeline_mode<synchronous>, transform_indices = @transform_8, window_bounds = array<i64: 4, 236>}]} {
    %cst = arith.constant 0.000000e+00 : f32
    %0 = vector.broadcast %cst : f32 to vector<8x26xf32>
    %c0 = arith.constant 0 : index
    %c0_0 = arith.constant 0 : index
    %1 = vector.load %arg10[%c0, %c0_0] : memref<8x288xf32, #tpu.memory_space<vmem>>, vector<8x26xf32>
    tpu.vector_store %arg10[%c0, %c0_0], %0 {strides = array<i32>} : memref<8x288xf32, #tpu.memory_space<vmem>>, vector<8x26xf32>,
    %cst_1 = arith.constant 0.000000e+00 : f32
    %2 = vector.broadcast %cst_1 : f32 to vector<8x26xf32>
    %c0_2 = arith.constant 0 : index
    %c262 = arith.constant 262 : index
    %3 = vector.load %arg10[%c0_2, %c262] : memref<8x288xf32, #tpu.memory_space<vmem>>, vector<8x26xf32>
    tpu.vector_store %arg10[%c0_2, %c262], %2 {strides = array<i32>} : memref<8x288xf32, #tpu.memory_space<vmem>>, vector<8x26xf32>,
    %c0_3 = arith.constant 0 : index
    %c0_4 = arith.constant 0 : index
    %4 = vector.load %arg2[%c0_3, %c0_4] : memref<1x236xf32, #tpu.memory_space<vmem>>, vector<1x236xf32>
    %c0_5 = arith.constant 0 : index
    %c0_6 = arith.constant 0 : index
    %5 = vector.load %arg1[%c0_5, %c0_6] : memref<16x288xf32, #tpu.memory_space<vmem>>, vector<16x240xf32>
    %6 = vector.extract_strided_slice %5 {offsets = [0, 0], sizes = [16, 236], strides = [1, 1]} : vector<16x240xf32> to vector<16x236xf32>
    %c0_7 = arith.constant 0 : index
    %c0_8 = arith.constant 0 : index
    %c0_9 = arith.constant 0 : index
    %7 = vector.load %arg3[%c0_7, %c0_8, %c0_9] : memref<25x16x1xf32, #tpu.memory_space<vmem>>, vector<1x16x1xf32>
    %8 = vector.shape_cast %7 : vector<1x16x1xf32> to vector<16x1xf32>
    %9 = vector.broadcast %8 : vector<16x1xf32> to vector<16x236xf32>
    %10 = arith.mulf %6, %9 : vector<16x236xf32>
    %11 = vector.extract_strided_slice %5 {offsets = [0, 1], sizes = [16, 236], strides = [1, 1]} : vector<16x240xf32> to vector<16x236xf32>
    %c1 = arith.constant 1 : index
    %c0_10 = arith.constant 0 : index
    %c0_11 = arith.constant 0 : index
    %12 = vector.load %arg3[%c1, %c0_10, %c0_11] : memref<25x16x1xf32, #tpu.memory_space<vmem>>, vector<1x16x1xf32>
    %13 = vector.shape_cast %12 : vector<1x16x1xf32> to vector<16x1xf32>
    %14 = vector.broadcast %13 : vector<16x1xf32> to vector<16x236xf32>
    %15 = arith.mulf %11, %14 : vector<16x236xf32>
    %16 = arith.addf %10, %15 : vector<16x236xf32>
    %17 = vector.extract_strided_slice %5 {offsets = [0, 2], sizes = [16, 236], strides = [1, 1]} : vector<16x240xf32> to vector<16x236xf32>
    %c2 = arith.constant 2 : index
    %c0_12 = arith.constant 0 : index
    %c0_13 = arith.constant 0 : index
    %18 = vector.load %arg3[%c2, %c0_12, %c0_13] : memref<25x16x1xf32, #tpu.memory_space<vmem>>, vector<1x16x1xf32>
    %19 = vector.shape_cast %18 : vector<1x16x1xf32> to vector<16x1xf32>
    %20 = vector.broadcast %19 : vector<16x1xf32> to vector<16x236xf32>
    %21 = arith.mulf %17, %20 : vector<16x236xf32>
    %22 = arith.addf %16, %21 : vector<16x236xf32>
    %23 = vector.extract_strided_slice %5 {offsets = [0, 3], sizes = [16, 236], strides = [1, 1]} : vector<16x240xf32> to vector<16x236xf32>
    %c3 = arith.constant 3 : index
    %c0_14 = arith.constant 0 : index
    %c0_15 = arith.constant 0 : index
    %24 = vector.load %arg3[%c3, %c0_14, %c0_15] : memref<25x16x1xf32, #tpu.memory_space<vmem>>, vector<1x16x1xf32>
    %25 = vector.shape_cast %24 : vector<1x16x1xf32> to vector<16x1xf32>
    %26 = vector.broadcast %25 : vector<16x1xf32> to vector<16x236xf32>
    %27 = arith.mulf %23, %26 : vector<16x236xf32>
    %28 = arith.addf %22, %27 : vector<16x236xf32>
    %29 = vector.extract_strided_slice %5 {offsets = [0, 4], sizes = [16, 236], strides = [1, 1]} : vector<16x240xf32> to vector<16x236xf32>
    %c4 = arith.constant 4 : index
    %c0_16 = arith.constant 0 : index
    %c0_17 = arith.constant 0 : index
    %30 = vector.load %arg3[%c4, %c0_16, %c0_17] : memref<25x16x1xf32, #tpu.memory_space<vmem>>, vector<1x16x1xf32>
    %31 = vector.shape_cast %30 : vector<1x16x1xf32> to vector<16x1xf32>
    %32 = vector.broadcast %31 : vector<16x1xf32> to vector<16x236xf32>
    %33 = arith.mulf %29, %32 : vector<16x236xf32>
    %34 = arith.addf %28, %33 : vector<16x236xf32>
    %c0_18 = arith.constant 0 : index
    %c12 = arith.constant 12 : index
    %35 = vector.load %arg1[%c0_18, %c12] : memref<16x288xf32, #tpu.memory_space<vmem>>, vector<16x240xf32>
    %36 = vector.extract_strided_slice %35 {offsets = [0, 0], sizes = [16, 236], strides = [1, 1]} : vector<16x240xf32> to vector<16x236xf32>
    %c5 = arith.constant 5 : index
    %c0_19 = arith.constant 0 : index
    %c0_20 = arith.constant 0 : index
    %37 = vector.load %arg3[%c5, %c0_19, %c0_20] : memref<25x16x1xf32, #tpu.memory_space<vmem>>, vector<1x16x1xf32>
    %38 = vector.shape_cast %37 : vector<1x16x1xf32> to vector<16x1xf32>
    %39 = vector.broadcast %38 : vector<16x1xf32> to vector<16x236xf32>
    %40 = arith.mulf %36, %39 : vector<16x236xf32>
    %41 = arith.addf %34, %40 : vector<16x236xf32>
    %42 = vector.extract_strided_slice %35 {offsets = [0, 1], sizes = [16, 236], strides = [1, 1]} : vector<16x240xf32> to vector<16x236xf32>
    %c6 = arith.constant 6 : index
    %c0_21 = arith.constant 0 : index
    %c0_22 = arith.constant 0 : index
    %43 = vector.load %arg3[%c6, %c0_21, %c0_22] : memref<25x16x1xf32, #tpu.memory_space<vmem>>, vector<1x16x1xf32>
    %44 = vector.shape_cast %43 : vector<1x16x1xf32> to vector<16x1xf32>
    %45 = vector.broadcast %44 : vector<16x1xf32> to vector<16x236xf32>
    %46 = arith.mulf %42, %45 : vector<16x236xf32>
    %47 = arith.addf %41, %46 : vector<16x236xf32>
    %48 = vector.extract_strided_slice %35 {offsets = [0, 2], sizes = [16, 236], strides = [1, 1]} : vector<16x240xf32> to vector<16x236xf32>
    %c7 = arith.constant 7 : index
    %c0_23 = arith.constant 0 : index
    %c0_24 = arith.constant 0 : index
    %49 = vector.load %arg3[%c7, %c0_23, %c0_24] : memref<25x16x1xf32, #tpu.memory_space<vmem>>, vector<1x16x1xf32>
    %50 = vector.shape_cast %49 : vector<1x16x1xf32> to vector<16x1xf32>
    %51 = vector.broadcast %50 : vector<16x1xf32> to vector<16x236xf32>
    %52 = arith.mulf %48, %51 : vector<16x236xf32>
    %53 = arith.addf %47, %52 : vector<16x236xf32>
    %54 = vector.extract_strided_slice %35 {offsets = [0, 3], sizes = [16, 236], strides = [1, 1]} : vector<16x240xf32> to vector<16x236xf32>
    %c8 = arith.constant 8 : index
    %c0_25 = arith.constant 0 : index
    %c0_26 = arith.constant 0 : index
    %55 = vector.load %arg3[%c8, %c0_25, %c0_26] : memref<25x16x1xf32, #tpu.memory_space<vmem>>, vector<1x16x1xf32>
    %56 = vector.shape_cast %55 : vector<1x16x1xf32> to vector<16x1xf32>
    %57 = vector.broadcast %56 : vector<16x1xf32> to vector<16x236xf32>
    %58 = arith.mulf %54, %57 : vector<16x236xf32>
    %59 = arith.addf %53, %58 : vector<16x236xf32>
    %60 = vector.extract_strided_slice %35 {offsets = [0, 4], sizes = [16, 236], strides = [1, 1]} : vector<16x240xf32> to vector<16x236xf32>
    %c9 = arith.constant 9 : index
    %c0_27 = arith.constant 0 : index
    %c0_28 = arith.constant 0 : index
    %61 = vector.load %arg3[%c9, %c0_27, %c0_28] : memref<25x16x1xf32, #tpu.memory_space<vmem>>, vector<1x16x1xf32>
    %62 = vector.shape_cast %61 : vector<1x16x1xf32> to vector<16x1xf32>
    %63 = vector.broadcast %62 : vector<16x1xf32> to vector<16x236xf32>
    %64 = arith.mulf %60, %63 : vector<16x236xf32>
    %65 = arith.addf %59, %64 : vector<16x236xf32>
    %c0_29 = arith.constant 0 : index
    %c24 = arith.constant 24 : index
    %66 = vector.load %arg1[%c0_29, %c24] : memref<16x288xf32, #tpu.memory_space<vmem>>, vector<16x240xf32>
    %67 = vector.extract_strided_slice %66 {offsets = [0, 0], sizes = [16, 236], strides = [1, 1]} : vector<16x240xf32> to vector<16x236xf32>
    %c10 = arith.constant 10 : index
    %c0_30 = arith.constant 0 : index
    %c0_31 = arith.constant 0 : index
    %68 = vector.load %arg3[%c10, %c0_30, %c0_31] : memref<25x16x1xf32, #tpu.memory_space<vmem>>, vector<1x16x1xf32>
    %69 = vector.shape_cast %68 : vector<1x16x1xf32> to vector<16x1xf32>
    %70 = vector.broadcast %69 : vector<16x1xf32> to vector<16x236xf32>
    %71 = arith.mulf %67, %70 : vector<16x236xf32>
    %72 = arith.addf %65, %71 : vector<16x236xf32>
    %73 = vector.extract_strided_slice %66 {offsets = [0, 1], sizes = [16, 236], strides = [1, 1]} : vector<16x240xf32> to vector<16x236xf32>
    %c11 = arith.constant 11 : index
    %c0_32 = arith.constant 0 : index
    %c0_33 = arith.constant 0 : index
    %74 = vector.load %arg3[%c11, %c0_32, %c0_33] : memref<25x16x1xf32, #tpu.memory_space<vmem>>, vector<1x16x1xf32>
    %75 = vector.shape_cast %74 : vector<1x16x1xf32> to vector<16x1xf32>
    %76 = vector.broadcast %75 : vector<16x1xf32> to vector<16x236xf32>
    %77 = arith.mulf %73, %76 : vector<16x236xf32>
    %78 = arith.addf %72, %77 : vector<16x236xf32>
    %79 = vector.extract_strided_slice %66 {offsets = [0, 2], sizes = [16, 236], strides = [1, 1]} : vector<16x240xf32> to vector<16x236xf32>
    %c12_34 = arith.constant 12 : index
    %c0_35 = arith.constant 0 : index
    %c0_36 = arith.constant 0 : index
    %80 = vector.load %arg3[%c12_34, %c0_35, %c0_36] : memref<25x16x1xf32, #tpu.memory_space<vmem>>, vector<1x16x1xf32>
    %81 = vector.shape_cast %80 : vector<1x16x1xf32> to vector<16x1xf32>
    %82 = vector.broadcast %81 : vector<16x1xf32> to vector<16x236xf32>
    %83 = arith.mulf %79, %82 : vector<16x236xf32>
    %84 = arith.addf %78, %83 : vector<16x236xf32>
    %85 = vector.extract_strided_slice %66 {offsets = [0, 3], sizes = [16, 236], strides = [1, 1]} : vector<16x240xf32> to vector<16x236xf32>
    %c13 = arith.constant 13 : index
    %c0_37 = arith.constant 0 : index
    %c0_38 = arith.constant 0 : index
    %86 = vector.load %arg3[%c13, %c0_37, %c0_38] : memref<25x16x1xf32, #tpu.memory_space<vmem>>, vector<1x16x1xf32>
    %87 = vector.shape_cast %86 : vector<1x16x1xf32> to vector<16x1xf32>
    %88 = vector.broadcast %87 : vector<16x1xf32> to vector<16x236xf32>
    %89 = arith.mulf %85, %88 : vector<16x236xf32>
    %90 = arith.addf %84, %89 : vector<16x236xf32>
    %91 = vector.extract_strided_slice %66 {offsets = [0, 4], sizes = [16, 236], strides = [1, 1]} : vector<16x240xf32> to vector<16x236xf32>
    %c14 = arith.constant 14 : index
    %c0_39 = arith.constant 0 : index
    %c0_40 = arith.constant 0 : index
    %92 = vector.load %arg3[%c14, %c0_39, %c0_40] : memref<25x16x1xf32, #tpu.memory_space<vmem>>, vector<1x16x1xf32>
    %93 = vector.shape_cast %92 : vector<1x16x1xf32> to vector<16x1xf32>
    %94 = vector.broadcast %93 : vector<16x1xf32> to vector<16x236xf32>
    %95 = arith.mulf %91, %94 : vector<16x236xf32>
    %96 = arith.addf %90, %95 : vector<16x236xf32>
    %c0_41 = arith.constant 0 : index
    %c36 = arith.constant 36 : index
    %97 = vector.load %arg1[%c0_41, %c36] : memref<16x288xf32, #tpu.memory_space<vmem>>, vector<16x240xf32>
    %98 = vector.extract_strided_slice %97 {offsets = [0, 0], sizes = [16, 236], strides = [1, 1]} : vector<16x240xf32> to vector<16x236xf32>
    %c15 = arith.constant 15 : index
    %c0_42 = arith.constant 0 : index
    %c0_43 = arith.constant 0 : index
    %99 = vector.load %arg3[%c15, %c0_42, %c0_43] : memref<25x16x1xf32, #tpu.memory_space<vmem>>, vector<1x16x1xf32>
    %100 = vector.shape_cast %99 : vector<1x16x1xf32> to vector<16x1xf32>
    %101 = vector.broadcast %100 : vector<16x1xf32> to vector<16x236xf32>
    %102 = arith.mulf %98, %101 : vector<16x236xf32>
    %103 = arith.addf %96, %102 : vector<16x236xf32>
    %104 = vector.extract_strided_slice %97 {offsets = [0, 1], sizes = [16, 236], strides = [1, 1]} : vector<16x240xf32> to vector<16x236xf32>
    %c16 = arith.constant 16 : index
    %c0_44 = arith.constant 0 : index
    %c0_45 = arith.constant 0 : index
    %105 = vector.load %arg3[%c16, %c0_44, %c0_45] : memref<25x16x1xf32, #tpu.memory_space<vmem>>, vector<1x16x1xf32>
    %106 = vector.shape_cast %105 : vector<1x16x1xf32> to vector<16x1xf32>
    %107 = vector.broadcast %106 : vector<16x1xf32> to vector<16x236xf32>
    %108 = arith.mulf %104, %107 : vector<16x236xf32>
    %109 = arith.addf %103, %108 : vector<16x236xf32>
    %110 = vector.extract_strided_slice %97 {offsets = [0, 2], sizes = [16, 236], strides = [1, 1]} : vector<16x240xf32> to vector<16x236xf32>
    %c17 = arith.constant 17 : index
    %c0_46 = arith.constant 0 : index
    %c0_47 = arith.constant 0 : index
    %111 = vector.load %arg3[%c17, %c0_46, %c0_47] : memref<25x16x1xf32, #tpu.memory_space<vmem>>, vector<1x16x1xf32>
    %112 = vector.shape_cast %111 : vector<1x16x1xf32> to vector<16x1xf32>
    %113 = vector.broadcast %112 : vector<16x1xf32> to vector<16x236xf32>
    %114 = arith.mulf %110, %113 : vector<16x236xf32>
    %115 = arith.addf %109, %114 : vector<16x236xf32>
    %116 = vector.extract_strided_slice %97 {offsets = [0, 3], sizes = [16, 236], strides = [1, 1]} : vector<16x240xf32> to vector<16x236xf32>
    %c18 = arith.constant 18 : index
    %c0_48 = arith.constant 0 : index
    %c0_49 = arith.constant 0 : index
    %117 = vector.load %arg3[%c18, %c0_48, %c0_49] : memref<25x16x1xf32, #tpu.memory_space<vmem>>, vector<1x16x1xf32>
    %118 = vector.shape_cast %117 : vector<1x16x1xf32> to vector<16x1xf32>
    %119 = vector.broadcast %118 : vector<16x1xf32> to vector<16x236xf32>
    %120 = arith.mulf %116, %119 : vector<16x236xf32>
    %121 = arith.addf %115, %120 : vector<16x236xf32>
    %122 = vector.extract_strided_slice %97 {offsets = [0, 4], sizes = [16, 236], strides = [1, 1]} : vector<16x240xf32> to vector<16x236xf32>
    %c19 = arith.constant 19 : index
    %c0_50 = arith.constant 0 : index
    %c0_51 = arith.constant 0 : index
    %123 = vector.load %arg3[%c19, %c0_50, %c0_51] : memref<25x16x1xf32, #tpu.memory_space<vmem>>, vector<1x16x1xf32>
    %124 = vector.shape_cast %123 : vector<1x16x1xf32> to vector<16x1xf32>
    %125 = vector.broadcast %124 : vector<16x1xf32> to vector<16x236xf32>
    %126 = arith.mulf %122, %125 : vector<16x236xf32>
    %127 = arith.addf %121, %126 : vector<16x236xf32>
    %c0_52 = arith.constant 0 : index
    %c48 = arith.constant 48 : index
    %128 = vector.load %arg1[%c0_52, %c48] : memref<16x288xf32, #tpu.memory_space<vmem>>, vector<16x240xf32>
    %129 = vector.extract_strided_slice %128 {offsets = [0, 0], sizes = [16, 236], strides = [1, 1]} : vector<16x240xf32> to vector<16x236xf32>
    %c20 = arith.constant 20 : index
    %c0_53 = arith.constant 0 : index
    %c0_54 = arith.constant 0 : index
    %130 = vector.load %arg3[%c20, %c0_53, %c0_54] : memref<25x16x1xf32, #tpu.memory_space<vmem>>, vector<1x16x1xf32>
    %131 = vector.shape_cast %130 : vector<1x16x1xf32> to vector<16x1xf32>
    %132 = vector.broadcast %131 : vector<16x1xf32> to vector<16x236xf32>
    %133 = arith.mulf %129, %132 : vector<16x236xf32>
    %134 = arith.addf %127, %133 : vector<16x236xf32>
    %135 = vector.extract_strided_slice %128 {offsets = [0, 1], sizes = [16, 236], strides = [1, 1]} : vector<16x240xf32> to vector<16x236xf32>
    %c21 = arith.constant 21 : index
    %c0_55 = arith.constant 0 : index
    %c0_56 = arith.constant 0 : index
    %136 = vector.load %arg3[%c21, %c0_55, %c0_56] : memref<25x16x1xf32, #tpu.memory_space<vmem>>, vector<1x16x1xf32>
    %137 = vector.shape_cast %136 : vector<1x16x1xf32> to vector<16x1xf32>
    %138 = vector.broadcast %137 : vector<16x1xf32> to vector<16x236xf32>
    %139 = arith.mulf %135, %138 : vector<16x236xf32>
    %140 = arith.addf %134, %139 : vector<16x236xf32>
    %141 = vector.extract_strided_slice %128 {offsets = [0, 2], sizes = [16, 236], strides = [1, 1]} : vector<16x240xf32> to vector<16x236xf32>
    %c22 = arith.constant 22 : index
    %c0_57 = arith.constant 0 : index
    %c0_58 = arith.constant 0 : index
    %142 = vector.load %arg3[%c22, %c0_57, %c0_58] : memref<25x16x1xf32, #tpu.memory_space<vmem>>, vector<1x16x1xf32>
    %143 = vector.shape_cast %142 : vector<1x16x1xf32> to vector<16x1xf32>
    %144 = vector.broadcast %143 : vector<16x1xf32> to vector<16x236xf32>
    %145 = arith.mulf %141, %144 : vector<16x236xf32>
    %146 = arith.addf %140, %145 : vector<16x236xf32>
    %147 = vector.extract_strided_slice %128 {offsets = [0, 3], sizes = [16, 236], strides = [1, 1]} : vector<16x240xf32> to vector<16x236xf32>
    %c23 = arith.constant 23 : index
    %c0_59 = arith.constant 0 : index
    %c0_60 = arith.constant 0 : index
    %148 = vector.load %arg3[%c23, %c0_59, %c0_60] : memref<25x16x1xf32, #tpu.memory_space<vmem>>, vector<1x16x1xf32>
    %149 = vector.shape_cast %148 : vector<1x16x1xf32> to vector<16x1xf32>
    %150 = vector.broadcast %149 : vector<16x1xf32> to vector<16x236xf32>
    %151 = arith.mulf %147, %150 : vector<16x236xf32>
    %152 = arith.addf %146, %151 : vector<16x236xf32>
    %153 = vector.extract_strided_slice %128 {offsets = [0, 4], sizes = [16, 236], strides = [1, 1]} : vector<16x240xf32> to vector<16x236xf32>
    %c24_61 = arith.constant 24 : index
    %c0_62 = arith.constant 0 : index
    %c0_63 = arith.constant 0 : index
    %154 = vector.load %arg3[%c24_61, %c0_62, %c0_63] : memref<25x16x1xf32, #tpu.memory_space<vmem>>, vector<1x16x1xf32>
    %155 = vector.shape_cast %154 : vector<1x16x1xf32> to vector<16x1xf32>
    %156 = vector.broadcast %155 : vector<16x1xf32> to vector<16x236xf32>
    %157 = arith.mulf %153, %156 : vector<16x236xf32>
    %158 = arith.addf %152, %157 : vector<16x236xf32>
    %159 = vector.extract_strided_slice %158 {offsets = [0, 0], sizes = [1, 236], strides = [1, 1]} : vector<16x236xf32> to vector<1x236xf32>
    %c0_64 = arith.constant 0 : index
    %c0_65 = arith.constant 0 : index
    %c0_66 = arith.constant 0 : index
    %160 = vector.load %arg4[%c0_64, %c0_65, %c0_66] : memref<16x8x1xf32, #tpu.memory_space<vmem>>, vector<1x8x1xf32>
    %161 = vector.shape_cast %160 : vector<1x8x1xf32> to vector<8x1xf32>
    %162 = vector.broadcast %159 : vector<1x236xf32> to vector<8x236xf32>
    %163 = vector.broadcast %161 : vector<8x1xf32> to vector<8x236xf32>
    %164 = arith.mulf %162, %163 : vector<8x236xf32>
    %c0_67 = arith.constant 0 : index
    %c0_68 = arith.constant 0 : index
    %165 = vector.load %arg5[%c0_67, %c0_68] : memref<8x1xf32, #tpu.memory_space<vmem>>, vector<8x1xf32>
    %166 = vector.broadcast %165 : vector<8x1xf32> to vector<8x236xf32>
    %167 = arith.addf %164, %166 : vector<8x236xf32>
    %168 = vector.extract_strided_slice %158 {offsets = [1, 0], sizes = [1, 236], strides = [1, 1]} : vector<16x236xf32> to vector<1x236xf32>
    %c1_69 = arith.constant 1 : index
    %c0_70 = arith.constant 0 : index
    %c0_71 = arith.constant 0 : index
    %169 = vector.load %arg4[%c1_69, %c0_70, %c0_71] : memref<16x8x1xf32, #tpu.memory_space<vmem>>, vector<1x8x1xf32>
    %170 = vector.shape_cast %169 : vector<1x8x1xf32> to vector<8x1xf32>
    %171 = vector.broadcast %168 : vector<1x236xf32> to vector<8x236xf32>
    %172 = vector.broadcast %170 : vector<8x1xf32> to vector<8x236xf32>
    %173 = arith.mulf %171, %172 : vector<8x236xf32>
    %174 = arith.addf %167, %173 : vector<8x236xf32>
    %175 = vector.extract_strided_slice %158 {offsets = [2, 0], sizes = [1, 236], strides = [1, 1]} : vector<16x236xf32> to vector<1x236xf32>
    %c2_72 = arith.constant 2 : index
    %c0_73 = arith.constant 0 : index
    %c0_74 = arith.constant 0 : index
    %176 = vector.load %arg4[%c2_72, %c0_73, %c0_74] : memref<16x8x1xf32, #tpu.memory_space<vmem>>, vector<1x8x1xf32>
    %177 = vector.shape_cast %176 : vector<1x8x1xf32> to vector<8x1xf32>
    %178 = vector.broadcast %175 : vector<1x236xf32> to vector<8x236xf32>
    %179 = vector.broadcast %177 : vector<8x1xf32> to vector<8x236xf32>
    %180 = arith.mulf %178, %179 : vector<8x236xf32>
    %181 = arith.addf %174, %180 : vector<8x236xf32>
    %182 = vector.extract_strided_slice %158 {offsets = [3, 0], sizes = [1, 236], strides = [1, 1]} : vector<16x236xf32> to vector<1x236xf32>
    %c3_75 = arith.constant 3 : index
    %c0_76 = arith.constant 0 : index
    %c0_77 = arith.constant 0 : index
    %183 = vector.load %arg4[%c3_75, %c0_76, %c0_77] : memref<16x8x1xf32, #tpu.memory_space<vmem>>, vector<1x8x1xf32>
    %184 = vector.shape_cast %183 : vector<1x8x1xf32> to vector<8x1xf32>
    %185 = vector.broadcast %182 : vector<1x236xf32> to vector<8x236xf32>
    %186 = vector.broadcast %184 : vector<8x1xf32> to vector<8x236xf32>
    %187 = arith.mulf %185, %186 : vector<8x236xf32>
    %188 = arith.addf %181, %187 : vector<8x236xf32>
    %189 = vector.extract_strided_slice %158 {offsets = [4, 0], sizes = [1, 236], strides = [1, 1]} : vector<16x236xf32> to vector<1x236xf32>
    %c4_78 = arith.constant 4 : index
    %c0_79 = arith.constant 0 : index
    %c0_80 = arith.constant 0 : index
    %190 = vector.load %arg4[%c4_78, %c0_79, %c0_80] : memref<16x8x1xf32, #tpu.memory_space<vmem>>, vector<1x8x1xf32>
    %191 = vector.shape_cast %190 : vector<1x8x1xf32> to vector<8x1xf32>
    %192 = vector.broadcast %189 : vector<1x236xf32> to vector<8x236xf32>
    %193 = vector.broadcast %191 : vector<8x1xf32> to vector<8x236xf32>
    %194 = arith.mulf %192, %193 : vector<8x236xf32>
    %195 = arith.addf %188, %194 : vector<8x236xf32>
    %196 = vector.extract_strided_slice %158 {offsets = [5, 0], sizes = [1, 236], strides = [1, 1]} : vector<16x236xf32> to vector<1x236xf32>
    %c5_81 = arith.constant 5 : index
    %c0_82 = arith.constant 0 : index
    %c0_83 = arith.constant 0 : index
    %197 = vector.load %arg4[%c5_81, %c0_82, %c0_83] : memref<16x8x1xf32, #tpu.memory_space<vmem>>, vector<1x8x1xf32>
    %198 = vector.shape_cast %197 : vector<1x8x1xf32> to vector<8x1xf32>
    %199 = vector.broadcast %196 : vector<1x236xf32> to vector<8x236xf32>
    %200 = vector.broadcast %198 : vector<8x1xf32> to vector<8x236xf32>
    %201 = arith.mulf %199, %200 : vector<8x236xf32>
    %202 = arith.addf %195, %201 : vector<8x236xf32>
    %203 = vector.extract_strided_slice %158 {offsets = [6, 0], sizes = [1, 236], strides = [1, 1]} : vector<16x236xf32> to vector<1x236xf32>
    %c6_84 = arith.constant 6 : index
    %c0_85 = arith.constant 0 : index
    %c0_86 = arith.constant 0 : index
    %204 = vector.load %arg4[%c6_84, %c0_85, %c0_86] : memref<16x8x1xf32, #tpu.memory_space<vmem>>, vector<1x8x1xf32>
    %205 = vector.shape_cast %204 : vector<1x8x1xf32> to vector<8x1xf32>
    %206 = vector.broadcast %203 : vector<1x236xf32> to vector<8x236xf32>
    %207 = vector.broadcast %205 : vector<8x1xf32> to vector<8x236xf32>
    %208 = arith.mulf %206, %207 : vector<8x236xf32>
    %209 = arith.addf %202, %208 : vector<8x236xf32>
    %210 = vector.extract_strided_slice %158 {offsets = [7, 0], sizes = [1, 236], strides = [1, 1]} : vector<16x236xf32> to vector<1x236xf32>
    %c7_87 = arith.constant 7 : index
    %c0_88 = arith.constant 0 : index
    %c0_89 = arith.constant 0 : index
    %211 = vector.load %arg4[%c7_87, %c0_88, %c0_89] : memref<16x8x1xf32, #tpu.memory_space<vmem>>, vector<1x8x1xf32>
    %212 = vector.shape_cast %211 : vector<1x8x1xf32> to vector<8x1xf32>
    %213 = vector.broadcast %210 : vector<1x236xf32> to vector<8x236xf32>
    %214 = vector.broadcast %212 : vector<8x1xf32> to vector<8x236xf32>
    %215 = arith.mulf %213, %214 : vector<8x236xf32>
    %216 = arith.addf %209, %215 : vector<8x236xf32>
    %217 = vector.extract_strided_slice %158 {offsets = [8, 0], sizes = [1, 236], strides = [1, 1]} : vector<16x236xf32> to vector<1x236xf32>
    %c8_90 = arith.constant 8 : index
    %c0_91 = arith.constant 0 : index
    %c0_92 = arith.constant 0 : index
    %218 = vector.load %arg4[%c8_90, %c0_91, %c0_92] : memref<16x8x1xf32, #tpu.memory_space<vmem>>, vector<1x8x1xf32>
    %219 = vector.shape_cast %218 : vector<1x8x1xf32> to vector<8x1xf32>
    %220 = vector.broadcast %217 : vector<1x236xf32> to vector<8x236xf32>
    %221 = vector.broadcast %219 : vector<8x1xf32> to vector<8x236xf32>
    %222 = arith.mulf %220, %221 : vector<8x236xf32>
    %223 = arith.addf %216, %222 : vector<8x236xf32>
    %224 = vector.extract_strided_slice %158 {offsets = [9, 0], sizes = [1, 236], strides = [1, 1]} : vector<16x236xf32> to vector<1x236xf32>
    %c9_93 = arith.constant 9 : index
    %c0_94 = arith.constant 0 : index
    %c0_95 = arith.constant 0 : index
    %225 = vector.load %arg4[%c9_93, %c0_94, %c0_95] : memref<16x8x1xf32, #tpu.memory_space<vmem>>, vector<1x8x1xf32>
    %226 = vector.shape_cast %225 : vector<1x8x1xf32> to vector<8x1xf32>
    %227 = vector.broadcast %224 : vector<1x236xf32> to vector<8x236xf32>
    %228 = vector.broadcast %226 : vector<8x1xf32> to vector<8x236xf32>
    %229 = arith.mulf %227, %228 : vector<8x236xf32>
    %230 = arith.addf %223, %229 : vector<8x236xf32>
    %231 = vector.extract_strided_slice %158 {offsets = [10, 0], sizes = [1, 236], strides = [1, 1]} : vector<16x236xf32> to vector<1x236xf32>
    %c10_96 = arith.constant 10 : index
    %c0_97 = arith.constant 0 : index
    %c0_98 = arith.constant 0 : index
    %232 = vector.load %arg4[%c10_96, %c0_97, %c0_98] : memref<16x8x1xf32, #tpu.memory_space<vmem>>, vector<1x8x1xf32>
    %233 = vector.shape_cast %232 : vector<1x8x1xf32> to vector<8x1xf32>
    %234 = vector.broadcast %231 : vector<1x236xf32> to vector<8x236xf32>
    %235 = vector.broadcast %233 : vector<8x1xf32> to vector<8x236xf32>
    %236 = arith.mulf %234, %235 : vector<8x236xf32>
    %237 = arith.addf %230, %236 : vector<8x236xf32>
    %238 = vector.extract_strided_slice %158 {offsets = [11, 0], sizes = [1, 236], strides = [1, 1]} : vector<16x236xf32> to vector<1x236xf32>
    %c11_99 = arith.constant 11 : index
    %c0_100 = arith.constant 0 : index
    %c0_101 = arith.constant 0 : index
    %239 = vector.load %arg4[%c11_99, %c0_100, %c0_101] : memref<16x8x1xf32, #tpu.memory_space<vmem>>, vector<1x8x1xf32>
    %240 = vector.shape_cast %239 : vector<1x8x1xf32> to vector<8x1xf32>
    %241 = vector.broadcast %238 : vector<1x236xf32> to vector<8x236xf32>
    %242 = vector.broadcast %240 : vector<8x1xf32> to vector<8x236xf32>
    %243 = arith.mulf %241, %242 : vector<8x236xf32>
    %244 = arith.addf %237, %243 : vector<8x236xf32>
    %245 = vector.extract_strided_slice %158 {offsets = [12, 0], sizes = [1, 236], strides = [1, 1]} : vector<16x236xf32> to vector<1x236xf32>
    %c12_102 = arith.constant 12 : index
    %c0_103 = arith.constant 0 : index
    %c0_104 = arith.constant 0 : index
    %246 = vector.load %arg4[%c12_102, %c0_103, %c0_104] : memref<16x8x1xf32, #tpu.memory_space<vmem>>, vector<1x8x1xf32>
    %247 = vector.shape_cast %246 : vector<1x8x1xf32> to vector<8x1xf32>
    %248 = vector.broadcast %245 : vector<1x236xf32> to vector<8x236xf32>
    %249 = vector.broadcast %247 : vector<8x1xf32> to vector<8x236xf32>
    %250 = arith.mulf %248, %249 : vector<8x236xf32>
    %251 = arith.addf %244, %250 : vector<8x236xf32>
    %252 = vector.extract_strided_slice %158 {offsets = [13, 0], sizes = [1, 236], strides = [1, 1]} : vector<16x236xf32> to vector<1x236xf32>
    %c13_105 = arith.constant 13 : index
    %c0_106 = arith.constant 0 : index
    %c0_107 = arith.constant 0 : index
    %253 = vector.load %arg4[%c13_105, %c0_106, %c0_107] : memref<16x8x1xf32, #tpu.memory_space<vmem>>, vector<1x8x1xf32>
    %254 = vector.shape_cast %253 : vector<1x8x1xf32> to vector<8x1xf32>
    %255 = vector.broadcast %252 : vector<1x236xf32> to vector<8x236xf32>
    %256 = vector.broadcast %254 : vector<8x1xf32> to vector<8x236xf32>
    %257 = arith.mulf %255, %256 : vector<8x236xf32>
    %258 = arith.addf %251, %257 : vector<8x236xf32>
    %259 = vector.extract_strided_slice %158 {offsets = [14, 0], sizes = [1, 236], strides = [1, 1]} : vector<16x236xf32> to vector<1x236xf32>
    %c14_108 = arith.constant 14 : index
    %c0_109 = arith.constant 0 : index
    %c0_110 = arith.constant 0 : index
    %260 = vector.load %arg4[%c14_108, %c0_109, %c0_110] : memref<16x8x1xf32, #tpu.memory_space<vmem>>, vector<1x8x1xf32>
    %261 = vector.shape_cast %260 : vector<1x8x1xf32> to vector<8x1xf32>
    %262 = vector.broadcast %259 : vector<1x236xf32> to vector<8x236xf32>
    %263 = vector.broadcast %261 : vector<8x1xf32> to vector<8x236xf32>
    %264 = arith.mulf %262, %263 : vector<8x236xf32>
    %265 = arith.addf %258, %264 : vector<8x236xf32>
    %266 = vector.extract_strided_slice %158 {offsets = [15, 0], sizes = [1, 236], strides = [1, 1]} : vector<16x236xf32> to vector<1x236xf32>
    %c15_111 = arith.constant 15 : index
    %c0_112 = arith.constant 0 : index
    %c0_113 = arith.constant 0 : index
    %267 = vector.load %arg4[%c15_111, %c0_112, %c0_113] : memref<16x8x1xf32, #tpu.memory_space<vmem>>, vector<1x8x1xf32>
    %268 = vector.shape_cast %267 : vector<1x8x1xf32> to vector<8x1xf32>
    %269 = vector.broadcast %266 : vector<1x236xf32> to vector<8x236xf32>
    %270 = vector.broadcast %268 : vector<8x1xf32> to vector<8x236xf32>
    %271 = arith.mulf %269, %270 : vector<8x236xf32>
    %272 = arith.addf %265, %271 : vector<8x236xf32>
    %273 = vector.broadcast %4 : vector<1x236xf32> to vector<8x236xf32>
    %274 = arith.mulf %272, %273 : vector<8x236xf32>
    %c0_114 = arith.constant 0 : index
    %c26 = arith.constant 26 : index
    %275 = vector.load %arg10[%c0_114, %c26] : memref<8x288xf32, #tpu.memory_space<vmem>>, vector<8x236xf32>
    tpu.vector_store %arg10[%c0_114, %c26], %274 {strides = array<i32>} : memref<8x288xf32, #tpu.memory_space<vmem>>, vector<8x236xf32>,
    %c0_115 = arith.constant 0 : index
    %c0_116 = arith.constant 0 : index
    %276 = vector.load %arg10[%c0_115, %c0_116] : memref<8x288xf32, #tpu.memory_space<vmem>>, vector<8x240xf32>
    %277 = vector.extract_strided_slice %276 {offsets = [0, 0], sizes = [8, 236], strides = [1, 1]} : vector<8x240xf32> to vector<8x236xf32>
    %c0_117 = arith.constant 0 : index
    %c0_118 = arith.constant 0 : index
    %c0_119 = arith.constant 0 : index
    %278 = vector.load %arg6[%c0_117, %c0_118, %c0_119] : memref<25x8x1xf32, #tpu.memory_space<vmem>>, vector<1x8x1xf32>
    %279 = vector.shape_cast %278 : vector<1x8x1xf32> to vector<8x1xf32>
    %280 = vector.broadcast %279 : vector<8x1xf32> to vector<8x236xf32>
    %281 = arith.mulf %277, %280 : vector<8x236xf32>
    %282 = vector.extract_strided_slice %276 {offsets = [0, 1], sizes = [8, 236], strides = [1, 1]} : vector<8x240xf32> to vector<8x236xf32>
    %c1_120 = arith.constant 1 : index
    %c0_121 = arith.constant 0 : index
    %c0_122 = arith.constant 0 : index
    %283 = vector.load %arg6[%c1_120, %c0_121, %c0_122] : memref<25x8x1xf32, #tpu.memory_space<vmem>>, vector<1x8x1xf32>
    %284 = vector.shape_cast %283 : vector<1x8x1xf32> to vector<8x1xf32>
    %285 = vector.broadcast %284 : vector<8x1xf32> to vector<8x236xf32>
    %286 = arith.mulf %282, %285 : vector<8x236xf32>
    %287 = arith.addf %281, %286 : vector<8x236xf32>
    %288 = vector.extract_strided_slice %276 {offsets = [0, 2], sizes = [8, 236], strides = [1, 1]} : vector<8x240xf32> to vector<8x236xf32>
    %c2_123 = arith.constant 2 : index
    %c0_124 = arith.constant 0 : index
    %c0_125 = arith.constant 0 : index
    %289 = vector.load %arg6[%c2_123, %c0_124, %c0_125] : memref<25x8x1xf32, #tpu.memory_space<vmem>>, vector<1x8x1xf32>
    %290 = vector.shape_cast %289 : vector<1x8x1xf32> to vector<8x1xf32>
    %291 = vector.broadcast %290 : vector<8x1xf32> to vector<8x236xf32>
    %292 = arith.mulf %288, %291 : vector<8x236xf32>
    %293 = arith.addf %287, %292 : vector<8x236xf32>
    %294 = vector.extract_strided_slice %276 {offsets = [0, 3], sizes = [8, 236], strides = [1, 1]} : vector<8x240xf32> to vector<8x236xf32>
    %c3_126 = arith.constant 3 : index
    %c0_127 = arith.constant 0 : index
    %c0_128 = arith.constant 0 : index
    %295 = vector.load %arg6[%c3_126, %c0_127, %c0_128] : memref<25x8x1xf32, #tpu.memory_space<vmem>>, vector<1x8x1xf32>
    %296 = vector.shape_cast %295 : vector<1x8x1xf32> to vector<8x1xf32>
    %297 = vector.broadcast %296 : vector<8x1xf32> to vector<8x236xf32>
    %298 = arith.mulf %294, %297 : vector<8x236xf32>
    %299 = arith.addf %293, %298 : vector<8x236xf32>
    %300 = vector.extract_strided_slice %276 {offsets = [0, 4], sizes = [8, 236], strides = [1, 1]} : vector<8x240xf32> to vector<8x236xf32>
    %c4_129 = arith.constant 4 : index
    %c0_130 = arith.constant 0 : index
    %c0_131 = arith.constant 0 : index
    %301 = vector.load %arg6[%c4_129, %c0_130, %c0_131] : memref<25x8x1xf32, #tpu.memory_space<vmem>>, vector<1x8x1xf32>
    %302 = vector.shape_cast %301 : vector<1x8x1xf32> to vector<8x1xf32>
    %303 = vector.broadcast %302 : vector<8x1xf32> to vector<8x236xf32>
    %304 = arith.mulf %300, %303 : vector<8x236xf32>
    %305 = arith.addf %299, %304 : vector<8x236xf32>
    %c0_132 = arith.constant 0 : index
    %c12_133 = arith.constant 12 : index
    %306 = vector.load %arg10[%c0_132, %c12_133] : memref<8x288xf32, #tpu.memory_space<vmem>>, vector<8x240xf32>
    %307 = vector.extract_strided_slice %306 {offsets = [0, 0], sizes = [8, 236], strides = [1, 1]} : vector<8x240xf32> to vector<8x236xf32>
    %c5_134 = arith.constant 5 : index
    %c0_135 = arith.constant 0 : index
    %c0_136 = arith.constant 0 : index
    %308 = vector.load %arg6[%c5_134, %c0_135, %c0_136] : memref<25x8x1xf32, #tpu.memory_space<vmem>>, vector<1x8x1xf32>
    %309 = vector.shape_cast %308 : vector<1x8x1xf32> to vector<8x1xf32>
    %310 = vector.broadcast %309 : vector<8x1xf32> to vector<8x236xf32>
    %311 = arith.mulf %307, %310 : vector<8x236xf32>
    %312 = arith.addf %305, %311 : vector<8x236xf32>
    %313 = vector.extract_strided_slice %306 {offsets = [0, 1], sizes = [8, 236], strides = [1, 1]} : vector<8x240xf32> to vector<8x236xf32>
    %c6_137 = arith.constant 6 : index
    %c0_138 = arith.constant 0 : index
    %c0_139 = arith.constant 0 : index
    %314 = vector.load %arg6[%c6_137, %c0_138, %c0_139] : memref<25x8x1xf32, #tpu.memory_space<vmem>>, vector<1x8x1xf32>
    %315 = vector.shape_cast %314 : vector<1x8x1xf32> to vector<8x1xf32>
    %316 = vector.broadcast %315 : vector<8x1xf32> to vector<8x236xf32>
    %317 = arith.mulf %313, %316 : vector<8x236xf32>
    %318 = arith.addf %312, %317 : vector<8x236xf32>
    %319 = vector.extract_strided_slice %306 {offsets = [0, 2], sizes = [8, 236], strides = [1, 1]} : vector<8x240xf32> to vector<8x236xf32>
    %c7_140 = arith.constant 7 : index
    %c0_141 = arith.constant 0 : index
    %c0_142 = arith.constant 0 : index
    %320 = vector.load %arg6[%c7_140, %c0_141, %c0_142] : memref<25x8x1xf32, #tpu.memory_space<vmem>>, vector<1x8x1xf32>
    %321 = vector.shape_cast %320 : vector<1x8x1xf32> to vector<8x1xf32>
    %322 = vector.broadcast %321 : vector<8x1xf32> to vector<8x236xf32>
    %323 = arith.mulf %319, %322 : vector<8x236xf32>
    %324 = arith.addf %318, %323 : vector<8x236xf32>
    %325 = vector.extract_strided_slice %306 {offsets = [0, 3], sizes = [8, 236], strides = [1, 1]} : vector<8x240xf32> to vector<8x236xf32>
    %c8_143 = arith.constant 8 : index
    %c0_144 = arith.constant 0 : index
    %c0_145 = arith.constant 0 : index
    %326 = vector.load %arg6[%c8_143, %c0_144, %c0_145] : memref<25x8x1xf32, #tpu.memory_space<vmem>>, vector<1x8x1xf32>
    %327 = vector.shape_cast %326 : vector<1x8x1xf32> to vector<8x1xf32>
    %328 = vector.broadcast %327 : vector<8x1xf32> to vector<8x236xf32>
    %329 = arith.mulf %325, %328 : vector<8x236xf32>
    %330 = arith.addf %324, %329 : vector<8x236xf32>
    %331 = vector.extract_strided_slice %306 {offsets = [0, 4], sizes = [8, 236], strides = [1, 1]} : vector<8x240xf32> to vector<8x236xf32>
    %c9_146 = arith.constant 9 : index
    %c0_147 = arith.constant 0 : index
    %c0_148 = arith.constant 0 : index
    %332 = vector.load %arg6[%c9_146, %c0_147, %c0_148] : memref<25x8x1xf32, #tpu.memory_space<vmem>>, vector<1x8x1xf32>
    %333 = vector.shape_cast %332 : vector<1x8x1xf32> to vector<8x1xf32>
    %334 = vector.broadcast %333 : vector<8x1xf32> to vector<8x236xf32>
    %335 = arith.mulf %331, %334 : vector<8x236xf32>
    %336 = arith.addf %330, %335 : vector<8x236xf32>
    %c0_149 = arith.constant 0 : index
    %c24_150 = arith.constant 24 : index
    %337 = vector.load %arg10[%c0_149, %c24_150] : memref<8x288xf32, #tpu.memory_space<vmem>>, vector<8x240xf32>
    %338 = vector.extract_strided_slice %337 {offsets = [0, 0], sizes = [8, 236], strides = [1, 1]} : vector<8x240xf32> to vector<8x236xf32>
    %c10_151 = arith.constant 10 : index
    %c0_152 = arith.constant 0 : index
    %c0_153 = arith.constant 0 : index
    %339 = vector.load %arg6[%c10_151, %c0_152, %c0_153] : memref<25x8x1xf32, #tpu.memory_space<vmem>>, vector<1x8x1xf32>
    %340 = vector.shape_cast %339 : vector<1x8x1xf32> to vector<8x1xf32>
    %341 = vector.broadcast %340 : vector<8x1xf32> to vector<8x236xf32>
    %342 = arith.mulf %338, %341 : vector<8x236xf32>
    %343 = arith.addf %336, %342 : vector<8x236xf32>
    %344 = vector.extract_strided_slice %337 {offsets = [0, 1], sizes = [8, 236], strides = [1, 1]} : vector<8x240xf32> to vector<8x236xf32>
    %c11_154 = arith.constant 11 : index
    %c0_155 = arith.constant 0 : index
    %c0_156 = arith.constant 0 : index
    %345 = vector.load %arg6[%c11_154, %c0_155, %c0_156] : memref<25x8x1xf32, #tpu.memory_space<vmem>>, vector<1x8x1xf32>
    %346 = vector.shape_cast %345 : vector<1x8x1xf32> to vector<8x1xf32>
    %347 = vector.broadcast %346 : vector<8x1xf32> to vector<8x236xf32>
    %348 = arith.mulf %344, %347 : vector<8x236xf32>
    %349 = arith.addf %343, %348 : vector<8x236xf32>
    %350 = vector.extract_strided_slice %337 {offsets = [0, 2], sizes = [8, 236], strides = [1, 1]} : vector<8x240xf32> to vector<8x236xf32>
    %c12_157 = arith.constant 12 : index
    %c0_158 = arith.constant 0 : index
    %c0_159 = arith.constant 0 : index
    %351 = vector.load %arg6[%c12_157, %c0_158, %c0_159] : memref<25x8x1xf32, #tpu.memory_space<vmem>>, vector<1x8x1xf32>
    %352 = vector.shape_cast %351 : vector<1x8x1xf32> to vector<8x1xf32>
    %353 = vector.broadcast %352 : vector<8x1xf32> to vector<8x236xf32>
    %354 = arith.mulf %350, %353 : vector<8x236xf32>
    %355 = arith.addf %349, %354 : vector<8x236xf32>
    %356 = vector.extract_strided_slice %337 {offsets = [0, 3], sizes = [8, 236], strides = [1, 1]} : vector<8x240xf32> to vector<8x236xf32>
    %c13_160 = arith.constant 13 : index
    %c0_161 = arith.constant 0 : index
    %c0_162 = arith.constant 0 : index
    %357 = vector.load %arg6[%c13_160, %c0_161, %c0_162] : memref<25x8x1xf32, #tpu.memory_space<vmem>>, vector<1x8x1xf32>
    %358 = vector.shape_cast %357 : vector<1x8x1xf32> to vector<8x1xf32>
    %359 = vector.broadcast %358 : vector<8x1xf32> to vector<8x236xf32>
    %360 = arith.mulf %356, %359 : vector<8x236xf32>
    %361 = arith.addf %355, %360 : vector<8x236xf32>
    %362 = vector.extract_strided_slice %337 {offsets = [0, 4], sizes = [8, 236], strides = [1, 1]} : vector<8x240xf32> to vector<8x236xf32>
    %c14_163 = arith.constant 14 : index
    %c0_164 = arith.constant 0 : index
    %c0_165 = arith.constant 0 : index
    %363 = vector.load %arg6[%c14_163, %c0_164, %c0_165] : memref<25x8x1xf32, #tpu.memory_space<vmem>>, vector<1x8x1xf32>
    %364 = vector.shape_cast %363 : vector<1x8x1xf32> to vector<8x1xf32>
    %365 = vector.broadcast %364 : vector<8x1xf32> to vector<8x236xf32>
    %366 = arith.mulf %362, %365 : vector<8x236xf32>
    %367 = arith.addf %361, %366 : vector<8x236xf32>
    %c0_166 = arith.constant 0 : index
    %c36_167 = arith.constant 36 : index
    %368 = vector.load %arg10[%c0_166, %c36_167] : memref<8x288xf32, #tpu.memory_space<vmem>>, vector<8x240xf32>
    %369 = vector.extract_strided_slice %368 {offsets = [0, 0], sizes = [8, 236], strides = [1, 1]} : vector<8x240xf32> to vector<8x236xf32>
    %c15_168 = arith.constant 15 : index
    %c0_169 = arith.constant 0 : index
    %c0_170 = arith.constant 0 : index
    %370 = vector.load %arg6[%c15_168, %c0_169, %c0_170] : memref<25x8x1xf32, #tpu.memory_space<vmem>>, vector<1x8x1xf32>
    %371 = vector.shape_cast %370 : vector<1x8x1xf32> to vector<8x1xf32>
    %372 = vector.broadcast %371 : vector<8x1xf32> to vector<8x236xf32>
    %373 = arith.mulf %369, %372 : vector<8x236xf32>
    %374 = arith.addf %367, %373 : vector<8x236xf32>
    %375 = vector.extract_strided_slice %368 {offsets = [0, 1], sizes = [8, 236], strides = [1, 1]} : vector<8x240xf32> to vector<8x236xf32>
    %c16_171 = arith.constant 16 : index
    %c0_172 = arith.constant 0 : index
    %c0_173 = arith.constant 0 : index
    %376 = vector.load %arg6[%c16_171, %c0_172, %c0_173] : memref<25x8x1xf32, #tpu.memory_space<vmem>>, vector<1x8x1xf32>
    %377 = vector.shape_cast %376 : vector<1x8x1xf32> to vector<8x1xf32>
    %378 = vector.broadcast %377 : vector<8x1xf32> to vector<8x236xf32>
    %379 = arith.mulf %375, %378 : vector<8x236xf32>
    %380 = arith.addf %374, %379 : vector<8x236xf32>
    %381 = vector.extract_strided_slice %368 {offsets = [0, 2], sizes = [8, 236], strides = [1, 1]} : vector<8x240xf32> to vector<8x236xf32>
    %c17_174 = arith.constant 17 : index
    %c0_175 = arith.constant 0 : index
    %c0_176 = arith.constant 0 : index
    %382 = vector.load %arg6[%c17_174, %c0_175, %c0_176] : memref<25x8x1xf32, #tpu.memory_space<vmem>>, vector<1x8x1xf32>
    %383 = vector.shape_cast %382 : vector<1x8x1xf32> to vector<8x1xf32>
    %384 = vector.broadcast %383 : vector<8x1xf32> to vector<8x236xf32>
    %385 = arith.mulf %381, %384 : vector<8x236xf32>
    %386 = arith.addf %380, %385 : vector<8x236xf32>
    %387 = vector.extract_strided_slice %368 {offsets = [0, 3], sizes = [8, 236], strides = [1, 1]} : vector<8x240xf32> to vector<8x236xf32>
    %c18_177 = arith.constant 18 : index
    %c0_178 = arith.constant 0 : index
    %c0_179 = arith.constant 0 : index
    %388 = vector.load %arg6[%c18_177, %c0_178, %c0_179] : memref<25x8x1xf32, #tpu.memory_space<vmem>>, vector<1x8x1xf32>
    %389 = vector.shape_cast %388 : vector<1x8x1xf32> to vector<8x1xf32>
    %390 = vector.broadcast %389 : vector<8x1xf32> to vector<8x236xf32>
    %391 = arith.mulf %387, %390 : vector<8x236xf32>
    %392 = arith.addf %386, %391 : vector<8x236xf32>
    %393 = vector.extract_strided_slice %368 {offsets = [0, 4], sizes = [8, 236], strides = [1, 1]} : vector<8x240xf32> to vector<8x236xf32>
    %c19_180 = arith.constant 19 : index
    %c0_181 = arith.constant 0 : index
    %c0_182 = arith.constant 0 : index
    %394 = vector.load %arg6[%c19_180, %c0_181, %c0_182] : memref<25x8x1xf32, #tpu.memory_space<vmem>>, vector<1x8x1xf32>
    %395 = vector.shape_cast %394 : vector<1x8x1xf32> to vector<8x1xf32>
    %396 = vector.broadcast %395 : vector<8x1xf32> to vector<8x236xf32>
    %397 = arith.mulf %393, %396 : vector<8x236xf32>
    %398 = arith.addf %392, %397 : vector<8x236xf32>
    %c0_183 = arith.constant 0 : index
    %c48_184 = arith.constant 48 : index
    %399 = vector.load %arg10[%c0_183, %c48_184] : memref<8x288xf32, #tpu.memory_space<vmem>>, vector<8x240xf32>
    %400 = vector.extract_strided_slice %399 {offsets = [0, 0], sizes = [8, 236], strides = [1, 1]} : vector<8x240xf32> to vector<8x236xf32>
    %c20_185 = arith.constant 20 : index
    %c0_186 = arith.constant 0 : index
    %c0_187 = arith.constant 0 : index
    %401 = vector.load %arg6[%c20_185, %c0_186, %c0_187] : memref<25x8x1xf32, #tpu.memory_space<vmem>>, vector<1x8x1xf32>
    %402 = vector.shape_cast %401 : vector<1x8x1xf32> to vector<8x1xf32>
    %403 = vector.broadcast %402 : vector<8x1xf32> to vector<8x236xf32>
    %404 = arith.mulf %400, %403 : vector<8x236xf32>
    %405 = arith.addf %398, %404 : vector<8x236xf32>
    %406 = vector.extract_strided_slice %399 {offsets = [0, 1], sizes = [8, 236], strides = [1, 1]} : vector<8x240xf32> to vector<8x236xf32>
    %c21_188 = arith.constant 21 : index
    %c0_189 = arith.constant 0 : index
    %c0_190 = arith.constant 0 : index
    %407 = vector.load %arg6[%c21_188, %c0_189, %c0_190] : memref<25x8x1xf32, #tpu.memory_space<vmem>>, vector<1x8x1xf32>
    %408 = vector.shape_cast %407 : vector<1x8x1xf32> to vector<8x1xf32>
    %409 = vector.broadcast %408 : vector<8x1xf32> to vector<8x236xf32>
    %410 = arith.mulf %406, %409 : vector<8x236xf32>
    %411 = arith.addf %405, %410 : vector<8x236xf32>
    %412 = vector.extract_strided_slice %399 {offsets = [0, 2], sizes = [8, 236], strides = [1, 1]} : vector<8x240xf32> to vector<8x236xf32>
    %c22_191 = arith.constant 22 : index
    %c0_192 = arith.constant 0 : index
    %c0_193 = arith.constant 0 : index
    %413 = vector.load %arg6[%c22_191, %c0_192, %c0_193] : memref<25x8x1xf32, #tpu.memory_space<vmem>>, vector<1x8x1xf32>
    %414 = vector.shape_cast %413 : vector<1x8x1xf32> to vector<8x1xf32>
    %415 = vector.broadcast %414 : vector<8x1xf32> to vector<8x236xf32>
    %416 = arith.mulf %412, %415 : vector<8x236xf32>
    %417 = arith.addf %411, %416 : vector<8x236xf32>
    %418 = vector.extract_strided_slice %399 {offsets = [0, 3], sizes = [8, 236], strides = [1, 1]} : vector<8x240xf32> to vector<8x236xf32>
    %c23_194 = arith.constant 23 : index
    %c0_195 = arith.constant 0 : index
    %c0_196 = arith.constant 0 : index
    %419 = vector.load %arg6[%c23_194, %c0_195, %c0_196] : memref<25x8x1xf32, #tpu.memory_space<vmem>>, vector<1x8x1xf32>
    %420 = vector.shape_cast %419 : vector<1x8x1xf32> to vector<8x1xf32>
    %421 = vector.broadcast %420 : vector<8x1xf32> to vector<8x236xf32>
    %422 = arith.mulf %418, %421 : vector<8x236xf32>
    %423 = arith.addf %417, %422 : vector<8x236xf32>
    %424 = vector.extract_strided_slice %399 {offsets = [0, 4], sizes = [8, 236], strides = [1, 1]} : vector<8x240xf32> to vector<8x236xf32>
    %c24_197 = arith.constant 24 : index
    %c0_198 = arith.constant 0 : index
    %c0_199 = arith.constant 0 : index
    %425 = vector.load %arg6[%c24_197, %c0_198, %c0_199] : memref<25x8x1xf32, #tpu.memory_space<vmem>>, vector<1x8x1xf32>
    %426 = vector.shape_cast %425 : vector<1x8x1xf32> to vector<8x1xf32>
    %427 = vector.broadcast %426 : vector<8x1xf32> to vector<8x236xf32>
    %428 = arith.mulf %424, %427 : vector<8x236xf32>
    %429 = arith.addf %423, %428 : vector<8x236xf32>
    %430 = vector.extract_strided_slice %429 {offsets = [0, 0], sizes = [1, 236], strides = [1, 1]} : vector<8x236xf32> to vector<1x236xf32>
    %c0_200 = arith.constant 0 : index
    %c0_201 = arith.constant 0 : index
    %c0_202 = arith.constant 0 : index
    %431 = vector.load %arg7[%c0_200, %c0_201, %c0_202] : memref<8x4x1xf32, #tpu.memory_space<vmem>>, vector<1x4x1xf32>
    %432 = vector.shape_cast %431 : vector<1x4x1xf32> to vector<4x1xf32>
    %433 = vector.broadcast %430 : vector<1x236xf32> to vector<4x236xf32>
    %434 = vector.broadcast %432 : vector<4x1xf32> to vector<4x236xf32>
    %435 = arith.mulf %433, %434 : vector<4x236xf32>
    %c0_203 = arith.constant 0 : index
    %c0_204 = arith.constant 0 : index
    %436 = vector.load %arg8[%c0_203, %c0_204] : memref<4x1xf32, #tpu.memory_space<vmem>>, vector<4x1xf32>
    %437 = vector.broadcast %436 : vector<4x1xf32> to vector<4x236xf32>
    %438 = arith.addf %435, %437 : vector<4x236xf32>
    %439 = vector.extract_strided_slice %429 {offsets = [1, 0], sizes = [1, 236], strides = [1, 1]} : vector<8x236xf32> to vector<1x236xf32>
    %c1_205 = arith.constant 1 : index
    %c0_206 = arith.constant 0 : index
    %c0_207 = arith.constant 0 : index
    %440 = vector.load %arg7[%c1_205, %c0_206, %c0_207] : memref<8x4x1xf32, #tpu.memory_space<vmem>>, vector<1x4x1xf32>
    %441 = vector.shape_cast %440 : vector<1x4x1xf32> to vector<4x1xf32>
    %442 = vector.broadcast %439 : vector<1x236xf32> to vector<4x236xf32>
    %443 = vector.broadcast %441 : vector<4x1xf32> to vector<4x236xf32>
    %444 = arith.mulf %442, %443 : vector<4x236xf32>
    %445 = arith.addf %438, %444 : vector<4x236xf32>
    %446 = vector.extract_strided_slice %429 {offsets = [2, 0], sizes = [1, 236], strides = [1, 1]} : vector<8x236xf32> to vector<1x236xf32>
    %c2_208 = arith.constant 2 : index
    %c0_209 = arith.constant 0 : index
    %c0_210 = arith.constant 0 : index
    %447 = vector.load %arg7[%c2_208, %c0_209, %c0_210] : memref<8x4x1xf32, #tpu.memory_space<vmem>>, vector<1x4x1xf32>
    %448 = vector.shape_cast %447 : vector<1x4x1xf32> to vector<4x1xf32>
    %449 = vector.broadcast %446 : vector<1x236xf32> to vector<4x236xf32>
    %450 = vector.broadcast %448 : vector<4x1xf32> to vector<4x236xf32>
    %451 = arith.mulf %449, %450 : vector<4x236xf32>
    %452 = arith.addf %445, %451 : vector<4x236xf32>
    %453 = vector.extract_strided_slice %429 {offsets = [3, 0], sizes = [1, 236], strides = [1, 1]} : vector<8x236xf32> to vector<1x236xf32>
    %c3_211 = arith.constant 3 : index
    %c0_212 = arith.constant 0 : index
    %c0_213 = arith.constant 0 : index
    %454 = vector.load %arg7[%c3_211, %c0_212, %c0_213] : memref<8x4x1xf32, #tpu.memory_space<vmem>>, vector<1x4x1xf32>
    %455 = vector.shape_cast %454 : vector<1x4x1xf32> to vector<4x1xf32>
    %456 = vector.broadcast %453 : vector<1x236xf32> to vector<4x236xf32>
    %457 = vector.broadcast %455 : vector<4x1xf32> to vector<4x236xf32>
    %458 = arith.mulf %456, %457 : vector<4x236xf32>
    %459 = arith.addf %452, %458 : vector<4x236xf32>
    %460 = vector.extract_strided_slice %429 {offsets = [4, 0], sizes = [1, 236], strides = [1, 1]} : vector<8x236xf32> to vector<1x236xf32>
    %c4_214 = arith.constant 4 : index
    %c0_215 = arith.constant 0 : index
    %c0_216 = arith.constant 0 : index
    %461 = vector.load %arg7[%c4_214, %c0_215, %c0_216] : memref<8x4x1xf32, #tpu.memory_space<vmem>>, vector<1x4x1xf32>
    %462 = vector.shape_cast %461 : vector<1x4x1xf32> to vector<4x1xf32>
    %463 = vector.broadcast %460 : vector<1x236xf32> to vector<4x236xf32>
    %464 = vector.broadcast %462 : vector<4x1xf32> to vector<4x236xf32>
    %465 = arith.mulf %463, %464 : vector<4x236xf32>
    %466 = arith.addf %459, %465 : vector<4x236xf32>
    %467 = vector.extract_strided_slice %429 {offsets = [5, 0], sizes = [1, 236], strides = [1, 1]} : vector<8x236xf32> to vector<1x236xf32>
    %c5_217 = arith.constant 5 : index
    %c0_218 = arith.constant 0 : index
    %c0_219 = arith.constant 0 : index
    %468 = vector.load %arg7[%c5_217, %c0_218, %c0_219] : memref<8x4x1xf32, #tpu.memory_space<vmem>>, vector<1x4x1xf32>
    %469 = vector.shape_cast %468 : vector<1x4x1xf32> to vector<4x1xf32>
    %470 = vector.broadcast %467 : vector<1x236xf32> to vector<4x236xf32>
    %471 = vector.broadcast %469 : vector<4x1xf32> to vector<4x236xf32>
    %472 = arith.mulf %470, %471 : vector<4x236xf32>
    %473 = arith.addf %466, %472 : vector<4x236xf32>
    %474 = vector.extract_strided_slice %429 {offsets = [6, 0], sizes = [1, 236], strides = [1, 1]} : vector<8x236xf32> to vector<1x236xf32>
    %c6_220 = arith.constant 6 : index
    %c0_221 = arith.constant 0 : index
    %c0_222 = arith.constant 0 : index
    %475 = vector.load %arg7[%c6_220, %c0_221, %c0_222] : memref<8x4x1xf32, #tpu.memory_space<vmem>>, vector<1x4x1xf32>
    %476 = vector.shape_cast %475 : vector<1x4x1xf32> to vector<4x1xf32>
    %477 = vector.broadcast %474 : vector<1x236xf32> to vector<4x236xf32>
    %478 = vector.broadcast %476 : vector<4x1xf32> to vector<4x236xf32>
    %479 = arith.mulf %477, %478 : vector<4x236xf32>
    %480 = arith.addf %473, %479 : vector<4x236xf32>
    %481 = vector.extract_strided_slice %429 {offsets = [7, 0], sizes = [1, 236], strides = [1, 1]} : vector<8x236xf32> to vector<1x236xf32>
    %c7_223 = arith.constant 7 : index
    %c0_224 = arith.constant 0 : index
    %c0_225 = arith.constant 0 : index
    %482 = vector.load %arg7[%c7_223, %c0_224, %c0_225] : memref<8x4x1xf32, #tpu.memory_space<vmem>>, vector<1x4x1xf32>
    %483 = vector.shape_cast %482 : vector<1x4x1xf32> to vector<4x1xf32>
    %484 = vector.broadcast %481 : vector<1x236xf32> to vector<4x236xf32>
    %485 = vector.broadcast %483 : vector<4x1xf32> to vector<4x236xf32>
    %486 = arith.mulf %484, %485 : vector<4x236xf32>
    %487 = arith.addf %480, %486 : vector<4x236xf32>
    %488 = vector.broadcast %4 : vector<1x236xf32> to vector<4x236xf32>
    %489 = arith.mulf %487, %488 : vector<4x236xf32>
    %c0_226 = arith.constant 0 : index
    %c0_227 = arith.constant 0 : index
    %490 = vector.load %arg9[%c0_226, %c0_227] : memref<4x236xf32, #tpu.memory_space<vmem>>, vector<4x236xf32>
    tpu.vector_store %arg9[%c0_226, %c0_227], %489 {strides = array<i32>} : memref<4x236xf32, #tpu.memory_space<vmem>>, vector<4x236xf32>,
    return
  }
  func.func @transform_0(%arg0: i32) -> (i32, i32) {
    %c0_i32 = arith.constant 0 : i32
    %c0_i32_0 = arith.constant 0 : i32
    %c0_i32_1 = arith.constant 0 : i32
    return %c0_i32, %c0_i32_0 : i32, i32
  }
  func.func @transform_1(%arg0: i32) -> (i32, i32) {
    %c0_i32 = arith.constant 0 : i32
    %c0_i32_0 = arith.constant 0 : i32
    %c0_i32_1 = arith.constant 0 : i32
    return %c0_i32, %c0_i32_0 : i32, i32
  }
  func.func @transform_2(%arg0: i32) -> (i32, i32, i32) {
    %c0_i32 = arith.constant 0 : i32
    %c0_i32_0 = arith.constant 0 : i32
    %c0_i32_1 = arith.constant 0 : i32
    %c0_i32_2 = arith.constant 0 : i32
    return %c0_i32, %c0_i32_0, %c0_i32_1 : i32, i32, i32
  }
  func.func @transform_3(%arg0: i32) -> (i32, i32, i32) {
    %c0_i32 = arith.constant 0 : i32
    %c0_i32_0 = arith.constant 0 : i32
    %c0_i32_1 = arith.constant 0 : i32
    %c0_i32_2 = arith.constant 0 : i32
    return %c0_i32, %c0_i32_0, %c0_i32_1 : i32, i32, i32
  }
  func.func @transform_4(%arg0: i32) -> (i32, i32) {
    %c0_i32 = arith.constant 0 : i32
    %c0_i32_0 = arith.constant 0 : i32
    %c0_i32_1 = arith.constant 0 : i32
    return %c0_i32, %c0_i32_0 : i32, i32
  }
  func.func @transform_5(%arg0: i32) -> (i32, i32, i32) {
    %c0_i32 = arith.constant 0 : i32
    %c0_i32_0 = arith.constant 0 : i32
    %c0_i32_1 = arith.constant 0 : i32
    %c0_i32_2 = arith.constant 0 : i32
    return %c0_i32, %c0_i32_0, %c0_i32_1 : i32, i32, i32
  }
  func.func @transform_6(%arg0: i32) -> (i32, i32, i32) {
    %c0_i32 = arith.constant 0 : i32
    %c0_i32_0 = arith.constant 0 : i32
    %c0_i32_1 = arith.constant 0 : i32
    %c0_i32_2 = arith.constant 0 : i32
    return %c0_i32, %c0_i32_0, %c0_i32_1 : i32, i32, i32
  }
  func.func @transform_7(%arg0: i32) -> (i32, i32) {
    %c0_i32 = arith.constant 0 : i32
    %c0_i32_0 = arith.constant 0 : i32
    %c0_i32_1 = arith.constant 0 : i32
    return %c0_i32, %c0_i32_0 : i32, i32
  }
  func.func @transform_8(%arg0: i32) -> (i32, i32) {
    %c0_i32 = arith.constant 0 : i32
    %c0_i32_0 = arith.constant 0 : i32
    %c0_i32_1 = arith.constant 0 : i32
    return %c0_i32, %c0_i32_0 : i32, i32
  }
}

</mosaic_0001>

<bundles_post_ra>
// kernel: tpu_custom_call.1
= control target key start
LH: loop header
LB: loop body
LE: loop exit
PB: predicated region body
PF: predicated region fallthrough
CT: control target
= control target key end

     0   :  { %v2407_v2 = vmov 0   ;;  %s3874_s0 = inlined_call_operand.vmem [shape: f32[16,288], index: 0, kind: input, shape index: {}]   ;;  %s3875_s1 = inlined_call_operand.vmem [shape: f32[1,236], index: 1, kind: input, shape index: {}]   ;;  %s3876_s2 = inlined_call_operand.vmem [shape: f32[25,16,1], index: 2, kind: input, shape index: {}]   ;;  %s3877_s3 = inlined_call_operand.vmem [shape: f32[16,8,1], index: 3, kind: input, shape index: {}]   ;;  %s3878_s4 = inlined_call_operand.vmem [shape: f32[8,1], index: 4, kind: input, shape index: {}]   ;;  %s3879_s5 = inlined_call_operand.vmem [shape: f32[25,8,1], index: 5, kind: input, shape index: {}]   ;;  %s3880_s6 = inlined_call_operand.vmem [shape: f32[8,4,1], index: 6, kind: input, shape index: {}]   ;;  %s3881_s7 = inlined_call_operand.vmem [shape: f32[4,1], index: 7, kind: input, shape index: {}]   ;;  %s3882_s8 = inlined_call_operand.hbm [shape: f32[4,236], index: 8, kind: output, shape index: {}]  }
   0x1   :  { %v2257_v0 = vld [vmem:[%s3876_s2 + $0x10] sm:$0xff]  ;;  %v39_v1 = vld [vmem:[%s3876_s2] sm:$0xff]  ;;  %2380 = vset.pattern.permute.xlu1 %v2407_v2  ;;  %2379 = vset.pattern.permute.xlu0 %v2407_v2  ;;  %v2258_v3 = vld [vmem:[%s3876_s2 + $0x18] sm:$0xff] }
   0x2   :  { %60 = vperm.xlu1 %2380, %v2257_v0   ;;  %43 = vperm.xlu0 %2379, %v39_v1   ;;  %v40_v4 = vld [vmem:[%s3876_s2 + $0x8] sm:$0xff]  ;;  %v2259_v6 = vld [vmem:[%s3876_s2 + $0x20] sm:$0xff] }
   0x3   :  { %v2260_v5 = vld [vmem:[%s3876_s2 + $0x28] sm:$0xff] }
   0x6   :  { %65 = vperm.xlu1 %2380, %v2258_v3   ;;  %48 = vperm.xlu0 %2379, %v40_v4  }
   0x7   :  { %13 = vsyncpa [#allocation4], 0  ;;  %v2262_v7 = vld [vmem:[%s3876_s2 + $0x38] sm:$0xff]  ;;  %v2261_v8 = vld [vmem:[%s3876_s2 + $0x30] sm:$0xff]  ;;  %s2408_s17 = smov 127   ;;  %s2409_s18 = smov 126  }
   0x8   :  { %v2264_v9 = vld [vmem:[%s3876_s2 + $0x48] sm:$0xff]  ;;  %v2263_v10 = vld [vmem:[%s3876_s2 + $0x40] sm:$0xff]  ;;  %v2266_v11 = vld [vmem:[%s3876_s2 + $0x58] sm:$0xff]  ;;  %s2410_s19 = smov 125   ;;  %s2411_s20 = smov 124   ;;  %vm84_vm0 = vcmask 1039360  }
   0x9   :  { %v2265_v12 = vld [vmem:[%s3876_s2 + $0x50] sm:$0xff]  ;;  %v2268_v13 = vld [vmem:[%s3876_s2 + $0x68] sm:$0xff]  ;;  %v2267_v14 = vld [vmem:[%s3876_s2 + $0x60] sm:$0xff]  ;;  %s2412_s21 = smov 116   ;;  %s2413_s22 = smov 115   ;;  %vm124_vm1 = vcmask 1031168  }
   0xa   :  { %105 = vperm.xlu1 %2380, %v2260_v5   ;;  %100 = vperm.xlu0 %2379, %v2259_v6   ;;  %v2270_v15 = vld [vmem:[%s3876_s2 + $0x78] sm:$0xff]  ;;  %v2269_v16 = vld [vmem:[%s3876_s2 + $0x70] sm:$0xff]  ;;  %v2272_v17 = vld [vmem:[%s3876_s2 + $0x88] sm:$0xff]  ;;  %s2414_s23 = smov 114   ;;  %s2415_s24 = smov 113   ;;  %vm164_vm2 = vcmask 1022976  }
   0xb   :  { %v2271_v18 = vld [vmem:[%s3876_s2 + $0x80] sm:$0xff]  ;;  %v2274_v19 = vld [vmem:[%s3876_s2 + $0x98] sm:$0xff]  ;;  %v2273_v20 = vld [vmem:[%s3876_s2 + $0x90] sm:$0xff]  ;;  %s2416_s25 = smov 112   ;;  %s2417_s28 = smov 104   ;;  %vm204_vm3 = vcmask 1014784  }
   0xc   :  { %v2276_v21 = vld [vmem:[%s3876_s2 + $0xa8] sm:$0xff]  ;;  %v2275_v22 = vld [vmem:[%s3876_s2 + $0xa0] sm:$0xff]  ;;  %v2278_v23 = vld [vmem:[%s3876_s2 + $0xb8] sm:$0xff]  ;;  %s2418_s9 = smov 103   ;;  %s2419_s14 = smov 102   ;;  %vm3932_vm4 = vcmask 949248  }
   0xd   :  { %v2277_v24 = vld [vmem:[%s3876_s2 + $0xb0] sm:$0xff]  ;;  %v2555_v25 = vld [vmem:[%s3874_s0] sm:$0xff]  ;;  %v2560_v26 = vld [vmem:[%s3874_s0 + $0x8] sm:$0xff]  ;;  %s2420_s29 = smov 101   ;;  %s3924_s13 = smov 100   ;;  %vm284_vm5 = vcmask 941056  }
   0xe   :  { %145 = vperm.xlu1 %2380, %v2262_v7   ;;  %140 = vperm.xlu0 %2379, %v2261_v8   ;;  %v2569_v31 = vld [vmem:[%s3874_s0 + $0x18] sm:$0xff]  ;;  %v2574_v32 = vld [vmem:[%s3874_s0 + $0x20] sm:$0xff]  ;;  %s3920_s30 = smov 92   ;;  %s3912_s16 = smov 91   ;;  %vm3931_vm6 = vcmask 932864   ;;  %vm364_vm7 = vcmask 924672  }
   0xf   :  { %s3910_s12 = smov 90   ;;  %s3896_s11 = smov 89   ;;  %vm3927_vm8 = vcmask 916480   ;;  %vm458_vm9 = vcmask 850944   ;;  %vm3926_vm10 = vcmask 842752   ;;  %vm3928_vm11 = vcmask 834560  }
  0x10   :  { %s3900_s15 = smov 88   ;;  %s3922_s26 = smov 76   ;;  %vm3929_vm12 = vcmask 826368   ;;  %vm3930_vm13 = vcmask 818176   ;;  %vm3933_vm14 = vcmask 752640   ;;  %vm758_vm15 = vcmask 744448  }
  0x12   :  { %185 = vperm.xlu1 %2380, %v2264_v9   ;;  %180 = vperm.xlu0 %2379, %v2263_v10  }
  0x16   :  { %225 = vperm.xlu1 %2380, %v2266_v11   ;;  %220 = vperm.xlu0 %2379, %v2265_v12  }
  0x1a   :  { %265 = vperm.xlu1 %2380, %v2268_v13   ;;  %260 = vperm.xlu0 %2379, %v2267_v14  }
  0x1e   :  { %305 = vperm.xlu1 %2380, %v2270_v15   ;;  %300 = vperm.xlu0 %2379, %v2269_v16  }
  0x22   :  { %345 = vperm.xlu1 %2380, %v2272_v17   ;;  %340 = vperm.xlu0 %2379, %v2271_v18  }
  0x26   :  { %385 = vperm.xlu1 %2380, %v2274_v19   ;;  %380 = vperm.xlu0 %2379, %v2273_v20  }
  0x2a   :  { %431 = vperm.xlu1 %2380, %v2276_v21   ;;  %426 = vperm.xlu0 %2379, %v2275_v22  }
  0x2e   :  { %481 = vperm.xlu1 %2380, %v2278_v23   ;;  %476 = vperm.xlu0 %2379, %v2277_v24  }
  0x7d   :  { %v61_v27 = vpop.permute.xlu1 %60  ;;  %v2562_v28 = vpop.permute.xlu0 %43 }
  0x7e   :  { %v68_v29 = vmul.f32 %v61_v27, %v2555_v25  ;;  %v69_v30 = vmul.f32 %v61_v27, %v2560_v26  ;;  %v2653_v27 = vld [vmem:[%s3874_s0 + $0x10] sm:$0xff] }
  0x80   :  { %78 = vrot.lane.b32.xlu1 %v69_v30, %s2408_s17  ;;  %76 = vrot.lane.b32.xlu0 %v68_v29, %s2408_s17 }
  0x81   :  { %v66_v33 = vpop.permute.xlu1 %65  ;;  %v2578_v34 = vpop.permute.xlu0 %48 }
  0x82   :  { %v70_v35 = vmul.f32 %v66_v33, %v2569_v31  ;;  %v71_v36 = vmul.f32 %v66_v33, %v2574_v32  ;;  %v2662_v33 = vld [vmem:[%s3874_s0 + $0x28] sm:$0xff] }
  0x84   :  { %82 = vrot.lane.b32.xlu1 %v71_v36, %s2408_s17  ;;  %80 = vrot.lane.b32.xlu0 %v70_v35, %s2408_s17 }
  0x85   :  { %v101_v37 = vpop.permute.xlu0 %100  ;;  %v106_v40 = vpop.permute.xlu1 %105 }
  0x86   :  { %v108_v38 = vmul.f32 %v101_v37, %v2555_v25  ;;  %v109_v39 = vmul.f32 %v101_v37, %v2560_v26  ;;  %v110_v41 = vmul.f32 %v106_v40, %v2569_v31  ;;  %v111_v42 = vmul.f32 %v106_v40, %v2574_v32 }
  0x88   :  { %118 = vrot.lane.b32.xlu1 %v109_v39, %s2409_s18  ;;  %116 = vrot.lane.b32.xlu0 %v108_v38, %s2409_s18 }
  0x89   :  { %v141_v43 = vpop.permute.xlu0 %140  ;;  %v146_v46 = vpop.permute.xlu1 %145 }
  0x8a   :  { %v148_v44 = vmul.f32 %v141_v43, %v2555_v25  ;;  %v149_v45 = vmul.f32 %v141_v43, %v2560_v26  ;;  %v150_v47 = vmul.f32 %v146_v46, %v2569_v31  ;;  %v151_v48 = vmul.f32 %v146_v46, %v2574_v32  ;;  %v2279_v46 = vld [vmem:[%s3876_s2 + $0xc0] sm:$0xff] }
  0x8c   :  { %122 = vrot.lane.b32.xlu1 %v111_v42, %s2409_s18  ;;  %120 = vrot.lane.b32.xlu0 %v110_v41, %s2409_s18 }
  0x8d   :  { %v181_v49 = vpop.permute.xlu0 %180  ;;  %v186_v52 = vpop.permute.xlu1 %185 }
  0x8e   :  { %v188_v50 = vmul.f32 %v181_v49, %v2555_v25  ;;  %v189_v51 = vmul.f32 %v181_v49, %v2560_v26  ;;  %v190_v53 = vmul.f32 %v186_v52, %v2569_v31  ;;  %v191_v54 = vmul.f32 %v186_v52, %v2574_v32 }
  0x90   :  { %158 = vrot.lane.b32.xlu1 %v149_v45, %s2410_s19  ;;  %156 = vrot.lane.b32.xlu0 %v148_v44, %s2410_s19  ;;  %v2280_v45 = vld [vmem:[%s3876_s2 + $0xc8] sm:$0xff] }
  0x91   :  { %v221_v55 = vpop.permute.xlu0 %220  ;;  %v226_v58 = vpop.permute.xlu1 %225 }
  0x92   :  { %v228_v56 = vmul.f32 %v221_v55, %v2555_v25  ;;  %v229_v57 = vmul.f32 %v221_v55, %v2560_v26  ;;  %v230_v59 = vmul.f32 %v226_v58, %v2569_v31  ;;  %v231_v60 = vmul.f32 %v226_v58, %v2574_v32 }
  0x94   :  { %162 = vrot.lane.b32.xlu1 %v151_v48, %s2410_s19  ;;  %160 = vrot.lane.b32.xlu0 %v150_v47, %s2410_s19 }
  0x95   :  { %v261_v61 = vpop.permute.xlu0 %260  ;;  %v266_v0 = vpop.permute.xlu1 %265 }
  0x96   :  { %v268_v62 = vmul.f32 %v261_v61, %v2555_v25  ;;  %v269_v63 = vmul.f32 %v261_v61, %v2560_v26  ;;  %v270_v1 = vmul.f32 %v266_v0, %v2569_v31  ;;  %v271_v2 = vmul.f32 %v266_v0, %v2574_v32 }
  0x98   :  { %198 = vrot.lane.b32.xlu1 %v189_v51, %s2411_s20  ;;  %196 = vrot.lane.b32.xlu0 %v188_v50, %s2411_s20 }
  0x99   :  { %v301_v3 = vpop.permute.xlu0 %300  ;;  %v306_v6 = vpop.permute.xlu1 %305 }
  0x9a   :  { %v308_v4 = vmul.f32 %v301_v3, %v2555_v25  ;;  %v309_v5 = vmul.f32 %v301_v3, %v2560_v26  ;;  %v310_v7 = vmul.f32 %v306_v6, %v2569_v31  ;;  %v311_v8 = vmul.f32 %v306_v6, %v2574_v32 }
  0x9c   :  { %202 = vrot.lane.b32.xlu1 %v191_v54, %s2411_s20  ;;  %200 = vrot.lane.b32.xlu0 %v190_v53, %s2411_s20 }
  0x9d   :  { %v341_v9 = vpop.permute.xlu0 %340  ;;  %v346_v12 = vpop.permute.xlu1 %345 }
  0x9e   :  { %v348_v10 = vmul.f32 %v341_v9, %v2555_v25  ;;  %v349_v11 = vmul.f32 %v341_v9, %v2560_v26  ;;  %v350_v13 = vmul.f32 %v346_v12, %v2569_v31  ;;  %v351_v14 = vmul.f32 %v346_v12, %v2574_v32 }
  0xa0   :  { %238 = vrot.lane.b32.xlu1 %v229_v57, %s2412_s21  ;;  %236 = vrot.lane.b32.xlu0 %v228_v56, %s2412_s21 }
  0xa1   :  { %v381_v15 = vpop.permute.xlu0 %380  ;;  %v386_v18 = vpop.permute.xlu1 %385 }
  0xa2   :  { %v388_v16 = vmul.f32 %v381_v15, %v2555_v25  ;;  %v389_v17 = vmul.f32 %v381_v15, %v2560_v26  ;;  %v390_v19 = vmul.f32 %v386_v18, %v2569_v31  ;;  %v391_v20 = vmul.f32 %v386_v18, %v2574_v32 }
  0xa4   :  { %242 = vrot.lane.b32.xlu1 %v231_v60, %s2412_s21  ;;  %240 = vrot.lane.b32.xlu0 %v230_v59, %s2412_s21 }
  0xa5   :  { %v427_v21 = vpop.permute.xlu0 %426  ;;  %v432_v24 = vpop.permute.xlu1 %431 }
  0xa6   :  { %v435_v22 = vmul.f32 %v427_v21, %v2560_v26  ;;  %v434_v23 = vmul.f32 %v427_v21, %v2555_v25  ;;  %v437_v29 = vmul.f32 %v432_v24, %v2569_v31  ;;  %v436_v30 = vmul.f32 %v427_v21, %v2653_v27 }
  0xa7   :  { %v439_v35 = vmul.f32 %v432_v24, %v2662_v33  ;;  %v438_v36 = vmul.f32 %v432_v24, %v2574_v32 }
  0xa8   :  { %278 = vrot.lane.b32.xlu1 %v269_v63, %s2413_s22  ;;  %276 = vrot.lane.b32.xlu0 %v268_v62, %s2413_s22 }
  0xa9   :  { %v477_v37 = vpop.permute.xlu0 %476  ;;  %v482_v40 = vpop.permute.xlu1 %481 }
  0xaa   :  { %v485_v38 = vmul.f32 %v477_v37, %v2560_v26  ;;  %v484_v39 = vmul.f32 %v477_v37, %v2555_v25  ;;  %v487_v41 = vmul.f32 %v482_v40, %v2569_v31  ;;  %v486_v42 = vmul.f32 %v477_v37, %v2653_v27 }
  0xab   :  { %v489_v43 = vmul.f32 %v482_v40, %v2662_v33  ;;  %v488_v44 = vmul.f32 %v482_v40, %v2574_v32 }
  0xac   :  { %282 = vrot.lane.b32.xlu1 %v271_v2, %s2413_s22  ;;  %280 = vrot.lane.b32.xlu0 %v270_v1, %s2413_s22 }
  0xb0   :  { %318 = vrot.lane.b32.xlu1 %v309_v5, %s2414_s23  ;;  %316 = vrot.lane.b32.xlu0 %v308_v4, %s2414_s23 }
  0xb4   :  { %322 = vrot.lane.b32.xlu1 %v311_v8, %s2414_s23  ;;  %320 = vrot.lane.b32.xlu0 %v310_v7, %s2414_s23 }
  0xb8   :  { %358 = vrot.lane.b32.xlu1 %v349_v11, %s2415_s24  ;;  %356 = vrot.lane.b32.xlu0 %v348_v10, %s2415_s24 }
  0xbc   :  { %362 = vrot.lane.b32.xlu1 %v351_v14, %s2415_s24  ;;  %360 = vrot.lane.b32.xlu0 %v350_v13, %s2415_s24 }
  0xc0   :  { %398 = vrot.lane.b32.xlu1 %v389_v17, %s2416_s25  ;;  %396 = vrot.lane.b32.xlu0 %v388_v16, %s2416_s25 }
  0xc4   :  { %402 = vrot.lane.b32.xlu1 %v391_v20, %s2416_s25  ;;  %400 = vrot.lane.b32.xlu0 %v390_v19, %s2416_s25 }
  0xc8   :  { %448 = vrot.lane.b32.xlu1 %v435_v22, %s2417_s28  ;;  %446 = vrot.lane.b32.xlu0 %v434_v23, %s2417_s28 }
  0xcc   :  { %452 = vrot.lane.b32.xlu1 %v437_v29, %s2417_s28  ;;  %450 = vrot.lane.b32.xlu0 %v436_v30, %s2417_s28 }
  0xd0   :  { %456 = vrot.lane.b32.xlu1 %v439_v35, %s2417_s28  ;;  %454 = vrot.lane.b32.xlu0 %v438_v36, %s2417_s28 }
  0xd4   :  { %498 = vrot.lane.b32.xlu1 %v485_v38, %s2418_s9  ;;  %496 = vrot.lane.b32.xlu0 %v484_v39, %s2418_s9 }
  0xd8   :  { %502 = vrot.lane.b32.xlu1 %v487_v41, %s2418_s9  ;;  %500 = vrot.lane.b32.xlu0 %v486_v42, %s2418_s9 }
  0xdc   :  { %506 = vrot.lane.b32.xlu1 %v489_v43, %s2418_s9  ;;  %504 = vrot.lane.b32.xlu0 %v488_v44, %s2418_s9 }
  0xe0   :  { %531 = vperm.xlu1 %2380, %v2280_v45   ;;  %526 = vperm.xlu0 %2379, %v2279_v46  }
  0xf2   :  { %v2688_v47 = vpop.permute.xlu1 %78  ;;  %v2690_v48 = vpop.permute.xlu0 %76 }
  0xf6   :  { %v2692_v49 = vpop.permute.xlu1 %82  ;;  %v2694_v50 = vpop.permute.xlu0 %80 }
  0xfa   :  { %v2696_v51 = vpop.permute.xlu1 %118  ;;  %v2698_v52 = vpop.permute.xlu0 %116 }
  0xfe   :  { %v2700_v53 = vpop.permute.xlu1 %122  ;;  %v2702_v54 = vpop.permute.xlu0 %120 }
 0x102   :  { %v2704_v55 = vpop.permute.xlu1 %158  ;;  %v2706_v56 = vpop.permute.xlu0 %156 }
 0x106   :  { %v2708_v57 = vpop.permute.xlu1 %162  ;;  %v2710_v58 = vpop.permute.xlu0 %160 }
 0x10a   :  { %v2712_v59 = vpop.permute.xlu1 %198  ;;  %v2714_v60 = vpop.permute.xlu0 %196 }
 0x10e   :  { %v2716_v61 = vpop.permute.xlu1 %202  ;;  %v2718_v62 = vpop.permute.xlu0 %200 }
 0x112   :  { %v2720_v63 = vpop.permute.xlu1 %238  ;;  %v2722_v0 = vpop.permute.xlu0 %236 }
 0x116   :  { %v2724_v1 = vpop.permute.xlu1 %242  ;;  %v2726_v2 = vpop.permute.xlu0 %240 }
 0x11a   :  { %v2728_v3 = vpop.permute.xlu1 %278  ;;  %v2730_v4 = vpop.permute.xlu0 %276 }
 0x11e   :  { %v2732_v5 = vpop.permute.xlu1 %282  ;;  %v2734_v6 = vpop.permute.xlu0 %280 }
 0x122   :  { %v2736_v7 = vpop.permute.xlu1 %318  ;;  %v2738_v8 = vpop.permute.xlu0 %316 }
 0x126   :  { %v2740_v9 = vpop.permute.xlu1 %322  ;;  %v2742_v10 = vpop.permute.xlu0 %320 }
 0x12a   :  { %v2744_v11 = vpop.permute.xlu1 %358  ;;  %v2746_v12 = vpop.permute.xlu0 %356 }
 0x12e   :  { %v2748_v13 = vpop.permute.xlu1 %362  ;;  %v2750_v14 = vpop.permute.xlu0 %360 }
 0x132   :  { %v2752_v15 = vpop.permute.xlu1 %398  ;;  %v2754_v16 = vpop.permute.xlu0 %396 }
 0x136   :  { %v2756_v17 = vpop.permute.xlu1 %402  ;;  %v2758_v18 = vpop.permute.xlu0 %400 }
 0x137   :  { %3937 = vst [vmem:[#allocation6_spill] sm:$0xff] %v2758_v18 }
 0x13a   :  { %v2760_v19 = vpop.permute.xlu0 %446  ;;  %v2762_v20 = vpop.permute.xlu1 %448 }
 0x13e   :  { %v2764_v21 = vpop.permute.xlu0 %450  ;;  %v2766_v22 = vpop.permute.xlu1 %452 }
 0x13f   :  { %3938 = vst [vmem:[#allocation7_spill] sm:$0xff] %v2766_v22 }
 0x142   :  { %v2768_v23 = vpop.permute.xlu0 %454  ;;  %v2770_v24 = vpop.permute.xlu1 %456 }
 0x143   :  { %3939 = vst [vmem:[#allocation8_spill] sm:$0xff] %v2768_v23  ;;  %3940 = vst [vmem:[#allocation9_spill] sm:$0xff] %v2770_v24 }
 0x146   :  { %v2772_v29 = vpop.permute.xlu0 %496  ;;  %v2774_v30 = vpop.permute.xlu1 %498 }
 0x14a   :  { %v2776_v35 = vpop.permute.xlu0 %500  ;;  %v2778_v36 = vpop.permute.xlu1 %502 }
 0x14b   :  { %3941 = vst [vmem:[#allocation10_spill] sm:$0xff] %v2778_v36 }
 0x14e   :  { %v2780_v37 = vpop.permute.xlu0 %504  ;;  %v2782_v38 = vpop.permute.xlu1 %506 }
 0x14f   :  { %3942 = vst [vmem:[#allocation11_spill] sm:$0xff] %v2780_v37  ;;  %3943 = vst [vmem:[#allocation12_spill] sm:$0xff] %v2782_v38 }
 0x15b   :  { %v527_v39 = vpop.permute.xlu0 %526  ;;  %v532_v42 = vpop.permute.xlu1 %531 }
 0x15c   :  { %v535_v40 = vmul.f32 %v527_v39, %v2560_v26  ;;  %v534_v41 = vmul.f32 %v527_v39, %v2555_v25  ;;  %v537_v43 = vmul.f32 %v532_v42, %v2569_v31  ;;  %v536_v44 = vmul.f32 %v527_v39, %v2653_v27  ;;  %v2281_v39 = vld [vmem:[%s3876_s2 + $0xd0] sm:$0xff] }
 0x15d   :  { %v539_v45 = vmul.f32 %v532_v42, %v2662_v33  ;;  %v538_v46 = vmul.f32 %v532_v42, %v2574_v32 }
 0x15e   :  { %548 = vrot.lane.b32.xlu1 %v535_v40, %s2419_s14  ;;  %546 = vrot.lane.b32.xlu0 %v534_v41, %s2419_s14  ;;  %v2282_v40 = vld [vmem:[%s3876_s2 + $0xd8] sm:$0xff] }
 0x162   :  { %552 = vrot.lane.b32.xlu1 %v537_v43, %s2419_s14  ;;  %550 = vrot.lane.b32.xlu0 %v536_v44, %s2419_s14 }
 0x166   :  { %556 = vrot.lane.b32.xlu1 %v539_v45, %s2419_s14  ;;  %554 = vrot.lane.b32.xlu0 %v538_v46, %s2419_s14 }
 0x16a   :  { %581 = vperm.xlu1 %2380, %v2282_v40   ;;  %576 = vperm.xlu0 %2379, %v2281_v39  }
 0x1d0   :  { %v2802_v41 = vpop.permute.xlu0 %546  ;;  %v2804_v43 = vpop.permute.xlu1 %548 }
 0x1d4   :  { %v2806_v44 = vpop.permute.xlu0 %550  ;;  %v2808_v42 = vpop.permute.xlu1 %552 }
 0x1d5   :  { %3944 = vst [vmem:[#allocation13_spill] sm:$0xff] %v2808_v42 }
 0x1d8   :  { %v2810_v45 = vpop.permute.xlu0 %554  ;;  %v2812_v46 = vpop.permute.xlu1 %556 }
 0x1d9   :  { %3945 = vst [vmem:[#allocation14_spill] sm:$0xff] %v2810_v45  ;;  %3946 = vst [vmem:[#allocation15_spill] sm:$0xff] %v2812_v46 }
 0x1e5   :  { %v577_v38 = vpop.permute.xlu0 %576  ;;  %v582_v24 = vpop.permute.xlu1 %581 }
 0x1e6   :  { %v585_v36 = vmul.f32 %v577_v38, %v2560_v26  ;;  %v584_v37 = vmul.f32 %v577_v38, %v2555_v25  ;;  %v587_v40 = vmul.f32 %v582_v24, %v2569_v31  ;;  %v586_v39 = vmul.f32 %v577_v38, %v2653_v27 }
 0x1e7   :  { %v589_v46 = vmul.f32 %v582_v24, %v2662_v33  ;;  %v588_v42 = vmul.f32 %v582_v24, %v2574_v32 }
 0x1e8   :  { %598 = vrot.lane.b32.xlu1 %v585_v36, %s2420_s29  ;;  %596 = vrot.lane.b32.xlu0 %v584_v37, %s2420_s29  ;;  %v2284_v36 = vld [vmem:[%s3876_s2 + $0xe8] sm:$0xff]  ;;  %v2283_v37 = vld [vmem:[%s3876_s2 + $0xe0] sm:$0xff] }
 0x1ec   :  { %602 = vrot.lane.b32.xlu1 %v587_v40, %s2420_s29  ;;  %600 = vrot.lane.b32.xlu0 %v586_v39, %s2420_s29 }
 0x1f0   :  { %606 = vrot.lane.b32.xlu1 %v589_v46, %s2420_s29  ;;  %604 = vrot.lane.b32.xlu0 %v588_v42, %s2420_s29 }
 0x1f4   :  { %631 = vperm.xlu1 %2380, %v2284_v36   ;;  %626 = vperm.xlu0 %2379, %v2283_v37  }
 0x25a   :  { %v2832_v38 = vpop.permute.xlu0 %596  ;;  %v2834_v40 = vpop.permute.xlu1 %598 }
 0x25b   :  { %3947 = vst [vmem:[#allocation16_spill] sm:$0xff] %v2832_v38  ;;  %3948 = vst [vmem:[#allocation17_spill] sm:$0xff] %v2834_v40 }
 0x25e   :  { %v2836_v39 = vpop.permute.xlu0 %600  ;;  %v2838_v24 = vpop.permute.xlu1 %602 }
 0x25f   :  { %3949 = vst [vmem:[#allocation18_spill] sm:$0xff] %v2836_v39  ;;  %3950 = vst [vmem:[#allocation19_spill] sm:$0xff] %v2838_v24 }
 0x262   :  { %v2840_v46 = vpop.permute.xlu0 %604  ;;  %v2842_v42 = vpop.permute.xlu1 %606 }
 0x263   :  { %3951 = vst [vmem:[#allocation20_spill] sm:$0xff] %v2840_v46  ;;  %3952 = vst [vmem:[#allocation21_spill] sm:$0xff] %v2842_v42 }
 0x26f   :  { %v627_v45 = vpop.permute.xlu0 %626  ;;  %v632_v18 = vpop.permute.xlu1 %631 }
 0x270   :  { %v635_v22 = vmul.f32 %v627_v45, %v2560_v26  ;;  %v634_v23 = vmul.f32 %v627_v45, %v2555_v25  ;;  %v637_v36 = vmul.f32 %v632_v18, %v2569_v31  ;;  %v636_v37 = vmul.f32 %v627_v45, %v2653_v27 }
 0x271   :  { %v639_v42 = vmul.f32 %v632_v18, %v2662_v33  ;;  %v638_v24 = vmul.f32 %v632_v18, %v2574_v32 }
 0x272   :  { %648 = vrot.lane.b32.xlu1 %v635_v22, %s3924_s13  ;;  %646 = vrot.lane.b32.xlu0 %v634_v23, %s3924_s13  ;;  %v2286_v22 = vld [vmem:[%s3876_s2 + $0xf8] sm:$0xff]  ;;  %v2285_v23 = vld [vmem:[%s3876_s2 + $0xf0] sm:$0xff] }
 0x276   :  { %652 = vrot.lane.b32.xlu1 %v637_v36, %s3924_s13  ;;  %650 = vrot.lane.b32.xlu0 %v636_v37, %s3924_s13 }
 0x27a   :  { %656 = vrot.lane.b32.xlu1 %v639_v42, %s3924_s13  ;;  %654 = vrot.lane.b32.xlu0 %v638_v24, %s3924_s13  ;;  %s4081_s13 = smov 79  }
 0x27e   :  { %681 = vperm.xlu1 %2380, %v2286_v22   ;;  %676 = vperm.xlu0 %2379, %v2285_v23  }
 0x2e4   :  { %v2862_v45 = vpop.permute.xlu0 %646  ;;  %v2864_v36 = vpop.permute.xlu1 %648 }
 0x2e5   :  { %3953 = vst [vmem:[#allocation22_spill] sm:$0xff] %v2862_v45  ;;  %3954 = vst [vmem:[#allocation23_spill] sm:$0xff] %v2864_v36 }
 0x2e8   :  { %v2866_v37 = vpop.permute.xlu0 %650  ;;  %v2868_v18 = vpop.permute.xlu1 %652 }
 0x2e9   :  { %3955 = vst [vmem:[#allocation24_spill] sm:$0xff] %v2866_v37  ;;  %3956 = vst [vmem:[#allocation25_spill] sm:$0xff] %v2868_v18 }
 0x2ec   :  { %v2870_v42 = vpop.permute.xlu0 %654  ;;  %v2872_v24 = vpop.permute.xlu1 %656 }
 0x2ed   :  { %3957 = vst [vmem:[#allocation26_spill] sm:$0xff] %v2870_v42  ;;  %3958 = vst [vmem:[#allocation27_spill] sm:$0xff] %v2872_v24 }
 0x2f9   :  { %v677_v46 = vpop.permute.xlu0 %676  ;;  %v682_v40 = vpop.permute.xlu1 %681 }
 0x2fa   :  { %v684_v39 = vmul.f32 %v677_v46, %v2555_v25  ;;  %v685_v38 = vmul.f32 %v677_v46, %v2560_v26  ;;  %v686_v22 = vmul.f32 %v677_v46, %v2653_v27  ;;  %v687_v23 = vmul.f32 %v682_v40, %v2569_v31 }
 0x2fb   :  { %v688_v24 = vmul.f32 %v682_v40, %v2574_v32  ;;  %v689_v18 = vmul.f32 %v682_v40, %v2662_v33 }
 0x2fc   :  { %696 = vrot.lane.b32.xlu0 %v684_v39, %s3920_s30  ;;  %698 = vrot.lane.b32.xlu1 %v685_v38, %s3920_s30  ;;  %v2287_v38 = vld [vmem:[%s3876_s2 + $0x100] sm:$0xff]  ;;  %v2288_v39 = vld [vmem:[%s3876_s2 + $0x108] sm:$0xff] }
 0x300   :  { %700 = vrot.lane.b32.xlu0 %v686_v22, %s3920_s30  ;;  %702 = vrot.lane.b32.xlu1 %v687_v23, %s3920_s30 }
 0x304   :  { %704 = vrot.lane.b32.xlu0 %v688_v24, %s3920_s30  ;;  %706 = vrot.lane.b32.xlu1 %v689_v18, %s3920_s30 }
 0x308   :  { %726 = vperm.xlu0 %2379, %v2287_v38   ;;  %731 = vperm.xlu1 %2380, %v2288_v39  }
 0x36e   :  { %v2892_v46 = vpop.permute.xlu0 %696  ;;  %v2894_v22 = vpop.permute.xlu1 %698 }
 0x36f   :  { %3959 = vst [vmem:[#allocation28_spill] sm:$0xff] %v2892_v46  ;;  %3960 = vst [vmem:[#allocation29_spill] sm:$0xff] %v2894_v22 }
 0x372   :  { %v2896_v23 = vpop.permute.xlu0 %700  ;;  %v2898_v40 = vpop.permute.xlu1 %702 }
 0x373   :  { %3961 = vst [vmem:[#allocation30_spill] sm:$0xff] %v2896_v23  ;;  %3962 = vst [vmem:[#allocation31_spill] sm:$0xff] %v2898_v40 }
 0x376   :  { %v2900_v24 = vpop.permute.xlu0 %704  ;;  %v2902_v18 = vpop.permute.xlu1 %706 }
 0x377   :  { %3963 = vst [vmem:[#allocation32_spill] sm:$0xff] %v2900_v24  ;;  %3964 = vst [vmem:[#allocation33_spill] sm:$0xff] %v2902_v18 }
 0x383   :  { %v727_v42 = vpop.permute.xlu0 %726  ;;  %v732_v36 = vpop.permute.xlu1 %731 }
 0x384   :  { %v734_v37 = vmul.f32 %v727_v42, %v2555_v25  ;;  %v735_v45 = vmul.f32 %v727_v42, %v2560_v26  ;;  %v737_v38 = vmul.f32 %v732_v36, %v2569_v31  ;;  %v736_v39 = vmul.f32 %v727_v42, %v2653_v27 }
 0x385   :  { %v738_v18 = vmul.f32 %v732_v36, %v2574_v32  ;;  %v739_v40 = vmul.f32 %v732_v36, %v2662_v33 }
 0x386   :  { %748 = vrot.lane.b32.xlu1 %v735_v45, %s3912_s16  ;;  %746 = vrot.lane.b32.xlu0 %v734_v37, %s3912_s16  ;;  %v2290_v45 = vld [vmem:[%s3876_s2 + $0x118] sm:$0xff]  ;;  %v2289_v37 = vld [vmem:[%s3876_s2 + $0x110] sm:$0xff] }
 0x38a   :  { %752 = vrot.lane.b32.xlu1 %v737_v38, %s3912_s16  ;;  %750 = vrot.lane.b32.xlu0 %v736_v39, %s3912_s16 }
 0x38e   :  { %756 = vrot.lane.b32.xlu1 %v739_v40, %s3912_s16  ;;  %754 = vrot.lane.b32.xlu0 %v738_v18, %s3912_s16  ;;  %s3916_s16 = smov 77  }
 0x392   :  { %781 = vperm.xlu1 %2380, %v2290_v45   ;;  %776 = vperm.xlu0 %2379, %v2289_v37  }
 0x3f8   :  { %v2922_v42 = vpop.permute.xlu0 %746  ;;  %v2924_v38 = vpop.permute.xlu1 %748 }
 0x3f9   :  { %3965 = vst [vmem:[#allocation34_spill] sm:$0xff] %v2922_v42  ;;  %3966 = vst [vmem:[#allocation35_spill] sm:$0xff] %v2924_v38 }
 0x3fc   :  { %v2926_v39 = vpop.permute.xlu0 %750  ;;  %v2928_v36 = vpop.permute.xlu1 %752 }
 0x3fd   :  { %3967 = vst [vmem:[#allocation36_spill] sm:$0xff] %v2926_v39  ;;  %3968 = vst [vmem:[#allocation37_spill] sm:$0xff] %v2928_v36 }
 0x400   :  { %v2930_v40 = vpop.permute.xlu0 %754  ;;  %v2932_v18 = vpop.permute.xlu1 %756 }
 0x401   :  { %3969 = vst [vmem:[#allocation38_spill] sm:$0xff] %v2930_v40  ;;  %3970 = vst [vmem:[#allocation39_spill] sm:$0xff] %v2932_v18 }
 0x40d   :  { %v777_v24 = vpop.permute.xlu0 %776  ;;  %v782_v22 = vpop.permute.xlu1 %781 }
 0x40e   :  { %v784_v23 = vmul.f32 %v777_v24, %v2555_v25  ;;  %v785_v46 = vmul.f32 %v777_v24, %v2560_v26  ;;  %v786_v45 = vmul.f32 %v777_v24, %v2653_v27  ;;  %v787_v37 = vmul.f32 %v782_v22, %v2569_v31 }
 0x40f   :  { %v788_v18 = vmul.f32 %v782_v22, %v2574_v32  ;;  %v789_v36 = vmul.f32 %v782_v22, %v2662_v33 }
 0x410   :  { %796 = vrot.lane.b32.xlu0 %v784_v23, %s3910_s12  ;;  %798 = vrot.lane.b32.xlu1 %v785_v46, %s3910_s12  ;;  %v2291_v46 = vld [vmem:[%s3876_s2 + $0x120] sm:$0xff]  ;;  %v2292_v23 = vld [vmem:[%s3876_s2 + $0x128] sm:$0xff] }
 0x414   :  { %800 = vrot.lane.b32.xlu0 %v786_v45, %s3910_s12  ;;  %802 = vrot.lane.b32.xlu1 %v787_v37, %s3910_s12 }
 0x418   :  { %804 = vrot.lane.b32.xlu0 %v788_v18, %s3910_s12  ;;  %806 = vrot.lane.b32.xlu1 %v789_v36, %s3910_s12 }
 0x41c   :  { %826 = vperm.xlu0 %2379, %v2291_v46   ;;  %831 = vperm.xlu1 %2380, %v2292_v23  }
 0x482   :  { %v2952_v24 = vpop.permute.xlu0 %796  ;;  %v2954_v45 = vpop.permute.xlu1 %798 }
 0x483   :  { %3971 = vst [vmem:[#allocation40_spill] sm:$0xff] %v2952_v24  ;;  %3972 = vst [vmem:[#allocation41_spill] sm:$0xff] %v2954_v45 }
 0x486   :  { %v2956_v37 = vpop.permute.xlu0 %800  ;;  %v2958_v22 = vpop.permute.xlu1 %802 }
 0x487   :  { %3973 = vst [vmem:[#allocation42_spill] sm:$0xff] %v2956_v37  ;;  %3974 = vst [vmem:[#allocation43_spill] sm:$0xff] %v2958_v22 }
 0x48a   :  { %v2960_v18 = vpop.permute.xlu0 %804  ;;  %v2962_v36 = vpop.permute.xlu1 %806 }
 0x48b   :  { %3975 = vst [vmem:[#allocation44_spill] sm:$0xff] %v2960_v18  ;;  %3976 = vst [vmem:[#allocation45_spill] sm:$0xff] %v2962_v36 }
 0x497   :  { %v827_v40 = vpop.permute.xlu0 %826  ;;  %v832_v38 = vpop.permute.xlu1 %831 }
 0x498   :  { %v834_v39 = vmul.f32 %v827_v40, %v2555_v25  ;;  %v835_v42 = vmul.f32 %v827_v40, %v2560_v26  ;;  %v837_v46 = vmul.f32 %v832_v38, %v2569_v31  ;;  %v836_v23 = vmul.f32 %v827_v40, %v2653_v27 }
 0x499   :  { %v838_v36 = vmul.f32 %v832_v38, %v2574_v32  ;;  %v839_v22 = vmul.f32 %v832_v38, %v2662_v33 }
 0x49a   :  { %848 = vrot.lane.b32.xlu1 %v835_v42, %s3896_s11  ;;  %846 = vrot.lane.b32.xlu0 %v834_v39, %s3896_s11  ;;  %v2294_v42 = vld [vmem:[%s3876_s2 + $0x138] sm:$0xff]  ;;  %v2293_v39 = vld [vmem:[%s3876_s2 + $0x130] sm:$0xff] }
 0x49e   :  { %852 = vrot.lane.b32.xlu1 %v837_v46, %s3896_s11  ;;  %850 = vrot.lane.b32.xlu0 %v836_v23, %s3896_s11 }
 0x4a2   :  { %856 = vrot.lane.b32.xlu1 %v839_v22, %s3896_s11  ;;  %854 = vrot.lane.b32.xlu0 %v838_v36, %s3896_s11  ;;  %s3904_s11 = smov 80  }
 0x4a6   :  { %881 = vperm.xlu1 %2380, %v2294_v42   ;;  %876 = vperm.xlu0 %2379, %v2293_v39  }
 0x50c   :  { %v2982_v40 = vpop.permute.xlu0 %846  ;;  %v2984_v46 = vpop.permute.xlu1 %848 }
 0x50d   :  { %3977 = vst [vmem:[#allocation46_spill] sm:$0xff] %v2982_v40  ;;  %3978 = vst [vmem:[#allocation47_spill] sm:$0xff] %v2984_v46 }
 0x510   :  { %v2986_v23 = vpop.permute.xlu0 %850  ;;  %v2988_v38 = vpop.permute.xlu1 %852 }
 0x511   :  { %3979 = vst [vmem:[#allocation48_spill] sm:$0xff] %v2986_v23  ;;  %3980 = vst [vmem:[#allocation49_spill] sm:$0xff] %v2988_v38 }
 0x514   :  { %v2990_v22 = vpop.permute.xlu0 %854  ;;  %v2992_v36 = vpop.permute.xlu1 %856 }
 0x515   :  { %3981 = vst [vmem:[#allocation50_spill] sm:$0xff] %v2990_v22  ;;  %3982 = vst [vmem:[#allocation51_spill] sm:$0xff] %v2992_v36 }
 0x521   :  { %v877_v18 = vpop.permute.xlu0 %876  ;;  %v882_v45 = vpop.permute.xlu1 %881 }
 0x522   :  { %v884_v37 = vmul.f32 %v877_v18, %v2555_v25  ;;  %v885_v24 = vmul.f32 %v877_v18, %v2560_v26  ;;  %v886_v42 = vmul.f32 %v877_v18, %v2653_v27  ;;  %v887_v39 = vmul.f32 %v882_v45, %v2569_v31 }
 0x523   :  { %v888_v36 = vmul.f32 %v882_v45, %v2574_v32  ;;  %v889_v38 = vmul.f32 %v882_v45, %v2662_v33 }
 0x524   :  { %896 = vrot.lane.b32.xlu0 %v884_v37, %s3900_s15  ;;  %898 = vrot.lane.b32.xlu1 %v885_v24, %s3900_s15  ;;  %v2295_v24 = vld [vmem:[%s3876_s2 + $0x140] sm:$0xff]  ;;  %v2296_v37 = vld [vmem:[%s3876_s2 + $0x148] sm:$0xff] }
 0x528   :  { %900 = vrot.lane.b32.xlu0 %v886_v42, %s3900_s15  ;;  %902 = vrot.lane.b32.xlu1 %v887_v39, %s3900_s15 }
 0x52c   :  { %904 = vrot.lane.b32.xlu0 %v888_v36, %s3900_s15  ;;  %906 = vrot.lane.b32.xlu1 %v889_v38, %s3900_s15  ;;  %s3908_s15 = smov 79  }
 0x530   :  { %926 = vperm.xlu0 %2379, %v2295_v24   ;;  %931 = vperm.xlu1 %2380, %v2296_v37  }
 0x596   :  { %v3012_v18 = vpop.permute.xlu0 %896  ;;  %v3014_v42 = vpop.permute.xlu1 %898 }
 0x597   :  { %3983 = vst [vmem:[#allocation52_spill] sm:$0xff] %v3012_v18  ;;  %3984 = vst [vmem:[#allocation53_spill] sm:$0xff] %v3014_v42 }
 0x59a   :  { %v3016_v39 = vpop.permute.xlu0 %900  ;;  %v3018_v45 = vpop.permute.xlu1 %902 }
 0x59b   :  { %3985 = vst [vmem:[#allocation54_spill] sm:$0xff] %v3016_v39  ;;  %3986 = vst [vmem:[#allocation55_spill] sm:$0xff] %v3018_v45 }
 0x59e   :  { %v3020_v36 = vpop.permute.xlu0 %904  ;;  %v3022_v38 = vpop.permute.xlu1 %906 }
 0x59f   :  { %3987 = vst [vmem:[#allocation56_spill] sm:$0xff] %v3020_v36  ;;  %3988 = vst [vmem:[#allocation57_spill] sm:$0xff] %v3022_v38 }
 0x5ab   :  { %v927_v22 = vpop.permute.xlu0 %926  ;;  %v932_v46 = vpop.permute.xlu1 %931 }
 0x5ac   :  { %v934_v23 = vmul.f32 %v927_v22, %v2555_v25  ;;  %v935_v40 = vmul.f32 %v927_v22, %v2560_v26  ;;  %v937_v24 = vmul.f32 %v932_v46, %v2569_v31  ;;  %v936_v37 = vmul.f32 %v927_v22, %v2653_v27 }
 0x5ad   :  { %v938_v38 = vmul.f32 %v932_v46, %v2574_v32  ;;  %v939_v45 = vmul.f32 %v932_v46, %v2662_v33 }
 0x5ae   :  { %948 = vrot.lane.b32.xlu1 %v935_v40, %s3904_s11  ;;  %946 = vrot.lane.b32.xlu0 %v934_v23, %s3904_s11  ;;  %v2298_v40 = vld [vmem:[%s3876_s2 + $0x158] sm:$0xff]  ;;  %v2297_v23 = vld [vmem:[%s3876_s2 + $0x150] sm:$0xff] }
 0x5b2   :  { %952 = vrot.lane.b32.xlu1 %v937_v24, %s3904_s11  ;;  %950 = vrot.lane.b32.xlu0 %v936_v37, %s3904_s11 }
 0x5b6   :  { %956 = vrot.lane.b32.xlu1 %v939_v45, %s3904_s11  ;;  %954 = vrot.lane.b32.xlu0 %v938_v38, %s3904_s11  ;;  %s3918_s11 = smov 78  }
 0x5ba   :  { %981 = vperm.xlu1 %2380, %v2298_v40   ;;  %976 = vperm.xlu0 %2379, %v2297_v23  }
 0x620   :  { %v3042_v22 = vpop.permute.xlu0 %946  ;;  %v3044_v24 = vpop.permute.xlu1 %948 }
 0x621   :  { %3989 = vst [vmem:[#allocation58_spill] sm:$0xff] %v3042_v22  ;;  %3990 = vst [vmem:[#allocation59_spill] sm:$0xff] %v3044_v24 }
 0x624   :  { %v3046_v37 = vpop.permute.xlu0 %950  ;;  %v3048_v46 = vpop.permute.xlu1 %952 }
 0x625   :  { %3991 = vst [vmem:[#allocation60_spill] sm:$0xff] %v3046_v37  ;;  %3992 = vst [vmem:[#allocation61_spill] sm:$0xff] %v3048_v46 }
 0x628   :  { %v3050_v45 = vpop.permute.xlu0 %954  ;;  %v3052_v38 = vpop.permute.xlu1 %956 }
 0x629   :  { %3993 = vst [vmem:[#allocation62_spill] sm:$0xff] %v3050_v45  ;;  %3994 = vst [vmem:[#allocation63_spill] sm:$0xff] %v3052_v38 }
 0x635   :  { %v977_v36 = vpop.permute.xlu0 %976  ;;  %v982_v42 = vpop.permute.xlu1 %981 }
 0x636   :  { %v984_v39 = vmul.f32 %v977_v36, %v2555_v25  ;;  %v985_v18 = vmul.f32 %v977_v36, %v2560_v26  ;;  %v986_v40 = vmul.f32 %v977_v36, %v2653_v27  ;;  %v987_v23 = vmul.f32 %v982_v42, %v2569_v31 }
 0x637   :  { %v988_v38 = vmul.f32 %v982_v42, %v2574_v32  ;;  %v989_v46 = vmul.f32 %v982_v42, %v2662_v33 }
 0x638   :  { %996 = vrot.lane.b32.xlu0 %v984_v39, %s3908_s15  ;;  %998 = vrot.lane.b32.xlu1 %v985_v18, %s3908_s15  ;;  %v2299_v18 = vld [vmem:[%s3876_s2 + $0x160] sm:$0xff]  ;;  %v2300_v39 = vld [vmem:[%s3876_s2 + $0x168] sm:$0xff] }
 0x63c   :  { %1000 = vrot.lane.b32.xlu0 %v986_v40, %s3908_s15  ;;  %1002 = vrot.lane.b32.xlu1 %v987_v23, %s3908_s15 }
 0x640   :  { %1004 = vrot.lane.b32.xlu0 %v988_v38, %s3908_s15  ;;  %1006 = vrot.lane.b32.xlu1 %v989_v46, %s3908_s15 }
 0x644   :  { %1026 = vperm.xlu0 %2379, %v2299_v18   ;;  %1031 = vperm.xlu1 %2380, %v2300_v39  }
 0x6aa   :  { %v3072_v36 = vpop.permute.xlu0 %996  ;;  %v3074_v40 = vpop.permute.xlu1 %998 }
 0x6ab   :  { %3995 = vst [vmem:[#allocation64_spill] sm:$0xff] %v3072_v36 }
 0x6ae   :  { %v3076_v23 = vpop.permute.xlu0 %1000  ;;  %v3078_v42 = vpop.permute.xlu1 %1002 }
 0x6af   :  { %3996 = vst [vmem:[#allocation65_spill] sm:$0xff] %v3076_v23  ;;  %3997 = vst [vmem:[#allocation66_spill] sm:$0xff] %v3078_v42 }
 0x6b2   :  { %v3080_v38 = vpop.permute.xlu0 %1004  ;;  %v3082_v46 = vpop.permute.xlu1 %1006 }
 0x6b3   :  { %3998 = vst [vmem:[#allocation67_spill] sm:$0xff] %v3080_v38  ;;  %3999 = vst [vmem:[#allocation68_spill] sm:$0xff] %v3082_v46 }
 0x6bf   :  { %v1027_v45 = vpop.permute.xlu0 %1026  ;;  %v1032_v24 = vpop.permute.xlu1 %1031 }
 0x6c0   :  { %v1034_v37 = vmul.f32 %v1027_v45, %v2555_v25  ;;  %v1035_v22 = vmul.f32 %v1027_v45, %v2560_v26  ;;  %v1037_v18 = vmul.f32 %v1032_v24, %v2569_v31  ;;  %v1036_v39 = vmul.f32 %v1027_v45, %v2653_v27  ;;  %v2303_v45 = vld [vmem:[%s3876_s2 + $0x180] sm:$0xff] }
 0x6c1   :  { %v1038_v46 = vmul.f32 %v1032_v24, %v2574_v32  ;;  %v1039_v42 = vmul.f32 %v1032_v24, %v2662_v33 }
 0x6c2   :  { %1048 = vrot.lane.b32.xlu1 %v1035_v22, %s3918_s11  ;;  %1046 = vrot.lane.b32.xlu0 %v1034_v37, %s3918_s11  ;;  %v2302_v22 = vld [vmem:[%s3876_s2 + $0x178] sm:$0xff]  ;;  %v2301_v37 = vld [vmem:[%s3876_s2 + $0x170] sm:$0xff] }
 0x6c6   :  { %1052 = vrot.lane.b32.xlu1 %v1037_v18, %s3918_s11  ;;  %1050 = vrot.lane.b32.xlu0 %v1036_v39, %s3918_s11 }
 0x6ca   :  { %1056 = vrot.lane.b32.xlu1 %v1039_v42, %s3918_s11  ;;  %1054 = vrot.lane.b32.xlu0 %v1038_v46, %s3918_s11 }
 0x6ce   :  { %1081 = vperm.xlu1 %2380, %v2302_v22   ;;  %1076 = vperm.xlu0 %2379, %v2301_v37  }
 0x6d2   :  { %1126 = vperm.xlu1 %2380, %v2303_v45  }
 0x734   :  { %v3105_v24 = vpop.permute.xlu0 %1046  ;;  %v3107_v42 = vpop.permute.xlu1 %1048 }
 0x738   :  { %v3109_v46 = vpop.permute.xlu0 %1050  ;;  %v3111_v18 = vpop.permute.xlu1 %1052 }
 0x739   :  { %4000 = vst [vmem:[#allocation69_spill] sm:$0xff] %v3109_v46  ;;  %4001 = vst [vmem:[#allocation70_spill] sm:$0xff] %v3111_v18  ;;  %v2304_v18 = vld [vmem:[%s3876_s2 + $0x188] sm:$0xff]  ;;  %s4078_s2 = smov 89  }
 0x73c   :  { %v3113_v39 = vpop.permute.xlu0 %1054  ;;  %v3115_v38 = vpop.permute.xlu1 %1056 }
 0x73d   :  { %4002 = vst [vmem:[#allocation71_spill] sm:$0xff] %v3113_v39  ;;  %4003 = vst [vmem:[#allocation72_spill] sm:$0xff] %v3115_v38 }
 0x749   :  { %v1077_v23 = vpop.permute.xlu0 %1076  ;;  %v1082_v36 = vpop.permute.xlu1 %1081 }
 0x74a   :  { %v1084_v22 = vmul.f32 %v1077_v23, %v2555_v25  ;;  %v1086_v37 = vmul.f32 %v1077_v23, %v2653_v27  ;;  %v1085_v45 = vmul.f32 %v1077_v23, %v2560_v26  ;;  %v1088_v46 = vmul.f32 %v1082_v36, %v2574_v32 }
 0x74b   :  { %v1087_v38 = vmul.f32 %v1082_v36, %v2569_v31 }
 0x74c   :  { %1096 = vrot.lane.b32.xlu0 %v1084_v22, %s3916_s16  ;;  %1100 = vrot.lane.b32.xlu1 %v1086_v37, %s3916_s16  ;;  %v1089_v22 = vmul.f32 %v1082_v36, %v2662_v33 }
 0x74d   :  { %v1127_v39 = vpop.permute.xlu1 %1126 }
 0x74e   :  { %v1135_v23 = vmul.f32 %v1127_v39, %v2560_v26  ;;  %v1136_v37 = vmul.f32 %v1127_v39, %v2653_v27 }
 0x750   :  { %1098 = vrot.lane.b32.xlu0 %v1085_v45, %s3916_s16  ;;  %1104 = vrot.lane.b32.xlu1 %v1088_v46, %s3916_s16  ;;  %v1134_v46 = vmul.f32 %v1127_v39, %v2555_v25  ;;  %v1171_v25 = vld [vmem:[%s3877_s3] sm:$0xff] }
 0x751   :  { %v1187_v39 = vld [vmem:[%s3878_s4] sm:$0xff] }
 0x754   :  { %1102 = vrot.lane.b32.xlu0 %v1087_v38, %s3916_s16  ;;  %1131 = vperm.xlu1 %2380, %v2304_v18  }
 0x758   :  { %1106 = vrot.lane.b32.xlu0 %v1089_v22, %s3916_s16  ;;  %1148 = vrot.lane.b32.xlu1 %v1135_v23, %s3922_s26  ;;  %v2308_v22 = vld [vmem:[%s3877_s3 + $0x20] sm:$0xff]  ;;  %v2309_v23 = vld [vmem:[%s3877_s3 + $0x28] sm:$0xff] }
 0x75c   :  { %1146 = vrot.lane.b32.xlu0 %v1134_v46, %s3922_s26  ;;  %v2310_v46 = vld [vmem:[%s3877_s3 + $0x30] sm:$0xff] }
 0x760   :  { %1150 = vrot.lane.b32.xlu0 %v1136_v37, %s3922_s26  ;;  %v2311_v37 = vld [vmem:[%s3877_s3 + $0x38] sm:$0xff] }
 0x7be   :  { %v3138_v45 = vpop.permute.xlu1 %1100 }
 0x7c2   :  { %v3140_v38 = vpop.permute.xlu1 %1104 }
 0x7cf   :  { %v1132_v36 = vpop.permute.xlu1 %1131 }
 0x7d0   :  { %v1137_v26 = vmul.f32 %v1132_v36, %v2569_v31  ;;  %v1138_v18 = vmul.f32 %v1132_v36, %v2574_v32  ;;  %v1139_v27 = vmul.f32 %v1132_v36, %v2662_v33  ;;  %v2305_v31 = vld [vmem:[%s3877_s3 + $0x8] sm:$0xff]  ;;  %v2306_v32 = vld [vmem:[%s3877_s3 + $0x10] sm:$0xff]  ;;  %v2307_v33 = vld [vmem:[%s3877_s3 + $0x18] sm:$0xff] }
 0x7d1   :  { %v2312_v36 = vld [vmem:[%s3877_s3 + $0x40] sm:$0xff] }
 0x7d2   :  { %1152 = vrot.lane.b32.xlu1 %v1137_v26, %s3922_s26  ;;  %1154 = vrot.lane.b32.xlu0 %v1138_v18, %s3922_s26  ;;  %v2313_v26 = vld [vmem:[%s3877_s3 + $0x48] sm:$0xff]  ;;  %v2314_v18 = vld [vmem:[%s3877_s3 + $0x50] sm:$0xff] }
 0x7d6   :  { %1156 = vrot.lane.b32.xlu1 %v1139_v27, %s3922_s26  ;;  %1182 = vperm.xlu0 %2379, %v1171_v25   ;;  %v2315_v25 = vld [vmem:[%s3877_s3 + $0x58] sm:$0xff]  ;;  %v2316_v27 = vld [vmem:[%s3877_s3 + $0x60] sm:$0xff]  ;;  %s4083_s26 = smov 77  }
 0x7da   :  { %1190 = vperm.xlu1 %2380, %v1187_v39   ;;  %1207 = vperm.xlu0 %2379, %v2305_v31   ;;  %v2317_v39 = vld [vmem:[%s3877_s3 + $0x68] sm:$0xff]  ;;  %v2318_v31 = vld [vmem:[%s3877_s3 + $0x70] sm:$0xff] }
 0x7de   :  { %1226 = vperm.xlu1 %2380, %v2306_v32   ;;  %1245 = vperm.xlu0 %2379, %v2307_v33   ;;  %v2319_v32 = vld [vmem:[%s3877_s3 + $0x78] sm:$0xff]  ;;  %v85_v33 = vsel %vm84_vm0, %v2690_v48, %v2688_v47 }
 0x7e2   :  { %1264 = vperm.xlu1 %2380, %v2308_v22   ;;  %1283 = vperm.xlu0 %2379, %v2309_v23   ;;  %v2381_v22 = vld [vmem:[%s3874_s0] sm:$0xff] }
 0x7e3   :  { %v51_v23 = vmul.f32 %v2381_v22, %v2562_v28 }
 0x7e5   :  { %v91_v48 = vadd.f32 %v85_v33, %v51_v23  ;;  %v245_v23 = vsel %vm3932_vm4, %v2722_v0, %v2720_v63 }
 0x7e6   :  { %1302 = vperm.xlu1 %2380, %v2310_v46   ;;  %1321 = vperm.xlu0 %2379, %v2311_v37   ;;  %v2382_v46 = vld [vmem:[%s3874_s0 + $0x8] sm:$0xff] }
 0x7e7   :  { %v52_v37 = vmul.f32 %v2382_v46, %v2562_v28 }
 0x7ea   :  { %1340 = vperm.xlu1 %2380, %v2312_v36   ;;  %1359 = vperm.xlu0 %2379, %v2313_v26   ;;  %v125_v36 = vsel %vm124_vm1, %v2698_v52, %v2696_v51  ;;  %v92_v26 = vadd.f32 %v2688_v47, %v52_v37  ;;  %v2383_v52 = vld [vmem:[%s3874_s0 + $0x18] sm:$0xff]  ;;  %v206_v37 = vsel %vm204_vm3, %v2718_v62, %v2716_v61  ;;  %v3260_v62 = vpop.permute.xlu0 %1096 }
 0x7eb   :  { %v131_v28 = vadd.f32 %v125_v36, %v91_v48  ;;  %v53_v47 = vmul.f32 %v2383_v52, %v2578_v34 }
 0x7ee   :  { %1378 = vperm.xlu1 %2380, %v2314_v18   ;;  %1397 = vperm.xlu0 %2379, %v2315_v25   ;;  %v165_v18 = vsel %vm164_vm2, %v2706_v56, %v2704_v55  ;;  %v86_v25 = vsel %vm84_vm0, %v2694_v50, %v2692_v49  ;;  %v205_v50 = vsel %vm204_vm3, %v2714_v60, %v2712_v59 }
 0x7ef   :  { %v93_v22 = vadd.f32 %v86_v25, %v53_v47  ;;  %v460_v47 = vsel %vm458_vm9, %v2762_v20, %v2764_v21 }
 0x7f2   :  { %1416 = vperm.xlu1 %2380, %v2316_v27   ;;  %1435 = vperm.xlu0 %2379, %v2317_v39   ;;  %v132_v27 = vadd.f32 %v2696_v51, %v92_v26  ;;  %v2384_v39 = vld [vmem:[%s3874_s0 + $0x20] sm:$0xff]  ;;  %v126_v51 = vsel %vm124_vm1, %v2702_v54, %v2700_v53  ;;  %v246_v26 = vsel %vm3932_vm4, %v2726_v2, %v2724_v1  ;;  %vm3935_vm4 = vcmask 629760  }
 0x7f3   :  { %v54_v56 = vmul.f32 %v2384_v39, %v2578_v34  ;;  %v166_v34 = vsel %vm164_vm2, %v2710_v58, %v2708_v57  ;;  %v3289_v39 = vpop.permute.xlu0 %1098 }
 0x7f5   :  { %v94_v33 = vadd.f32 %v2692_v49, %v54_v56  ;;  %v285_v49 = vsel %vm284_vm5, %v2730_v4, %v2728_v3 }
 0x7f6   :  { %1454 = vperm.xlu1 %2380, %v2318_v31   ;;  %1473 = vperm.xlu0 %2379, %v2319_v32   ;;  %v172_v31 = vadd.f32 %v2704_v55, %v132_v27  ;;  %v171_v32 = vadd.f32 %v165_v18, %v131_v28  ;;  %v133_v55 = vadd.f32 %v126_v51, %v93_v22 }
 0x7f7   :  { %v134_v54 = vadd.f32 %v2700_v53, %v94_v33  ;;  %v325_v53 = vsel %vm3931_vm6, %v2738_v8, %v2736_v7  ;;  %v286_v8 = vsel %vm284_vm5, %v2734_v6, %v2732_v5  ;;  %v326_v28 = vsel %vm3931_vm6, %v2742_v10, %v2740_v9  ;;  %v4005_v33 = vld [vmem:[#allocation8_spill] sm:$0xff] }
 0x7f8   :  { %v212_v60 = vadd.f32 %v2712_v59, %v172_v31  ;;  %v211_v46 = vadd.f32 %v205_v50, %v171_v32  ;;  %v173_v59 = vadd.f32 %v166_v34, %v133_v55  ;;  %v559_v51 = vsel %vm3928_vm11, %v2802_v41, %v2804_v43  ;;  %v4008_v34 = vld [vmem:[#allocation16_spill] sm:$0xff] }
 0x7f9   :  { %v174_v58 = vadd.f32 %v2708_v57, %v134_v54  ;;  %v365_v57 = vsel %vm364_vm7, %v2746_v12, %v2744_v11  ;;  %vm3936_vm6 = vcmask 637952  }
 0x7fa   :  { %v252_v0 = vadd.f32 %v2720_v63, %v212_v60  ;;  %v251_v36 = vadd.f32 %v245_v23, %v211_v46  ;;  %v213_v18 = vadd.f32 %v206_v37, %v173_v59  ;;  %v4007_v23 = vld [vmem:[#allocation17_spill] sm:$0xff]  ;;  %v4009_v60 = vld [vmem:[#allocation18_spill] sm:$0xff]  ;;  %v4011_v37 = vld [vmem:[#allocation11_spill] sm:$0xff] }
 0x7fb   :  { %v214_v63 = vadd.f32 %v2716_v61, %v174_v58  ;;  %v405_v61 = vsel %vm3927_vm8, %v2754_v16, %v2752_v15  ;;  %v366_v16 = vsel %vm364_vm7, %v2750_v14, %v2748_v13  ;;  %v609_v41 = vsel %vm3929_vm12, %v4008_v34, %v4007_v23  ;;  %v4013_v58 = vld [vmem:[#allocation23_spill] sm:$0xff]  ;;  %v4014_v59 = vld [vmem:[#allocation22_spill] sm:$0xff] }
 0x7fc   :  { %v292_v4 = vadd.f32 %v2728_v3, %v252_v0  ;;  %v291_v48 = vadd.f32 %v285_v49, %v251_v36  ;;  %v253_v27 = vadd.f32 %v246_v26, %v213_v18  ;;  %v4012_v0 = vld [vmem:[#allocation10_spill] sm:$0xff]  ;;  %v4015_v26 = vld [vmem:[#allocation24_spill] sm:$0xff] }
 0x7fd   :  { %v254_v3 = vadd.f32 %v2724_v1, %v214_v63  ;;  %v459_v1 = vsel %vm458_vm9, %v2760_v19, %v2762_v20  ;;  %v509_v19 = vsel %vm3926_vm10, %v2772_v29, %v2774_v30  ;;  %v510_v20 = vsel %vm3926_vm10, %v2774_v30, %v2776_v35  ;;  %v4004_v29 = vld [vmem:[#allocation6_spill] sm:$0xff] }
 0x7fe   :  { %v332_v25 = vadd.f32 %v2736_v7, %v292_v4  ;;  %v331_v2 = vadd.f32 %v325_v53, %v291_v48  ;;  %v293_v7 = vadd.f32 %v286_v8, %v253_v27  ;;  %v406_v31 = vsel %vm3927_vm8, %v4004_v29, %v2756_v17  ;;  %v4016_v48 = vld [vmem:[#allocation12_spill] sm:$0xff]  ;;  %v4027_v29 = vld [vmem:[#allocation19_spill] sm:$0xff] }
 0x7ff   :  { %v294_v6 = vadd.f32 %v2732_v5, %v254_v3  ;;  %v511_v36 = vsel %vm3926_vm10, %v4012_v0, %v4011_v37  ;;  %v659_v53 = vsel %vm3930_vm13, %v4014_v59, %v4013_v58  ;;  %v660_v4 = vsel %vm3930_vm13, %v4013_v58, %v4015_v26  ;;  %v4018_v3 = vld [vmem:[#allocation28_spill] sm:$0xff] }
 0x800   :  { %v372_v12 = vadd.f32 %v2744_v11, %v332_v25  ;;  %v371_v52 = vadd.f32 %v365_v57, %v331_v2  ;;  %v333_v56 = vadd.f32 %v326_v28, %v293_v7  ;;  %v512_v63 = vsel %vm3926_vm10, %v4011_v37, %v4016_v48  ;;  %v4017_v2 = vld [vmem:[#allocation29_spill] sm:$0xff]  ;;  %v4036_v37 = vld [vmem:[#allocation48_spill] sm:$0xff] }
 0x801   :  { %v334_v5 = vadd.f32 %v2740_v9, %v294_v6  ;;  %v560_v9 = vsel %vm3928_vm11, %v2804_v43, %v2806_v44  ;;  %v610_v43 = vsel %vm3929_vm12, %v4007_v23, %v4009_v60  ;;  %v4010_v44 = vld [vmem:[#allocation9_spill] sm:$0xff]  ;;  %v709_v27 = vsel %vm3933_vm14, %v4018_v3, %v4017_v2 }
 0x802   :  { %v412_v10 = vadd.f32 %v2752_v15, %v372_v12  ;;  %v411_v11 = vadd.f32 %v405_v61, %v371_v52  ;;  %v373_v15 = vadd.f32 %v366_v16, %v333_v56  ;;  %v462_v46 = vsel %vm458_vm9, %v4005_v33, %v4010_v44  ;;  %v4019_v61 = vld [vmem:[#allocation30_spill] sm:$0xff]  ;;  %v4021_v52 = vld [vmem:[#allocation13_spill] sm:$0xff]  ;;  %v4024_v56 = vld [vmem:[#allocation36_spill] sm:$0xff] }
 0x803   :  { %v374_v14 = vadd.f32 %v2748_v13, %v334_v5  ;;  %v4006_v13 = vld [vmem:[#allocation7_spill] sm:$0xff]  ;;  %v710_v28 = vsel %vm3933_vm14, %v4017_v2, %v4019_v61  ;;  %v4020_v12 = vld [vmem:[#allocation14_spill] sm:$0xff]  ;;  %vm808_vm10 = vcmask 736256   ;;  %vm858_vm8 = vcmask 728064   ;;  %v4033_v44 = vld [vmem:[#allocation25_spill] sm:$0xff] }
 0x804   :  { %v467_v21 = vadd.f32 %v459_v1, %v411_v11  ;;  %v468_v50 = vadd.f32 %v460_v47, %v412_v10  ;;  %v461_v22 = vsel %vm458_vm9, %v4006_v13, %v4005_v33  ;;  %v413_v49 = vadd.f32 %v406_v31, %v373_v15  ;;  %v4022_v10 = vld [vmem:[#allocation35_spill] sm:$0xff]  ;;  %v4023_v11 = vld [vmem:[#allocation34_spill] sm:$0xff]  ;;  %v4038_v48 = vld [vmem:[#allocation53_spill] sm:$0xff] }
 0x805   :  { %v414_v35 = vadd.f32 %v2756_v17, %v374_v14  ;;  %v3321_v17 = vpop.permute.xlu0 %1102  ;;  %v561_v6 = vsel %vm3928_vm11, %v4021_v52, %v4020_v12  ;;  %v759_v5 = vsel %vm758_vm15, %v4023_v11, %v4022_v10  ;;  %v4030_v33 = vld [vmem:[#allocation42_spill] sm:$0xff]  ;;  %v4042_v2 = vld [vmem:[#allocation31_spill] sm:$0xff] }
 0x806   :  { %v517_v32 = vadd.f32 %v509_v19, %v467_v21  ;;  %v518_v30 = vadd.f32 %v510_v20, %v468_v50  ;;  %v469_v8 = vadd.f32 %v461_v22, %v413_v49  ;;  %v760_v19 = vsel %vm758_vm15, %v4022_v10, %v4024_v56  ;;  %v4025_v20 = vld [vmem:[#allocation15_spill] sm:$0xff]  ;;  %v4031_v22 = vld [vmem:[#allocation21_spill] sm:$0xff] }
 0x807   :  { %v470_v25 = vadd.f32 %v462_v46, %v414_v35  ;;  %v562_v21 = vsel %vm3928_vm11, %v4020_v12, %v4025_v20  ;;  %vm908_vm11 = vcmask 719872   ;;  %v4046_v10 = vld [vmem:[#allocation33_spill] sm:$0xff]  ;;  %v4047_v20 = vld [vmem:[#allocation38_spill] sm:$0xff] }
 0x808   :  { %v567_v54 = vadd.f32 %v559_v51, %v517_v32  ;;  %v568_v55 = vadd.f32 %v560_v9, %v518_v30  ;;  %v519_v47 = vadd.f32 %v511_v36, %v469_v8  ;;  %v4026_v9 = vld [vmem:[#allocation20_spill] sm:$0xff]  ;;  %v4028_v32 = vld [vmem:[#allocation41_spill] sm:$0xff]  ;;  %v4037_v36 = vld [vmem:[#allocation27_spill] sm:$0xff] }
 0x809   :  { %v520_v16 = vadd.f32 %v512_v63, %v470_v25  ;;  %v3353_v15 = vpop.permute.xlu0 %1106  ;;  %v611_v31 = vsel %vm3929_vm12, %v4027_v29, %v4026_v9  ;;  %v4029_v30 = vld [vmem:[#allocation40_spill] sm:$0xff]  ;;  %v810_v13 = vsel %vm808_vm10, %v4028_v32, %v4030_v33  ;;  %v612_v23 = vsel %vm3929_vm12, %v4026_v9, %v4031_v22  ;;  %v4050_v9 = vld [vmem:[#allocation65_spill] sm:$0xff]  ;;  %v4051_v33 = vld [vmem:[#allocation39_spill] sm:$0xff] }
 0x80a   :  { %v617_v18 = vadd.f32 %v609_v41, %v567_v54  ;;  %v618_v57 = vadd.f32 %v610_v43, %v568_v55  ;;  %v569_v51 = vadd.f32 %v561_v6, %v519_v47  ;;  %v809_v35 = vsel %vm808_vm10, %v4029_v30, %v4028_v32  ;;  %v4032_v43 = vld [vmem:[#allocation26_spill] sm:$0xff]  ;;  %v4034_v54 = vld [vmem:[#allocation47_spill] sm:$0xff]  ;;  %v4039_v63 = vld [vmem:[#allocation52_spill] sm:$0xff] }
 0x80b   :  { %v570_v60 = vadd.f32 %v562_v21, %v520_v16  ;;  %v661_v46 = vsel %vm3930_vm13, %v4033_v44, %v4032_v43  ;;  %v4035_v55 = vld [vmem:[#allocation46_spill] sm:$0xff]  ;;  %v860_v0 = vsel %vm858_vm8, %v4034_v54, %v4036_v37  ;;  %v662_v58 = vsel %vm3930_vm13, %v4032_v43, %v4037_v36  ;;  %v4041_v25 = vld [vmem:[#allocation32_spill] sm:$0xff]  ;;  %v4043_v6 = vld [vmem:[#allocation59_spill] sm:$0xff] }
 0x80c   :  { %v667_v7 = vadd.f32 %v659_v53, %v617_v18  ;;  %v668_v1 = vadd.f32 %v660_v4, %v618_v57  ;;  %v859_v49 = vsel %vm858_vm8, %v4035_v55, %v4034_v54  ;;  %vm958_vm12 = vcmask 654336   ;;  %v4040_v57 = vld [vmem:[#allocation54_spill] sm:$0xff]  ;;  %v4045_v47 = vld [vmem:[#allocation60_spill] sm:$0xff]  ;;  %v4048_v21 = vld [vmem:[#allocation37_spill] sm:$0xff] }
 0x80d   :  { %v619_v26 = vadd.f32 %v611_v31, %v569_v51  ;;  %v620_v4 = vadd.f32 %v612_v23, %v570_v60  ;;  %v909_v18 = vsel %vm908_vm11, %v4039_v63, %v4038_v48  ;;  %v910_v8 = vsel %vm908_vm11, %v4038_v48, %v4040_v57  ;;  %v4052_v23 = vld [vmem:[#allocation69_spill] sm:$0xff]  ;;  %v4053_v60 = vld [vmem:[#allocation44_spill] sm:$0xff] }
 0x80e   :  { %v717_v50 = vadd.f32 %v709_v27, %v667_v7  ;;  %v718_v14 = vadd.f32 %v710_v28, %v668_v1  ;;  %v711_v3 = vsel %vm3933_vm14, %v4042_v2, %v4041_v25  ;;  %vm1008_vm13 = vcmask 646144   ;;  %v1147_v28 = vpop.permute.xlu0 %1146  ;;  %v4044_v7 = vld [vmem:[#allocation58_spill] sm:$0xff]  ;;  %v4057_v36 = vld [vmem:[#allocation49_spill] sm:$0xff] }
 0x80f   :  { %v669_v12 = vadd.f32 %v661_v46, %v619_v26  ;;  %v670_v52 = vadd.f32 %v662_v58, %v620_v4  ;;  %v959_v1 = vsel %vm958_vm12, %v4044_v7, %v4043_v6  ;;  %v960_v16 = vsel %vm958_vm12, %v4043_v6, %v4045_v47  ;;  %v4062_v6 = vld [vmem:[#allocation62_spill] sm:$0xff]  ;;  %v4063_v7 = vld [vmem:[#allocation61_spill] sm:$0xff] }
 0x810   :  { %v767_v34 = vadd.f32 %v759_v5, %v717_v50  ;;  %v768_v41 = vadd.f32 %v760_v19, %v718_v14  ;;  %v712_v11 = vsel %vm3933_vm14, %v4041_v25, %v4046_v10  ;;  %v761_v50 = vsel %vm758_vm15, %v4048_v21, %v4047_v20  ;;  %v4049_v14 = vld [vmem:[#allocation64_spill] sm:$0xff] }
 0x811   :  { %v719_v19 = vadd.f32 %v711_v3, %v669_v12  ;;  %v1009_v51 = vsel %vm1008_vm13, %v4049_v14, %v3074_v40  ;;  %v1010_v29 = vsel %vm1008_vm13, %v3074_v40, %v4050_v9  ;;  %v1172_v30 = vlaneseq  ;;  %v4054_v40 = vld [vmem:[#allocation43_spill] sm:$0xff]  ;;  %v4059_v25 = vld [vmem:[#allocation56_spill] sm:$0xff]  ;;  %v4061_v12 = vld [vmem:[#allocation57_spill] sm:$0xff] }
 0x812   :  { %v817_v59 = vadd.f32 %v809_v35, %v767_v34  ;;  %v818_v53 = vadd.f32 %v810_v13, %v768_v41  ;;  %v720_v35 = vadd.f32 %v712_v11, %v670_v52  ;;  %v762_v13 = vsel %vm758_vm15, %v4047_v20, %v4051_v33  ;;  %v1149_v41 = vpop.permute.xlu1 %1148  ;;  %v1151_v54 = vpop.permute.xlu0 %1150  ;;  %v4065_v9 = vld [vmem:[#allocation67_spill] sm:$0xff] }
 0x813   :  { %v1059_v22 = vsel %vm3936_vm6, %v3105_v24, %v3107_v42  ;;  %v1060_v34 = vsel %vm3936_vm6, %v3107_v42, %v4052_v23  ;;  %v811_v43 = vsel %vm808_vm10, %v4054_v40, %v4053_v60  ;;  %vm3934_vm14 = vcmask 621568   ;;  %v4069_v23 = vld [vmem:[#allocation70_spill] sm:$0xff] }
 0x814   :  { %v867_v27 = vadd.f32 %v859_v49, %v817_v59  ;;  %v868_v61 = vadd.f32 %v860_v0, %v818_v53  ;;  %v769_v55 = vadd.f32 %v761_v50, %v719_v19  ;;  %v4055_v49 = vld [vmem:[#allocation45_spill] sm:$0xff]  ;;  %v1109_v24 = vsel %vm3935_vm4, %v3260_v62, %v3289_v39  ;;  %v4056_v0 = vld [vmem:[#allocation50_spill] sm:$0xff] }
 0x815   :  { %v812_v37 = vsel %vm808_vm10, %v4053_v60, %v4055_v49  ;;  %v1110_v42 = vsel %vm3935_vm4, %v3289_v39, %v3138_v45  ;;  %v861_v58 = vsel %vm858_vm8, %v4057_v36, %v4056_v0  ;;  %v1173_v26 = vshrl.u32 %v1172_v30, 7  ;;  %v4060_v45 = vld [vmem:[#allocation55_spill] sm:$0xff] }
 0x816   :  { %v917_v5 = vadd.f32 %v909_v18, %v867_v27  ;;  %v918_v56 = vadd.f32 %v910_v8, %v868_v61  ;;  %v770_v4 = vadd.f32 %v762_v13, %v720_v35  ;;  %v819_v48 = vadd.f32 %v811_v43, %v769_v55  ;;  %v4058_v8 = vld [vmem:[#allocation51_spill] sm:$0xff] }
 0x817   :  { %v1159_v63 = vsel %vm3934_vm14, %v1147_v28, %v1149_v41  ;;  %v1160_v18 = vsel %vm3934_vm14, %v1149_v41, %v1151_v54  ;;  %v862_v62 = vsel %vm858_vm8, %v4056_v0, %v4058_v8  ;;  %v911_v39 = vsel %vm908_vm11, %v4060_v45, %v4059_v25  ;;  %v4070_v41 = vld [vmem:[#allocation72_spill] sm:$0xff] }
 0x818   :  { %v967_v31 = vadd.f32 %v959_v1, %v917_v5  ;;  %v968_v32 = vadd.f32 %v960_v16, %v918_v56  ;;  %v820_v27 = vadd.f32 %v812_v37, %v770_v4  ;;  %v869_v61 = vadd.f32 %v861_v58, %v819_v48  ;;  %v4064_v56 = vld [vmem:[#allocation63_spill] sm:$0xff] }
 0x819   :  { %v912_v52 = vsel %vm908_vm11, %v4059_v25, %v4061_v12  ;;  %v961_v1 = vsel %vm958_vm12, %v4063_v7, %v4062_v6  ;;  %v3448_v10 = vsub.s32 0, %v1173_v26  ;;  %v962_v19 = vsel %vm958_vm12, %v4062_v6, %v4064_v56 }
 0x81a   :  { %v1017_v44 = vadd.f32 %v1009_v51, %v967_v31  ;;  %v1018_v46 = vadd.f32 %v1010_v29, %v968_v32  ;;  %v870_v11 = vadd.f32 %v862_v62, %v820_v27  ;;  %v919_v5 = vadd.f32 %v911_v39, %v869_v61  ;;  %v4066_v29 = vld [vmem:[#allocation66_spill] sm:$0xff]  ;;  %v4067_v32 = vld [vmem:[#allocation68_spill] sm:$0xff] }
 0x81b   :  { %v3453_v20 = vsub.s32 1, %v1173_v26  ;;  %v1011_v31 = vsel %vm1008_vm13, %v4066_v29, %v4065_v9  ;;  %v1012_v30 = vsel %vm1008_vm13, %v4065_v9, %v4067_v32  ;;  %v3471_v40 = vsub.s32 2, %v1173_v26 }
 0x81c   :  { %v1067_v59 = vadd.f32 %v1059_v22, %v1017_v44  ;;  %v1068_v53 = vadd.f32 %v1060_v34, %v1018_v46  ;;  %v920_v21 = vadd.f32 %v912_v52, %v870_v11  ;;  %v969_v50 = vadd.f32 %v961_v1, %v919_v5  ;;  %v4068_v22 = vld [vmem:[#allocation71_spill] sm:$0xff] }
 0x81d   :  { %v1061_v34 = vsel %vm3936_vm6, %v4069_v23, %v4068_v22  ;;  %v1062_v60 = vsel %vm3936_vm6, %v4068_v22, %v4070_v41  ;;  %v3479_v48 = vsub.s32 4, %v1173_v26  ;;  %v3487_v62 = vsub.s32 6, %v1173_v26 }
 0x81e   :  { %v1117_v2 = vadd.f32 %v1109_v24, %v1067_v59  ;;  %v1118_v3 = vadd.f32 %v1110_v42, %v1068_v53  ;;  %v970_v13 = vadd.f32 %v962_v19, %v920_v21  ;;  %v1019_v55 = vadd.f32 %v1011_v31, %v969_v50 }
 0x81f   :  { %v3477_v42 = vsub.s32 3, %v1173_v26  ;;  %v3489_v25 = vsub.s32 7, %v1173_v26  ;;  %v1111_v45 = vsel %vm3935_vm4, %v3321_v17, %v3140_v38  ;;  %v1112_v39 = vsel %vm3935_vm4, %v3140_v38, %v3353_v15 }
 0x820   :  { %v3444_v47 = vadd.f32 %v1159_v63, %v1117_v2  ;;  %v3446_v16 = vadd.f32 %v1160_v18, %v1118_v3  ;;  %v1020_v49 = vadd.f32 %v1012_v30, %v970_v13  ;;  %v1069_v53 = vadd.f32 %v1061_v34, %v1019_v55 }
 0x821   :  { %v3481_v63 = vsub.s32 5, %v1173_v26  ;;  %vm30_vm4 = vcmask 211968   ;;  %vm1503_vm6 = vcmask 1047760  }
 0x822   :  { %v1179_v35 = vrot.slane %v3446_v16, %v3448_v10  ;;  %v1175_v33 = vrot.slane %v3444_v47, %v3448_v10  ;;  %v1204_v46 = vrot.slane %v3446_v16, %v3453_v20  ;;  %v1200_v54 = vrot.slane %v3444_v47, %v3453_v20 }
 0x823   :  { %v1070_v4 = vadd.f32 %v1062_v60, %v1020_v49  ;;  %v1219_v18 = vrot.slane %v3444_v47, %v3471_v40  ;;  %v1223_v8 = vrot.slane %v3446_v16, %v3471_v40  ;;  %v1242_v3 = vrot.slane %v3446_v16, %v3477_v42 }
 0x824   :  { %v1238_v61 = vrot.slane %v3444_v47, %v3477_v42  ;;  %v1257_v1 = vrot.slane %v3444_v47, %v3479_v48  ;;  %v1261_v38 = vrot.slane %v3446_v16, %v3479_v48  ;;  %v1119_v19 = vadd.f32 %v1111_v45, %v1069_v53 }
 0x825   :  { %v1120_v21 = vadd.f32 %v1112_v39, %v1070_v4  ;;  %v1318_v60 = vrot.slane %v3446_v16, %v3489_v25 }
 0x844   :  { %v1153_v57 = vpop.permute.xlu1 %1152  ;;  %v1155_v28 = vpop.permute.xlu0 %1154 }
 0x845   :  { %v1161_v7 = vsel %vm3934_vm14, %v1153_v57, %v1155_v28  ;;  %v1276_v57 = vrot.slane %v3444_v47, %v3481_v63 }
 0x846   :  { %v3511_v32 = vadd.f32 %v1161_v7, %v1119_v19 }
 0x848   :  { %v1157_v14 = vpop.permute.xlu1 %1156  ;;  %v1409_v19 = vrot.slane %v3511_v32, %v3479_v48 }
 0x849   :  { %v1162_v17 = vsel %vm3934_vm14, %v1155_v28, %v1157_v14  ;;  %vm32_vm14 = vcmask 261168  }
 0x84a   :  { %v3513_v30 = vadd.f32 %v1162_v17, %v1120_v21 }
 0x84c   :  { %v1394_v7 = vrot.slane %v3513_v30, %v3477_v42  ;;  %v1413_v21 = vrot.slane %v3513_v30, %v3479_v48 }
 0x851   :  { %v1183_v51 = vpop.permute.xlu0 %1182 }
 0x852   :  { %v1185_v43 = vmul.f32 %v1183_v51, %v1175_v33  ;;  %v1186_v44 = vmul.f32 %v1183_v51, %v1179_v35  ;;  %v1280_v51 = vrot.slane %v3446_v16, %v3481_v63  ;;  %v1295_v35 = vrot.slane %v3444_v47, %v3487_v62 }
 0x853   :  { %v1299_v33 = vrot.slane %v3446_v16, %v3487_v62  ;;  %v1352_v16 = vrot.slane %v3511_v32, %v3453_v20 }
 0x855   :  { %v1191_v37 = vpop.permute.xlu1 %1190  ;;  %v1208_v24 = vpop.permute.xlu0 %1207 }
 0x856   :  { %v1193_v0 = vadd.f32 %v1191_v37, %v1185_v43  ;;  %v1194_v36 = vadd.f32 %v1191_v37, %v1186_v44  ;;  %v1210_v58 = vmul.f32 %v1208_v24, %v1200_v54  ;;  %v1211_v59 = vmul.f32 %v1208_v24, %v1204_v46 }
 0x857   :  { %v1314_v44 = vrot.slane %v3444_v47, %v3489_v25  ;;  %v1333_v37 = vrot.slane %v3511_v32, %v3448_v10  ;;  %v1337_v24 = vrot.slane %v3513_v30, %v3448_v10  ;;  %v1356_v47 = vrot.slane %v3513_v30, %v3453_v20 }
 0x858   :  { %v1212_v12 = vadd.f32 %v1210_v58, %v1193_v0  ;;  %v1213_v52 = vadd.f32 %v1211_v59, %v1194_v36 }
 0x859   :  { %v1227_v2 = vpop.permute.xlu1 %1226  ;;  %v1246_v27 = vpop.permute.xlu0 %1245 }
 0x85a   :  { %v1229_v26 = vmul.f32 %v1227_v2, %v1219_v18  ;;  %v1230_v6 = vmul.f32 %v1227_v2, %v1223_v8  ;;  %v1248_v5 = vmul.f32 %v1246_v27, %v1238_v61  ;;  %v1249_v56 = vmul.f32 %v1246_v27, %v1242_v3 }
 0x85b   :  { %v1371_v2 = vrot.slane %v3511_v32, %v3471_v40  ;;  %v1375_v3 = vrot.slane %v3513_v30, %v3471_v40 }
 0x85c   :  { %v1231_v15 = vadd.f32 %v1229_v26, %v1212_v12  ;;  %v1232_v11 = vadd.f32 %v1230_v6, %v1213_v52  ;;  %v1390_v6 = vrot.slane %v3511_v32, %v3477_v42 }
 0x85d   :  { %v1265_v50 = vpop.permute.xlu1 %1264  ;;  %v1284_v9 = vpop.permute.xlu0 %1283 }
 0x85e   :  { %v1250_v28 = vadd.f32 %v1248_v5, %v1231_v15  ;;  %v1251_v14 = vadd.f32 %v1249_v56, %v1232_v11  ;;  %v1267_v29 = vmul.f32 %v1265_v50, %v1257_v1  ;;  %v1268_v31 = vmul.f32 %v1265_v50, %v1261_v38 }
 0x85f   :  { %v1286_v23 = vmul.f32 %v1284_v9, %v1276_v57  ;;  %v1287_v34 = vmul.f32 %v1284_v9, %v1280_v51  ;;  %v1428_v57 = vrot.slane %v3511_v32, %v3481_v63 }
 0x860   :  { %v1269_v13 = vadd.f32 %v1267_v29, %v1250_v28  ;;  %v1270_v22 = vadd.f32 %v1268_v31, %v1251_v14  ;;  %v1432_v28 = vrot.slane %v3513_v30, %v3481_v63  ;;  %v2432_v29 = vmov 0.0  }
 0x861   :  { %v1303_v41 = vpop.permute.xlu1 %1302  ;;  %v1322_v43 = vpop.permute.xlu0 %1321  ;;  %33 = vst.msk [vmem:[#allocation2 + $0x10] sm:$0xff] %vm32_vm14, %v2432_v29  ;;  %vm1506_vm14 = vcmask 48128  }
 0x862   :  { %v1288_v46 = vadd.f32 %v1286_v23, %v1269_v13  ;;  %v1289_v54 = vadd.f32 %v1287_v34, %v1270_v22  ;;  %v1305_v55 = vmul.f32 %v1303_v41, %v1295_v35  ;;  %v1306_v49 = vmul.f32 %v1303_v41, %v1299_v33  ;;  %31 = vst.msk [vmem:[#allocation2] sm:$0xff] %vm30_vm4, %v2432_v29 }
 0x863   :  { %v1324_v58 = vmul.f32 %v1322_v43, %v1314_v44  ;;  %v1325_v59 = vmul.f32 %v1322_v43, %v1318_v60  ;;  %v1447_v22 = vrot.slane %v3511_v32, %v3487_v62  ;;  %v1451_v23 = vrot.slane %v3513_v30, %v3487_v62  ;;  %v34_v44 = vld [vmem:[%s3875_s1] sm:$0x3]  ;;  %s2433_s1 = smov 26  }
 0x864   :  { %v1307_v0 = vadd.f32 %v1305_v55, %v1288_v46  ;;  %v1308_v36 = vadd.f32 %v1306_v49, %v1289_v54  ;;  %v1466_v54 = vrot.slane %v3511_v32, %v3489_v25  ;;  %v1470_v55 = vrot.slane %v3513_v30, %v3489_v25 }
 0x865   :  { %v1341_v53 = vpop.permute.xlu1 %1340  ;;  %v1360_v4 = vpop.permute.xlu0 %1359 }
 0x866   :  { %v1326_v18 = vadd.f32 %v1324_v58, %v1307_v0  ;;  %v1327_v8 = vadd.f32 %v1325_v59, %v1308_v36  ;;  %v1343_v45 = vmul.f32 %v1341_v53, %v1333_v37  ;;  %v1344_v39 = vmul.f32 %v1341_v53, %v1337_v24 }
 0x867   :  { %v1362_v12 = vmul.f32 %v1360_v4, %v1352_v16  ;;  %v1363_v52 = vmul.f32 %v1360_v4, %v1356_v47  ;;  %v3560_v58 = vrot.slane %v34_v44, %v3453_v20  ;;  %v3563_v59 = vrot.slane %v34_v44, %v3448_v10 }
 0x868   :  { %v1345_v27 = vadd.f32 %v1343_v45, %v1326_v18  ;;  %v1346_v61 = vadd.f32 %v1344_v39, %v1327_v8  ;;  %v2320_v45 = vld [vmem:[%s3879_s5 + $0x8] sm:$0xff]  ;;  %v1510_v39 = vld [vmem:[%s3879_s5] sm:$0xff] }
 0x869   :  { %v1379_v26 = vpop.permute.xlu1 %1378  ;;  %v1398_v17 = vpop.permute.xlu0 %1397 }
 0x86a   :  { %v1364_v1 = vadd.f32 %v1362_v12, %v1345_v27  ;;  %v1365_v38 = vadd.f32 %v1363_v52, %v1346_v61  ;;  %v1381_v15 = vmul.f32 %v1379_v26, %v1371_v2  ;;  %v1382_v11 = vmul.f32 %v1379_v26, %v1375_v3  ;;  %v2322_v2 = vld [vmem:[%s3879_s5 + $0x18] sm:$0xff]  ;;  %v2321_v3 = vld [vmem:[%s3879_s5 + $0x10] sm:$0xff]  ;;  %v2324_v27 = vld [vmem:[%s3879_s5 + $0x28] sm:$0xff] }
 0x86b   :  { %v1400_v5 = vmul.f32 %v1398_v17, %v1390_v6  ;;  %v1401_v56 = vmul.f32 %v1398_v17, %v1394_v7  ;;  %v2323_v61 = vld [vmem:[%s3879_s5 + $0x20] sm:$0xff]  ;;  %v2326_v12 = vld [vmem:[%s3879_s5 + $0x38] sm:$0xff]  ;;  %v2325_v52 = vld [vmem:[%s3879_s5 + $0x30] sm:$0xff] }
 0x86c   :  { %v1383_v50 = vadd.f32 %v1381_v15, %v1364_v1  ;;  %v1384_v51 = vadd.f32 %v1382_v11, %v1365_v38  ;;  %v2328_v26 = vld [vmem:[%s3879_s5 + $0x48] sm:$0xff]  ;;  %v2327_v6 = vld [vmem:[%s3879_s5 + $0x40] sm:$0xff]  ;;  %v2329_v17 = vld [vmem:[%s3879_s5 + $0x50] sm:$0xff] }
 0x86d   :  { %v1417_v9 = vpop.permute.xlu1 %1416  ;;  %v1436_v14 = vpop.permute.xlu0 %1435  ;;  %v2331_v7 = vld [vmem:[%s3879_s5 + $0x60] sm:$0xff]  ;;  %v2330_v1 = vld [vmem:[%s3879_s5 + $0x58] sm:$0xff]  ;;  %v2332_v38 = vld [vmem:[%s3879_s5 + $0x68] sm:$0xff] }
 0x86e   :  { %v1402_v31 = vadd.f32 %v1400_v5, %v1383_v50  ;;  %v1403_v35 = vadd.f32 %v1401_v56, %v1384_v51  ;;  %v1419_v33 = vmul.f32 %v1417_v9, %v1409_v19  ;;  %v1420_v13 = vmul.f32 %v1417_v9, %v1413_v21 }
 0x86f   :  { %v1438_v60 = vmul.f32 %v1436_v14, %v1428_v57  ;;  %v1439_v43 = vmul.f32 %v1436_v14, %v1432_v28 }
 0x870   :  { %v1421_v34 = vadd.f32 %v1419_v33, %v1402_v31  ;;  %v1422_v41 = vadd.f32 %v1420_v13, %v1403_v35 }
 0x871   :  { %v1455_v46 = vpop.permute.xlu1 %1454  ;;  %v1474_v49 = vpop.permute.xlu0 %1473 }
 0x872   :  { %v1440_v37 = vadd.f32 %v1438_v60, %v1421_v34  ;;  %v1441_v24 = vadd.f32 %v1439_v43, %v1422_v41  ;;  %v1457_v0 = vmul.f32 %v1455_v46, %v1447_v22  ;;  %v1458_v36 = vmul.f32 %v1455_v46, %v1451_v23 }
 0x873   :  { %v1476_v47 = vmul.f32 %v1474_v49, %v1466_v54  ;;  %v1477_v4 = vmul.f32 %v1474_v49, %v1470_v55 }
 0x874   :  { %v1459_v53 = vadd.f32 %v1457_v0, %v1440_v37  ;;  %v1460_v16 = vadd.f32 %v1458_v36, %v1441_v24  ;;  %v2334_v36 = vld [vmem:[%s3879_s5 + $0x78] sm:$0xff] }
 0x876   :  { %v1478_v18 = vadd.f32 %v1476_v47, %v1459_v53  ;;  %v1479_v32 = vadd.f32 %v1477_v4, %v1460_v16  ;;  %v2336_v16 = vld [vmem:[%s3879_s5 + $0x88] sm:$0xff]  ;;  %v2338_v4 = vld [vmem:[%s3879_s5 + $0x98] sm:$0xff] }
 0x878   :  { %v1492_v8 = vmul.f32 %v3560_v58, %v1479_v32  ;;  %v1491_v30 = vmul.f32 %v3563_v59, %v1478_v18  ;;  %v2340_v32 = vld [vmem:[%s3879_s5 + $0xa8] sm:$0xff] }
 0x87a   :  { %1497 = vrot.lane.b32.xlu0 %v1492_v8, %s2433_s1  ;;  %1495 = vrot.lane.b32.xlu1 %v1491_v30, %s2433_s1  ;;  %v2342_v30 = vld [vmem:[%s3879_s5 + $0xb8] sm:$0xff]  ;;  %s4079_s1 = smov 88  }
 0x87e   :  { %1522 = vperm.xlu0 %2379, %v2320_v45   ;;  %1513 = vperm.xlu1 %2380, %v1510_v39  }
 0x882   :  { %1562 = vperm.xlu0 %2379, %v2322_v2   ;;  %1542 = vperm.xlu1 %2380, %v2321_v3  }
 0x886   :  { %1602 = vperm.xlu0 %2379, %v2324_v27   ;;  %1582 = vperm.xlu1 %2380, %v2323_v61   ;;  %v2333_v61 = vld [vmem:[%s3879_s5 + $0x70] sm:$0xff] }
 0x88a   :  { %1642 = vperm.xlu0 %2379, %v2326_v12   ;;  %1622 = vperm.xlu1 %2380, %v2325_v52  }
 0x88e   :  { %1682 = vperm.xlu0 %2379, %v2328_v26   ;;  %1662 = vperm.xlu1 %2380, %v2327_v6   ;;  %v2335_v26 = vld [vmem:[%s3879_s5 + $0x80] sm:$0xff] }
 0x892   :  { %1755 = vperm.xlu0 %2379, %v2331_v7   ;;  %1705 = vperm.xlu1 %2380, %v2329_v17   ;;  %v2337_v17 = vld [vmem:[%s3879_s5 + $0x90] sm:$0xff] }
 0x896   :  { %1730 = vperm.xlu1 %2380, %v2330_v1  }
 0x89a   :  { %1780 = vperm.xlu1 %2380, %v2332_v38   ;;  %v2339_v38 = vld [vmem:[%s3879_s5 + $0xa0] sm:$0xff] }
 0x8ec   :  { %v1498_v15 = vpop.permute.xlu0 %1497  ;;  %v1496_v11 = vpop.permute.xlu1 %1495 }
 0x8ed   :  { %1507 = vst.msk [vmem:[#allocation2 + $0x10] sm:$0xff] %vm1506_vm14, %v1498_v15  ;;  %v3610_v5 = vsel %vm30_vm4, %v1496_v11, %v1498_v15  ;;  %v2341_v15 = vld [vmem:[%s3879_s5 + $0xb0] sm:$0xff]  ;;  %vm4091_vm14 = vcmask 818176  }
 0x8ee   :  { %1504 = vst.msk [vmem:[#allocation2] sm:$0xff] %vm1503_vm6, %v1496_v11  ;;  %v2343_v11 = vld [vmem:[%s3879_s5 + $0xc0] sm:$0xff]  ;;  %s4074_s5 = smov 100  }
 0x8f4   :  { %v3626_v41 = vld [vmem:[#allocation2 + $0x10] sm:$0xff] }
 0x8f5   :  { %v3612_v56 = vld [vmem:[#allocation2] sm:$0xff] }
 0x8f9   :  { %v1523_v19 = vpop.permute.xlu0 %1522  ;;  %v3614_v21 = vpop.permute.xlu1 %1513 }
 0x8fa   :  { %v1525_v50 = vmul.f32 %v3612_v56, %v1523_v19  ;;  %v1526_v47 = vmul.f32 %v1523_v19, %v3610_v5 }
 0x8fc   :  { %1529 = vrot.lane.b32.xlu1 %v1525_v50, %s2408_s17 }
 0x8fd   :  { %v1563_v51 = vpop.permute.xlu0 %1562  ;;  %v1543_v9 = vpop.permute.xlu1 %1542 }
 0x8fe   :  { %v1565_v57 = vmul.f32 %v3612_v56, %v1563_v51  ;;  %v1546_v60 = vmul.f32 %v1543_v9, %v3610_v5  ;;  %v1545_v46 = vmul.f32 %v3612_v56, %v1543_v9  ;;  %v1566_v18 = vmul.f32 %v1563_v51, %v3610_v5 }
 0x900   :  { %1569 = vrot.lane.b32.xlu1 %v1565_v57, %s2410_s19 }
 0x901   :  { %v1603_v28 = vpop.permute.xlu0 %1602  ;;  %v1583_v14 = vpop.permute.xlu1 %1582 }
 0x902   :  { %v1605_v29 = vmul.f32 %v3612_v56, %v1603_v28  ;;  %v1586_v44 = vmul.f32 %v1583_v14, %v3610_v5  ;;  %v1585_v55 = vmul.f32 %v3612_v56, %v1583_v14  ;;  %v1606_v8 = vmul.f32 %v1603_v28, %v3610_v5 }
 0x904   :  { %1609 = vrot.lane.b32.xlu1 %v1605_v29, %s2412_s21 }
 0x905   :  { %v1643_v31 = vpop.permute.xlu0 %1642  ;;  %v1623_v35 = vpop.permute.xlu1 %1622 }
 0x906   :  { %v1645_v33 = vmul.f32 %v3612_v56, %v1643_v31  ;;  %v1626_v54 = vmul.f32 %v1623_v35, %v3610_v5  ;;  %v1625_v37 = vmul.f32 %v3612_v56, %v1623_v35  ;;  %v1646_v45 = vmul.f32 %v1643_v31, %v3610_v5 }
 0x908   :  { %1649 = vrot.lane.b32.xlu1 %v1645_v33, %s2414_s23 }
 0x909   :  { %v1683_v13 = vpop.permute.xlu0 %1682  ;;  %v1663_v22 = vpop.permute.xlu1 %1662 }
 0x90a   :  { %v1685_v23 = vmul.f32 %v3612_v56, %v1683_v13  ;;  %v1666_v49 = vmul.f32 %v1663_v22, %v3610_v5  ;;  %v1665_v0 = vmul.f32 %v3612_v56, %v1663_v22  ;;  %v1686_v3 = vmul.f32 %v1683_v13, %v3610_v5 }
 0x90c   :  { %1689 = vrot.lane.b32.xlu1 %v1685_v23, %s2416_s25 }
 0x90d   :  { %v1706_v34 = vpop.permute.xlu1 %1705  ;;  %v1756_v12 = vpop.permute.xlu0 %1755 }
 0x90e   :  { %v1710_v43 = vmul.f32 %v1706_v34, %v3626_v41  ;;  %v1709_v24 = vmul.f32 %v1706_v34, %v3610_v5  ;;  %v1708_v53 = vmul.f32 %v1706_v34, %v3612_v56  ;;  %v1759_v52 = vmul.f32 %v1756_v12, %v3610_v5 }
 0x90f   :  { %v1758_v50 = vmul.f32 %v1756_v12, %v3612_v56  ;;  %v1760_v51 = vmul.f32 %v1756_v12, %v3626_v41 }
 0x910   :  { %1551 = vrot.lane.b32.xlu1 %v1546_v60, %s2409_s18  ;;  %1718 = vrot.lane.b32.xlu0 %v1710_v43, %s2417_s28 }
 0x911   :  { %v1731_v39 = vpop.permute.xlu1 %1730 }
 0x912   :  { %v1733_v2 = vmul.f32 %v1731_v39, %v3612_v56  ;;  %v1735_v27 = vmul.f32 %v1731_v39, %v3626_v41  ;;  %v1734_v19 = vmul.f32 %v1731_v39, %v3610_v5 }
 0x914   :  { %1591 = vrot.lane.b32.xlu1 %v1586_v44, %s2411_s20  ;;  %1549 = vrot.lane.b32.xlu0 %v1545_v46, %s2409_s18  ;;  %s4080_s18 = smov 80  }
 0x915   :  { %v1781_v6 = vpop.permute.xlu1 %1780 }
 0x916   :  { %v1783_v7 = vmul.f32 %v1781_v6, %v3612_v56  ;;  %v1785_v1 = vmul.f32 %v1781_v6, %v3626_v41  ;;  %v1784_v9 = vmul.f32 %v1781_v6, %v3610_v5 }
 0x918   :  { %1631 = vrot.lane.b32.xlu1 %v1626_v54, %s2413_s22  ;;  %1589 = vrot.lane.b32.xlu0 %v1585_v55, %s2411_s20  ;;  %s4082_s20 = smov 78  }
 0x91c   :  { %1671 = vrot.lane.b32.xlu1 %v1666_v49, %s2415_s24  ;;  %1629 = vrot.lane.b32.xlu0 %v1625_v37, %s2413_s22  ;;  %s4084_s22 = smov 76  }
 0x920   :  { %1716 = vrot.lane.b32.xlu1 %v1709_v24, %s2417_s28  ;;  %1669 = vrot.lane.b32.xlu0 %v1665_v0, %s2415_s24 }
 0x924   :  { %1830 = vperm.xlu1 %2380, %v2334_v36   ;;  %1714 = vrot.lane.b32.xlu0 %v1708_v53, %s2417_s28  ;;  %v1517_v53 = vmul.f32 %v3614_v21, %v3610_v5 }
 0x928   :  { %1880 = vperm.xlu1 %2380, %v2336_v16   ;;  %1531 = vrot.lane.b32.xlu0 %v1526_v47, %s2408_s17  ;;  %v1516_v16 = vmul.f32 %v3612_v56, %v3614_v21 }
 0x92c   :  { %1930 = vperm.xlu1 %2380, %v2338_v4   ;;  %1571 = vrot.lane.b32.xlu0 %v1566_v18, %s2410_s19 }
 0x930   :  { %1980 = vperm.xlu1 %2380, %v2340_v32   ;;  %1611 = vrot.lane.b32.xlu0 %v1606_v8, %s2412_s21 }
 0x934   :  { %2030 = vperm.xlu1 %2380, %v2342_v30   ;;  %1651 = vrot.lane.b32.xlu0 %v1646_v45, %s2414_s23 }
 0x938   :  { %1739 = vrot.lane.b32.xlu1 %v1733_v2, %s2418_s9  ;;  %1691 = vrot.lane.b32.xlu0 %v1686_v3, %s2416_s25 }
 0x93c   :  { %1743 = vrot.lane.b32.xlu1 %v1735_v27, %s2418_s9  ;;  %1805 = vperm.xlu0 %2379, %v2333_v61  }
 0x940   :  { %1766 = vrot.lane.b32.xlu1 %v1759_v52, %s2419_s14  ;;  %1855 = vperm.xlu0 %2379, %v2335_v26  }
 0x944   :  { %1789 = vrot.lane.b32.xlu1 %v1783_v7, %s2420_s29  ;;  %1905 = vperm.xlu0 %2379, %v2337_v17  }
 0x948   :  { %1793 = vrot.lane.b32.xlu1 %v1785_v1, %s2420_s29  ;;  %1955 = vperm.xlu0 %2379, %v2339_v38  }
 0x94c   :  { %2005 = vperm.xlu0 %2379, %v2341_v15  }
 0x950   :  { %2055 = vperm.xlu0 %2379, %v2343_v11  }
 0x954   :  { %1741 = vrot.lane.b32.xlu0 %v1734_v19, %s2418_s9  ;;  %s4075_s9 = smov 92  }
 0x958   :  { %1764 = vrot.lane.b32.xlu0 %v1758_v50, %s2419_s14 }
 0x95c   :  { %1768 = vrot.lane.b32.xlu0 %v1760_v51, %s2419_s14  ;;  %s4076_s14 = smov 91  }
 0x960   :  { %1791 = vrot.lane.b32.xlu0 %v1784_v9, %s2420_s29  ;;  %s4077_s29 = smov 90  }
 0x96e   :  { %v1530_v57 = vpop.permute.xlu1 %1529 }
 0x972   :  { %v1570_v28 = vpop.permute.xlu1 %1569 }
 0x976   :  { %v1610_v14 = vpop.permute.xlu1 %1609 }
 0x97a   :  { %v1650_v29 = vpop.permute.xlu1 %1649 }
 0x97e   :  { %v1690_v31 = vpop.permute.xlu1 %1689 }
 0x982   :  { %v1552_v35 = vpop.permute.xlu1 %1551  ;;  %v1719_v33 = vpop.permute.xlu0 %1718 }
 0x986   :  { %v1592_v13 = vpop.permute.xlu1 %1591  ;;  %v1550_v22 = vpop.permute.xlu0 %1549 }
 0x987   :  { %v1553_v23 = vsel %vm124_vm1, %v1550_v22, %v1552_v35  ;;  %vm4071_vm1 = vcmask 949248  }
 0x98a   :  { %v1632_v34 = vpop.permute.xlu1 %1631  ;;  %v1590_v60 = vpop.permute.xlu0 %1589 }
 0x98b   :  { %v1593_v43 = vsel %vm204_vm3, %v1590_v60, %v1592_v13  ;;  %vm4085_vm3 = vcmask 842752  }
 0x98c   :  { %vm4086_vm4 = vmmov %vm4085_vm3 }
 0x98e   :  { %v1672_v44 = vpop.permute.xlu1 %1671  ;;  %v1630_v46 = vpop.permute.xlu0 %1629 }
 0x98f   :  { %v1633_v54 = vsel %vm284_vm5, %v1630_v46, %v1632_v34  ;;  %vm4087_vm5 = vcmask 834560  }
 0x990   :  { %vm4088_vm6 = vmmov %vm4087_vm5 }
 0x992   :  { %v1717_v55 = vpop.permute.xlu1 %1716  ;;  %v1670_v49 = vpop.permute.xlu0 %1669 }
 0x993   :  { %v1721_v37 = vsel %vm458_vm9, %v1717_v55, %v1719_v33  ;;  %v1673_v24 = vsel %vm364_vm7, %v1670_v49, %v1672_v44  ;;  %vm4089_vm7 = vcmask 826368  }
 0x996   :  { %v1715_v0 = vpop.permute.xlu0 %1714 }
 0x997   :  { %v1720_v36 = vsel %vm458_vm9, %v1715_v0, %v1717_v55  ;;  %vm4090_vm9 = vmmov %vm4089_vm7 }
 0x99a   :  { %v1532_v47 = vpop.permute.xlu0 %1531 }
 0x99b   :  { %v1533_v4 = vsel %vm84_vm0, %v1530_v57, %v1532_v47  ;;  %v1537_v18 = vadd.f32 %v1532_v47, %v1517_v53  ;;  %vm4072_vm0 = vcmask 932864  }
 0x99c   :  { %v1536_v32 = vadd.f32 %v1533_v4, %v1516_v16 }
 0x99d   :  { %v1557_v8 = vadd.f32 %v1552_v35, %v1537_v18 }
 0x99e   :  { %v1572_v30 = vpop.permute.xlu0 %1571  ;;  %v1556_v45 = vadd.f32 %v1553_v23, %v1536_v32 }
 0x99f   :  { %v1573_v39 = vsel %vm164_vm2, %v1570_v28, %v1572_v30  ;;  %v1577_v2 = vadd.f32 %v1572_v30, %v1557_v8  ;;  %vm4073_vm2 = vcmask 916480   ;;  %v1831_v22 = vpop.permute.xlu1 %1830 }
 0x9a0   :  { %v1576_v3 = vadd.f32 %v1573_v39, %v1556_v45  ;;  %v1834_v23 = vmul.f32 %v1831_v22, %v3610_v5 }
 0x9a1   :  { %v1597_v27 = vadd.f32 %v1592_v13, %v1577_v2 }
 0x9a2   :  { %v1612_v61 = vpop.permute.xlu0 %1611  ;;  %v1596_v12 = vadd.f32 %v1593_v43, %v1576_v3 }
 0x9a3   :  { %v1613_v52 = vsel %vm4071_vm1, %v1610_v14, %v1612_v61  ;;  %v1617_v26 = vadd.f32 %v1612_v61, %v1597_v27  ;;  %v1881_v46 = vpop.permute.xlu1 %1880  ;;  %vm4092_vm1 = vmmov %vm4091_vm14 }
 0x9a4   :  { %v1616_v6 = vadd.f32 %v1613_v52, %v1596_v12  ;;  %v1884_v49 = vmul.f32 %v1881_v46, %v3610_v5 }
 0x9a5   :  { %v1637_v21 = vadd.f32 %v1632_v34, %v1617_v26  ;;  %v1835_v34 = vmul.f32 %v1831_v22, %v3626_v41 }
 0x9a6   :  { %v1652_v7 = vpop.permute.xlu0 %1651  ;;  %v1636_v17 = vadd.f32 %v1633_v54, %v1616_v6  ;;  %v1883_v54 = vmul.f32 %v1881_v46, %v3612_v56 }
 0x9a7   :  { %v1653_v1 = vsel %vm4072_vm0, %v1650_v29, %v1652_v7  ;;  %v1657_v38 = vadd.f32 %v1652_v7, %v1637_v21  ;;  %v1833_v29 = vmul.f32 %v1831_v22, %v3612_v56  ;;  %v1931_v53 = vpop.permute.xlu1 %1930  ;;  %vm4093_vm0 = vcmask 752640  }
 0x9a8   :  { %v1656_v15 = vadd.f32 %v1653_v1, %v1636_v17  ;;  %v1933_v16 = vmul.f32 %v1931_v53, %v3612_v56  ;;  %v1934_v4 = vmul.f32 %v1931_v53, %v3610_v5  ;;  %v1935_v18 = vmul.f32 %v1931_v53, %v3626_v41 }
 0x9a9   :  { %v1677_v11 = vadd.f32 %v1672_v44, %v1657_v38 }
 0x9aa   :  { %v1692_v19 = vpop.permute.xlu0 %1691  ;;  %v1676_v50 = vadd.f32 %v1673_v24, %v1656_v15 }
 0x9ab   :  { %v1693_v51 = vsel %vm4073_vm2, %v1690_v31, %v1692_v19  ;;  %v1697_v9 = vadd.f32 %v1692_v19, %v1677_v11  ;;  %v1981_v45 = vpop.permute.xlu1 %1980  ;;  %v2076_v11 = vld [vmem:[%s3880_s6] sm:$0xf]  ;;  %vm4094_vm2 = vmmov %vm4093_vm0 }
 0x9ac   :  { %v1696_v57 = vadd.f32 %v1693_v51, %v1676_v50  ;;  %v1983_v39 = vmul.f32 %v1981_v45, %v3612_v56  ;;  %v1984_v3 = vmul.f32 %v1981_v45, %v3610_v5  ;;  %v1985_v27 = vmul.f32 %v1981_v45, %v3626_v41  ;;  %v2092_v50 = vld [vmem:[%s3881_s7] sm:$0xf]  ;;  %v2347_v51 = vld [vmem:[%s3880_s6 + $0x10] sm:$0xf] }
 0x9ad   :  { %v3726_v28 = vadd.f32 %v1721_v37, %v1697_v9  ;;  %v1885_v37 = vmul.f32 %v1881_v46, %v3626_v41  ;;  %v2348_v9 = vld [vmem:[%s3880_s6 + $0x14] sm:$0xf] }
 0x9ae   :  { %v3728_v35 = vadd.f32 %v1720_v36, %v1696_v57  ;;  %v2349_v57 = vld [vmem:[%s3880_s6 + $0x18] sm:$0xf] }
 0x9af   :  { %v2031_v26 = vpop.permute.xlu1 %2030 }
 0x9b0   :  { %v2033_v6 = vmul.f32 %v2031_v26, %v3612_v56  ;;  %v2034_v7 = vmul.f32 %v2031_v26, %v3610_v5  ;;  %v2035_v17 = vmul.f32 %v2031_v26, %v3626_v41 }
 0x9b7   :  { %v1806_v14 = vpop.permute.xlu0 %1805 }
 0x9b8   :  { %v1808_v33 = vmul.f32 %v1806_v14, %v3612_v56  ;;  %v1809_v13 = vmul.f32 %v1806_v14, %v3610_v5  ;;  %v1810_v31 = vmul.f32 %v1806_v14, %v3626_v41  ;;  %v2350_v14 = vld [vmem:[%s3880_s6 + $0x1c] sm:$0xf] }
 0x9ba   :  { %1814 = vrot.lane.b32.xlu0 %v1808_v33, %s4074_s5  ;;  %1816 = vrot.lane.b32.xlu1 %v1809_v13, %s4074_s5  ;;  %v1740_v33 = vpop.permute.xlu1 %1739 }
 0x9bb   :  { %v1856_v60 = vpop.permute.xlu0 %1855 }
 0x9bc   :  { %v1858_v43 = vmul.f32 %v1856_v60, %v3612_v56  ;;  %v1859_v44 = vmul.f32 %v1856_v60, %v3610_v5  ;;  %v1860_v55 = vmul.f32 %v1856_v60, %v3626_v41 }
 0x9be   :  { %1818 = vrot.lane.b32.xlu0 %v1810_v31, %s4074_s5  ;;  %1839 = vrot.lane.b32.xlu1 %v1833_v29, %s4075_s9  ;;  %v1744_v13 = vpop.permute.xlu1 %1743 }
 0x9bf   :  { %v1906_v24 = vpop.permute.xlu0 %1905 }
 0x9c0   :  { %v1908_v0 = vmul.f32 %v1906_v24, %v3612_v56  ;;  %v1909_v36 = vmul.f32 %v1906_v24, %v3610_v5  ;;  %v1910_v47 = vmul.f32 %v1906_v24, %v3626_v41 }
 0x9c2   :  { %1841 = vrot.lane.b32.xlu0 %v1834_v23, %s4075_s9  ;;  %1843 = vrot.lane.b32.xlu1 %v1835_v34, %s4075_s9  ;;  %v1767_v29 = vpop.permute.xlu1 %1766 }
 0x9c3   :  { %v1956_v32 = vpop.permute.xlu0 %1955 }
 0x9c4   :  { %v1958_v8 = vmul.f32 %v1956_v32, %v3612_v56  ;;  %v1959_v30 = vmul.f32 %v1956_v32, %v3610_v5  ;;  %v1960_v2 = vmul.f32 %v1956_v32, %v3626_v41 }
 0x9c6   :  { %1864 = vrot.lane.b32.xlu0 %v1858_v43, %s4076_s14  ;;  %1866 = vrot.lane.b32.xlu1 %v1859_v44, %s4076_s14  ;;  %v1790_v23 = vpop.permute.xlu1 %1789 }
 0x9c7   :  { %v2006_v61 = vpop.permute.xlu0 %2005 }
 0x9c8   :  { %v2008_v12 = vmul.f32 %v2006_v61, %v3612_v56  ;;  %v2009_v52 = vmul.f32 %v2006_v61, %v3610_v5  ;;  %v2010_v21 = vmul.f32 %v2006_v61, %v3626_v41 }
 0x9ca   :  { %1868 = vrot.lane.b32.xlu0 %v1860_v55, %s4076_s14  ;;  %1889 = vrot.lane.b32.xlu1 %v1883_v54, %s4077_s29  ;;  %v1794_v60 = vpop.permute.xlu1 %1793 }
 0x9cb   :  { %v2056_v1 = vpop.permute.xlu0 %2055 }
 0x9cc   :  { %v2058_v38 = vmul.f32 %v2056_v1, %v3612_v56  ;;  %v2059_v15 = vmul.f32 %v2056_v1, %v3610_v5  ;;  %v2060_v19 = vmul.f32 %v2056_v1, %v3626_v41  ;;  %v2344_v5 = vld [vmem:[%s3880_s6 + $0x4] sm:$0xf]  ;;  %v2345_v56 = vld [vmem:[%s3880_s6 + $0x8] sm:$0xf]  ;;  %v2346_v41 = vld [vmem:[%s3880_s6 + $0xc] sm:$0xf] }
 0x9cd   :  { %s2434_s6 = smov [#allocation3]  }
 0x9ce   :  { %1891 = vrot.lane.b32.xlu0 %v1884_v49, %s4077_s29  ;;  %1893 = vrot.lane.b32.xlu1 %v1885_v37, %s4077_s29  ;;  %s2249_s5 = sshll.u32 %s2434_s6, 4  ;;  %s2250_s5 = int_to_ptr.vmem [resolvable:$true] %s2249_s5 }
 0x9cf   :  { %v1742_v22 = vpop.permute.xlu0 %1741  ;;  %s2385_s9 = scalar_lea.vmem %s2250_s5, 128  ;;  %p2390_p1 = scmp.lt.s32.totalorder %s2250_s5, %s2250_s5 }
 0x9d0   :  { %v1745_v61 = vsel %vm4085_vm3, %v1740_v33, %v1742_v22  ;;  %p2386_p0 = scmp.ne.s32.totalorder %s2250_s5, %s2385_s9  ;;  %p2391_p2 = scmp.lt.s32.totalorder %s2385_s9, %s2385_s9 }
 0x9d2   :  { %1914 = vrot.lane.b32.xlu0 %v1908_v0, %s4078_s2  ;;  %1916 = vrot.lane.b32.xlu1 %v1909_v36, %s4078_s2  ;;  %p2392_p3 = por %p2391_p2, %p2390_p1 }
 0x9d3   :  { %v1765_v31 = vpop.permute.xlu0 %1764 }
 0x9d4   :  { %p2393_p4 = pnand %p2392_p3, %p2386_p0 }
 0x9d6   :  { %1918 = vrot.lane.b32.xlu0 %v1910_v47, %s4078_s2  ;;  %1939 = vrot.lane.b32.xlu1 %v1933_v16, %s4079_s1 }
 0x9d7   :  { %v1769_v34 = vpop.permute.xlu0 %1768 }
 0x9d8   :  { %v1771_v26 = vsel %vm4088_vm6, %v1767_v29, %v1769_v34 }
 0x9da   :  { %1941 = vrot.lane.b32.xlu0 %v1934_v4, %s4079_s1  ;;  %1943 = vrot.lane.b32.xlu1 %v1935_v18, %s4079_s1 }
 0x9db   :  { %v1792_v43 = vpop.permute.xlu0 %1791 }
 0x9dc   :  { %v1795_v1 = vsel %vm4089_vm7, %v1790_v23, %v1792_v43 }
 0x9de   :  { %1964 = vrot.lane.b32.xlu0 %v1958_v8, %s4080_s18  ;;  %1966 = vrot.lane.b32.xlu1 %v1959_v30, %s4080_s18 }
 0x9e2   :  { %1968 = vrot.lane.b32.xlu0 %v1960_v2, %s4080_s18  ;;  %1989 = vrot.lane.b32.xlu1 %v1983_v39, %s4081_s13 }
 0x9e6   :  { %1991 = vrot.lane.b32.xlu0 %v1984_v3, %s4081_s13  ;;  %1993 = vrot.lane.b32.xlu1 %v1985_v27, %s4081_s13 }
 0x9ea   :  { %2014 = vrot.lane.b32.xlu0 %v2008_v12, %s4082_s20  ;;  %2016 = vrot.lane.b32.xlu1 %v2009_v52, %s4082_s20  ;;  %v1746_v12 = vsel %vm4086_vm4, %v1742_v22, %v1744_v13  ;;  %v1770_v52 = vsel %vm4087_vm5, %v1765_v31, %v1767_v29  ;;  %vm2240_vm4 = vcmask 883716  }
 0x9ee   :  { %2018 = vrot.lane.b32.xlu0 %v2010_v21, %s4082_s20  ;;  %2039 = vrot.lane.b32.xlu1 %v2033_v6, %s4083_s26  ;;  %v1749_v6 = vadd.f32 %v1745_v61, %v3728_v35  ;;  %v1750_v21 = vadd.f32 %v1746_v12, %v3726_v28 }
 0x9f2   :  { %2041 = vrot.lane.b32.xlu0 %v2034_v7, %s4083_s26  ;;  %2043 = vrot.lane.b32.xlu1 %v2035_v17, %s4083_s26 }
 0x9f6   :  { %2064 = vrot.lane.b32.xlu0 %v2058_v38, %s4084_s22  ;;  %2066 = vrot.lane.b32.xlu1 %v2059_v15, %s4084_s22  ;;  %v1796_v38 = vsel %vm4090_vm9, %v1792_v43, %v1794_v60  ;;  %v1774_v15 = vadd.f32 %v1770_v52, %v1749_v6 }
 0x9fa   :  { %2068 = vrot.lane.b32.xlu0 %v2060_v19, %s4084_s22  ;;  %2087 = vperm.xlu1 %2380, %v2076_v11   ;;  %v1775_v11 = vadd.f32 %v1771_v26, %v1750_v21 }
 0x9fe   :  { %2095 = vperm.xlu0 %2379, %v2092_v50   ;;  %2112 = vperm.xlu1 %2380, %v2344_v5   ;;  %v1799_v5 = vadd.f32 %v1795_v1, %v1774_v15 }
 0xa02   :  { %2131 = vperm.xlu0 %2379, %v2345_v56   ;;  %2150 = vperm.xlu1 %2380, %v2346_v41   ;;  %v1800_v56 = vadd.f32 %v1796_v38, %v1775_v11 }
 0xa06   :  { %2169 = vperm.xlu0 %2379, %v2347_v51   ;;  %2188 = vperm.xlu1 %2380, %v2348_v9  }
 0xa0a   :  { %2207 = vperm.xlu0 %2379, %v2349_v57   ;;  %2226 = vperm.xlu1 %2380, %v2350_v14  }
 0xa2c   :  { %v1815_v44 = vpop.permute.xlu0 %1814  ;;  %v1817_v46 = vpop.permute.xlu1 %1816 }
 0xa2d   :  { %v1820_v19 = vsel %vm4091_vm14, %v1815_v44, %v1817_v46 }
 0xa2e   :  { %v1824_v9 = vadd.f32 %v1820_v19, %v1799_v5 }
 0xa30   :  { %v1819_v54 = vpop.permute.xlu0 %1818  ;;  %v1840_v55 = vpop.permute.xlu1 %1839 }
 0xa31   :  { %v1821_v50 = vsel %vm4092_vm1, %v1817_v46, %v1819_v54 }
 0xa32   :  { %v1825_v57 = vadd.f32 %v1821_v50, %v1800_v56 }
 0xa34   :  { %v1842_v49 = vpop.permute.xlu0 %1841  ;;  %v1844_v37 = vpop.permute.xlu1 %1843 }
 0xa35   :  { %v1845_v35 = vsel %vm4093_vm0, %v1840_v55, %v1842_v49  ;;  %v1846_v28 = vsel %vm4094_vm2, %v1842_v49, %v1844_v37 }
 0xa36   :  { %v1849_v13 = vadd.f32 %v1845_v35, %v1824_v9  ;;  %v1850_v22 = vadd.f32 %v1846_v28, %v1825_v57 }
 0xa38   :  { %v1865_v24 = vpop.permute.xlu0 %1864  ;;  %v1867_v0 = vpop.permute.xlu1 %1866 }
 0xa39   :  { %v1870_v14 = vsel %vm758_vm15, %v1865_v24, %v1867_v0 }
 0xa3a   :  { %v1874_v60 = vadd.f32 %v1870_v14, %v1849_v13 }
 0xa3c   :  { %v1869_v36 = vpop.permute.xlu0 %1868  ;;  %v1890_v53 = vpop.permute.xlu1 %1889 }
 0xa3d   :  { %v1871_v33 = vsel %vm758_vm15, %v1867_v0, %v1869_v36  ;;  %vm4099_vm15 = vcmask 621568  }
 0xa3e   :  { %v1875_v43 = vadd.f32 %v1871_v33, %v1850_v22  ;;  %vm4100_vm3 = vmmov %vm4099_vm15 }
 0xa40   :  { %v1892_v16 = vpop.permute.xlu0 %1891  ;;  %v1894_v47 = vpop.permute.xlu1 %1893 }
 0xa41   :  { %v1895_v23 = vsel %vm808_vm10, %v1890_v53, %v1892_v16  ;;  %v1896_v34 = vsel %vm808_vm10, %v1892_v16, %v1894_v47 }
 0xa42   :  { %v1899_v54 = vadd.f32 %v1895_v23, %v1874_v60  ;;  %v1900_v55 = vadd.f32 %v1896_v34, %v1875_v43 }
 0xa44   :  { %v1915_v4 = vpop.permute.xlu0 %1914  ;;  %v1917_v18 = vpop.permute.xlu1 %1916 }
 0xa45   :  { %v1920_v44 = vsel %vm858_vm8, %v1915_v4, %v1917_v18 }
 0xa46   :  { %v1924_v0 = vadd.f32 %v1920_v44, %v1899_v54 }
 0xa48   :  { %v1919_v32 = vpop.permute.xlu0 %1918  ;;  %v1940_v8 = vpop.permute.xlu1 %1939 }
 0xa49   :  { %v1921_v46 = vsel %vm858_vm8, %v1917_v18, %v1919_v32  ;;  %vm4095_vm8 = vcmask 637952  }
 0xa4a   :  { %v1925_v36 = vadd.f32 %v1921_v46, %v1900_v55  ;;  %vm4096_vm10 = vmmov %vm4095_vm8 }
 0xa4c   :  { %v1942_v30 = vpop.permute.xlu0 %1941  ;;  %v1944_v45 = vpop.permute.xlu1 %1943 }
 0xa4d   :  { %v1945_v37 = vsel %vm908_vm11, %v1940_v8, %v1942_v30  ;;  %v1946_v24 = vsel %vm908_vm11, %v1942_v30, %v1944_v45  ;;  %vm4097_vm11 = vcmask 629760  }
 0xa4e   :  { %v1949_v47 = vadd.f32 %v1945_v37, %v1924_v0  ;;  %v1950_v12 = vadd.f32 %v1946_v24, %v1925_v36 }
 0xa50   :  { %v1965_v39 = vpop.permute.xlu0 %1964  ;;  %v1967_v2 = vpop.permute.xlu1 %1966 }
 0xa51   :  { %v1970_v53 = vsel %vm958_vm12, %v1965_v39, %v1967_v2 }
 0xa52   :  { %v1974_v32 = vadd.f32 %v1970_v53, %v1949_v47 }
 0xa54   :  { %v1969_v3 = vpop.permute.xlu0 %1968  ;;  %v1990_v27 = vpop.permute.xlu1 %1989 }
 0xa55   :  { %v1971_v16 = vsel %vm958_vm12, %v1967_v2, %v1969_v3  ;;  %vm4098_vm12 = vmmov %vm4097_vm11 }
 0xa56   :  { %v1975_v26 = vadd.f32 %v1971_v16, %v1950_v12 }
 0xa58   :  { %v1992_v7 = vpop.permute.xlu0 %1991  ;;  %v1994_v17 = vpop.permute.xlu1 %1993 }
 0xa59   :  { %v1995_v4 = vsel %vm1008_vm13, %v1990_v27, %v1992_v7  ;;  %v1996_v18 = vsel %vm1008_vm13, %v1992_v7, %v1994_v17  ;;  %vm2239_vm13 = vcmask 1043456  }
 0xa5a   :  { %v1999_v45 = vadd.f32 %v1995_v4, %v1974_v32  ;;  %v2000_v6 = vadd.f32 %v1996_v18, %v1975_v26  ;;  %vm2241_vm5 = vmor %vm2240_vm4, %vm2239_vm13 }
 0xa5c   :  { %v2015_v41 = vpop.permute.xlu0 %2014  ;;  %v2017_v51 = vpop.permute.xlu1 %2016 }
 0xa5d   :  { %v2020_v8 = vsel %vm4095_vm8, %v2015_v41, %v2017_v51 }
 0xa5e   :  { %v2024_v3 = vadd.f32 %v2020_v8, %v1999_v45 }
 0xa60   :  { %v2019_v29 = vpop.permute.xlu0 %2018  ;;  %v2040_v31 = vpop.permute.xlu1 %2039 }
 0xa61   :  { %v2021_v30 = vsel %vm4096_vm10, %v2017_v51, %v2019_v29 }
 0xa62   :  { %v2025_v38 = vadd.f32 %v2021_v30, %v2000_v6 }
 0xa64   :  { %v2042_v49 = vpop.permute.xlu0 %2041  ;;  %v2044_v61 = vpop.permute.xlu1 %2043 }
 0xa65   :  { %v2045_v39 = vsel %vm4097_vm11, %v2040_v31, %v2042_v49  ;;  %v2046_v2 = vsel %vm4098_vm12, %v2042_v49, %v2044_v61 }
 0xa66   :  { %v2049_v17 = vadd.f32 %v2045_v39, %v2024_v3  ;;  %v2050_v15 = vadd.f32 %v2046_v2, %v2025_v38 }
 0xa68   :  { %v2065_v52 = vpop.permute.xlu0 %2064  ;;  %v2067_v21 = vpop.permute.xlu1 %2066 }
 0xa69   :  { %v2070_v27 = vsel %vm4099_vm15, %v2065_v52, %v2067_v21 }
 0xa6a   :  { %v2074_v11 = vadd.f32 %v2070_v27, %v2049_v17 }
 0xa6c   :  { %v2069_v1 = vpop.permute.xlu0 %2068  ;;  %v2080_v56 = vrot.slane %v2074_v11, %v3448_v10  ;;  %v2105_v28 = vrot.slane %v2074_v11, %v3453_v20  ;;  %v2124_v29 = vrot.slane %v2074_v11, %v3471_v40  ;;  %v2143_v60 = vrot.slane %v2074_v11, %v3477_v42 }
 0xa6d   :  { %v2071_v7 = vsel %vm4100_vm3, %v2067_v21, %v2069_v1  ;;  %v2162_v54 = vrot.slane %v2074_v11, %v3479_v48  ;;  %v2181_v53 = vrot.slane %v2074_v11, %v3481_v63  ;;  %v2200_v52 = vrot.slane %v2074_v11, %v3487_v62 }
 0xa6e   :  { %v2075_v19 = vadd.f32 %v2071_v7, %v2050_v15  ;;  %v2219_v6 = vrot.slane %v2074_v11, %v3489_v25 }
 0xa70   :  { %v2084_v5 = vrot.slane %v2075_v19, %v3448_v10  ;;  %v2109_v35 = vrot.slane %v2075_v19, %v3453_v20  ;;  %v2128_v31 = vrot.slane %v2075_v19, %v3471_v40  ;;  %v2147_v34 = vrot.slane %v2075_v19, %v3477_v42 }
 0xa71   :  { %v2166_v55 = vrot.slane %v2075_v19, %v3479_v48  ;;  %v2185_v40 = vrot.slane %v2075_v19, %v3481_v63  ;;  %v2204_v4 = vrot.slane %v2075_v19, %v3487_v62  ;;  %v2223_v30 = vrot.slane %v2075_v19, %v3489_v25 }
 0xa75   :  { %v2088_v50 = vpop.permute.xlu1 %2087 }
 0xa76   :  { %v2090_v41 = vmul.f32 %v2088_v50, %v2080_v56  ;;  %v2091_v51 = vmul.f32 %v2088_v50, %v2084_v5 }
 0xa79   :  { %v2096_v9 = vpop.permute.xlu0 %2095  ;;  %v2113_v57 = vpop.permute.xlu1 %2112 }
 0xa7a   :  { %v2098_v14 = vadd.f32 %v2096_v9, %v2090_v41  ;;  %v2099_v33 = vadd.f32 %v2096_v9, %v2091_v51  ;;  %v2115_v13 = vmul.f32 %v2113_v57, %v2105_v28  ;;  %v2116_v22 = vmul.f32 %v2113_v57, %v2109_v35 }
 0xa7c   :  { %v2117_v43 = vadd.f32 %v2115_v13, %v2098_v14  ;;  %v2118_v44 = vadd.f32 %v2116_v22, %v2099_v33 }
 0xa7d   :  { %v2132_v23 = vpop.permute.xlu0 %2131  ;;  %v2151_v10 = vpop.permute.xlu1 %2150 }
 0xa7e   :  { %v2134_v46 = vmul.f32 %v2132_v23, %v2124_v29  ;;  %v2135_v20 = vmul.f32 %v2132_v23, %v2128_v31  ;;  %v2153_v24 = vmul.f32 %v2151_v10, %v2143_v60  ;;  %v2154_v0 = vmul.f32 %v2151_v10, %v2147_v34 }
 0xa80   :  { %v2136_v49 = vadd.f32 %v2134_v46, %v2117_v43  ;;  %v2137_v37 = vadd.f32 %v2135_v20, %v2118_v44 }
 0xa81   :  { %v2170_v36 = vpop.permute.xlu0 %2169  ;;  %v2189_v61 = vpop.permute.xlu1 %2188 }
 0xa82   :  { %v2155_v16 = vadd.f32 %v2153_v24, %v2136_v49  ;;  %v2156_v42 = vadd.f32 %v2154_v0, %v2137_v37  ;;  %v2172_v47 = vmul.f32 %v2170_v36, %v2162_v54  ;;  %v2173_v12 = vmul.f32 %v2170_v36, %v2166_v55 }
 0xa83   :  { %v2191_v32 = vmul.f32 %v2189_v61, %v2181_v53  ;;  %v2192_v26 = vmul.f32 %v2189_v61, %v2185_v40 }
 0xa84   :  { %v2174_v18 = vadd.f32 %v2172_v47, %v2155_v16  ;;  %v2175_v48 = vadd.f32 %v2173_v12, %v2156_v42 }
 0xa85   :  { %v2208_v8 = vpop.permute.xlu0 %2207  ;;  %v2227_v45 = vpop.permute.xlu1 %2226 }
 0xa86   :  { %v2193_v21 = vadd.f32 %v2191_v32, %v2174_v18  ;;  %v2194_v63 = vadd.f32 %v2192_v26, %v2175_v48  ;;  %v2210_v1 = vmul.f32 %v2208_v8, %v2200_v52  ;;  %v2211_v39 = vmul.f32 %v2208_v8, %v2204_v4 }
 0xa87   :  { %v2229_v38 = vmul.f32 %v2227_v45, %v2219_v6  ;;  %v2230_v27 = vmul.f32 %v2227_v45, %v2223_v30 }
 0xa88   :  { %v2212_v2 = vadd.f32 %v2210_v1, %v2193_v21  ;;  %v2213_v3 = vadd.f32 %v2211_v39, %v2194_v63 }
 0xa8a   :  { %v2231_v7 = vadd.f32 %v2229_v38, %v2212_v2  ;;  %v2232_v62 = vadd.f32 %v2230_v27, %v2213_v3 }
 0xa8c   :  { %v2233_v17 = vmul.f32 %v2231_v7, %v3563_v59  ;;  %v2234_v15 = vmul.f32 %v2232_v62, %v3560_v58 }
 0xa8e   :  { %v2237_v25 = vcombine.low %v2233_v17, %v2234_v15 }
 0xa90   :  { %2242 = vst.msk [vmem:[#allocation3] sm:$0xff] %vm2241_vm5, %v2237_v25 }
 0xa91   :  { %2396 = shalt.err (!%p2393_p4)
}
 0xa92   :  { %2252 = dma.vmem_to_hbm [thread:$0]  %s2250_s5, 128, %s3882_s8, [#allocation4]  }
 0xa93   :  { %2405 = dma.done.wait [#allocation4], 128  }
 0xa94   :  { %2406 = vsyncadd [#allocation4], 4294967168 }
 0xa95   :  { %2256 = vsyncpa [#allocation4], 1 }

</bundles_post_ra>
